<compile_context>
chip_gen: v7x
topology: tpu7x:2x2x1
jax: 0.10.0
libtpu: 0.0.40
codegen_flags: <defaults>
</compile_context>

<pallas_src>
import functools

import jax
import jax.numpy as jnp
import numpy as np
from jax.experimental import pallas as pl
from jax.experimental.pallas import tpu as pltpu


def mha_edges_kernel(n_head, dim_head,
                     xq_ref, k_ref, e_ref, attn_ref, pad_ref,
                     wq_ref, bq_ref, we_ref, be_ref,
                     woe_ref, boe_ref, woh_ref, boh_ref,
                     xo_ref, eo_ref, sc_ref):
    x_q = xq_ref[0]                        # (TQ, H)  query-row tile
    k = k_ref[0]                           # (N, H)   pre-projected keys (= values)
    attn = attn_ref[0]                     # (TQ, N)  additive mask (broadcast over heads)
    pad = pad_ref[0]                       # (TQ, N)  multiplicative mask

    TQ, H = x_q.shape
    N = k.shape[0]
    d = dim_head
    inv_sqrt_d = 1.0 / float(np.sqrt(d))

    # bf16 HBM storage for e; upcast before any elementwise math (v5e-safe).
    e_rows = e_ref[0].astype(jnp.float32)  # (TQ*N, H) edge rows for this tile

    # Projections on the MXU.  1/sqrt(d) folded into q once; this is exact here
    # because the reference scales the full intermediate, which feeds BOTH the
    # Oe path and the scores path.
    q = (jnp.dot(x_q, wq_ref[...], preferred_element_type=jnp.float32)
         + bq_ref[...]) * inv_sqrt_d                                     # (TQ, H)
    v = k  # reproduces the reference exactly: V_x = self.K(x)
    ee = (jnp.dot(e_rows, we_ref[...], preferred_element_type=jnp.float32)
          + be_ref[...])                                                 # (TQ*N, H)

    # All-heads, lane-dense intermediate: inter3[i, j, h*d+c] = Q*K*E / sqrt(d)
    inter3 = q[:, None, :] * k[None, :, :] * ee.reshape(TQ, N, H)        # (TQ, N, H)

    # ---- Oe path: one full-contraction matmul, then fold to a lane-dense
    # (TQ, N*H) slab so the output buffer and its store are unmasked/dense.
    res = (jnp.dot(inter3.reshape(TQ * N, H), woe_ref[...],
                   preferred_element_type=jnp.float32) + boe_ref[...])   # (TQ*N, H)
    res3 = res.reshape(TQ, N, H)
    # TODO(synk): when H >= 128 the natural (..., H) layout is already lane-dense
    # and this fold could be skipped.
    eo_ref[0] = jnp.concatenate([res3[:, j, :] for j in range(N)], axis=-1)  # (TQ, N*H)

    # ---- Scores path: cheap per-head channel sums, then a single vectorized
    # softmax over the stacked (n_head, TQ, N) logits.
    s3 = jnp.stack(
        [jnp.sum(inter3[:, :, h * d:(h + 1) * d], axis=-1) for h in range(n_head)],
        axis=0)                                                          # (n_head, TQ, N)
    logits = attn[None, :, :] + s3
    m = jnp.max(logits, axis=-1, keepdims=True)
    p = jnp.exp(logits - m)
    denom = jnp.sum(p, axis=-1, keepdims=True)
    scores3 = (p / denom) * pad[None, :, :]        # exact softmax (no approx recip)

    # One lane-dense scores write per grid step: (n_head, TQ*N).
    sc_ref[0] = jnp.concatenate([scores3[:, i, :] for i in range(TQ)], axis=-1)

    # ---- Attention: one batched matmul over heads; heads concatenated back to a
    # lane-dense (TQ, H) buffer so Oh is a single K=H matmul.
    vh = jnp.stack([v[:, h * d:(h + 1) * d] for h in range(n_head)], axis=0)  # (n_head, N, d)
    att3 = jnp.einsum('hqk,hkd->hqd', scores3, vh,
                      preferred_element_type=jnp.float32)                # (n_head, TQ, d)
    attended = jnp.concatenate([att3[h] for h in range(n_head)], axis=-1)  # (TQ, H)
    # out_dropout is identity in eval mode.
    xo_ref[0] = (jnp.dot(attended, woh_ref[...],
                         preferred_element_type=jnp.float32) + boh_ref[...])


def _vmem_budget_bytes():
    """Generation-aware scoped-VMEM limit (v7x: 64 MiB, v5e/v6e: 128 MiB)."""
    try:
        cap = pltpu.get_tpu_info().vmem_capacity_bytes
    except Exception:
        cap = 64 * 1024 * 1024             # conservative (v7x-sized) fallback
    return min(int(cap * 3 // 4), 96 * 1024 * 1024)


def _pick_tq(N, H, vmem_limit):
    """Largest query-tile that divides N and fits the per-step VMEM footprint."""
    lane_h = max(H, 128)                   # (..., H) intermediates are lane-padded if H < 128
    # double-buffered bf16 e input + f32 lane-dense eo output + ~4 live f32 slabs
    per_row = N * (2 * H * 2 + 2 * H * 4 + 4 * lane_h * 4)
    budget = vmem_limit // 2               # headroom for weights/masks/x/scores
    cands = [t for t in range(N, 0, -1) if N % t == 0 and (t % 8 == 0 or t == N)]
    for t in cands:
        if t * per_row <= budget:
            return t
    return cands[-1]


def mha_edges_forward(x, e, attention_mask, padding_mask, params, n_head, tq=None):
    B, N, H = x.shape
    assert H % n_head == 0
    d = H // n_head

    vmem_limit = _vmem_budget_bytes()
    if tq is None:
        tq = _pick_tq(N, H, vmem_limit)
    tq = min(tq, N)
    assert N % tq == 0, "query-tile size must divide N"
    n_tiles = N // tq

    # Hoist the K projection (shared by every query tile; V aliases K in the
    # reference module) out of the kernel -- computed once per batch in XLA.
    k_pre = x @ params["wk"] + params["bk"]                  # (B, N, H) f32

    # bf16 storage of e halves the dominant HBM read traffic; in-kernel math is f32.
    e_flat = e.reshape(B, N * N, H).astype(jnp.bfloat16)
    attn = attention_mask.reshape(B, N, N)
    pad = padding_mask.reshape(B, N, N)

    kernel = functools.partial(mha_edges_kernel, n_head, d)

    # TODO(synk): pipeline_mode=pl.Buffered(1) on the constant weight/bias specs
    # would drop their second VMEM buffer; left at the default for conservative
    # lowering (negligible at H=32).
    wspec = pl.BlockSpec((H, H), lambda b, t: (0, 0))
    bspec = pl.BlockSpec((1, H), lambda b, t: (0, 0))

    out_shapes = (
        jax.ShapeDtypeStruct((B, N, H), jnp.float32),            # x_out
        jax.ShapeDtypeStruct((B, N, N * H), jnp.float32),        # e_out (lane-dense)
        jax.ShapeDtypeStruct((B, n_head, N * N), jnp.float32),   # scores (lane-dense)
    )
    in_specs = [
        pl.BlockSpec((1, tq, H), lambda b, t: (b, t, 0)),        # x, query tile
        pl.BlockSpec((1, N, H), lambda b, t: (b, 0, 0)),         # K (= V), all nodes
        pl.BlockSpec((1, tq * N, H), lambda b, t: (b, t, 0)),    # e rows (bf16)
        pl.BlockSpec((1, tq, N), lambda b, t: (b, t, 0)),        # additive mask rows
        pl.BlockSpec((1, tq, N), lambda b, t: (b, t, 0)),        # padding mask rows
        wspec, bspec,   # Q
        wspec, bspec,   # E
        wspec, bspec,   # Oe
        wspec, bspec,   # Oh
    ]
    out_specs = (
        pl.BlockSpec((1, tq, H), lambda b, t: (b, t, 0)),
        pl.BlockSpec((1, tq, N * H), lambda b, t: (b, t, 0)),
        pl.BlockSpec((1, n_head, tq * N), lambda b, t: (b, 0, t)),
    )

    fn = pl.pallas_call(
        kernel,
        out_shape=out_shapes,
        grid=(B, n_tiles),
        in_specs=in_specs,
        out_specs=out_specs,
        compiler_params=pltpu.CompilerParams(
            dimension_semantics=("parallel", "parallel"),
            vmem_limit_bytes=vmem_limit),
    )
    x_out, eo_dense, sc_dense = fn(
        x, k_pre, e_flat, attn, pad,
        params["wq"], params["bq"], params["we"], params["be"],
        params["woe"], params["boe"], params["woh"], params["boh"],
    )
    return (x_out,
            eo_dense.reshape(B, N, N, H),
            sc_dense.reshape(B, n_head, N, N))


def make_params(key, H):
    ks = jax.random.split(key, 10)
    def w(k): return 0.1 * jax.random.normal(k, (H, H), jnp.float32)
    def b(k): return 0.1 * jax.random.normal(k, (1, H), jnp.float32)
    return {
        "wq": w(ks[0]), "bq": b(ks[1]),
        "wk": w(ks[2]), "bk": b(ks[3]),
        "we": w(ks[4]), "be": b(ks[5]),
        "woe": w(ks[6]), "boe": b(ks[7]),
        "woh": w(ks[8]), "boh": b(ks[9]),
    }


def reference(x, e, attention_mask, padding_mask, params, n_head):
    """Pure-JAX reference matching the PyTorch module (eval mode)."""
    B, N, H = x.shape
    d = H // n_head
    q = x @ params["wq"] + params["bq"]
    k = x @ params["wk"] + params["bk"]
    v = k                                            # V_x = self.K(x) in the reference
    ee = e @ params["we"] + params["be"]
    qh = q.reshape(B, N, n_head, d).transpose(0, 2, 1, 3)
    kh = k.reshape(B, N, n_head, d).transpose(0, 2, 1, 3)
    vh = v.reshape(B, N, n_head, d).transpose(0, 2, 1, 3)
    eh = ee.reshape(B, N, N, n_head, d).transpose(0, 3, 1, 2, 4)
    inter = qh[:, :, :, None, :] * kh[:, :, None, :, :] * eh / np.sqrt(d)
    scores = jax.nn.softmax(attention_mask + inter.sum(-1), axis=-1) * padding_mask
    e_out = inter.transpose(0, 2, 3, 1, 4).reshape(B, N, N, H)
    e_out = e_out @ params["woe"] + params["boe"]
    att = jnp.matmul(scores, vh).transpose(0, 2, 1, 3).reshape(B, N, H)
    x_out = att @ params["woh"] + params["boh"]
    return x_out, e_out, scores


if __name__ == "__main__":
    B, N, H, n_head = 2, 16, 32, 4

    key = jax.random.PRNGKey(0)
    k_x, k_e, k_m, k_p = jax.random.split(key, 4)
    x = jax.random.normal(k_x, (B, N, H), jnp.float32)
    e = jax.random.normal(k_e, (B, N, N, H), jnp.float32)
    attention_mask = 0.01 * jax.random.normal(k_m, (B, 1, N, N), jnp.float32)
    padding_mask = jnp.ones((B, 1, N, N), jnp.float32)

    params = make_params(k_p, H)

    # TODO(synk): training-mode dropout and scores.detach().cpu().numpy() have no
    # in-kernel equivalent (out_dropout is identity in eval; scores returned as array).
    x_out, e_out, scores = mha_edges_forward(
        x, e, attention_mask, padding_mask, params, n_head)
    jax.block_until_ready((x_out, e_out, scores))

    assert x_out.shape == (B, N, H)
    assert e_out.shape == (B, N, N, H)
    assert scores.shape == (B, n_head, N, N)

    # The kernel stores e in bf16 (review-recommended bandwidth lever); compare
    # against the reference fed the same bf16-rounded e so numerics line up.
    e_rounded = e.astype(jnp.bfloat16).astype(jnp.float32)
    x_ref, e_ref, s_ref = reference(x, e_rounded, attention_mask, padding_mask,
                                    params, n_head)
    np.testing.assert_allclose(np.asarray(x_out), np.asarray(x_ref), rtol=5e-3, atol=5e-3)
    np.testing.assert_allclose(np.asarray(e_out), np.asarray(e_ref), rtol=5e-3, atol=5e-3)
    np.testing.assert_allclose(np.asarray(scores), np.asarray(s_ref), rtol=5e-3, atol=5e-3)

    print("KERNEL_OK")
</pallas_src>

<mosaic_0001>
module attributes {stable_mosaic.version = 11 : i64} {
  func.func @mha_edges_kernel(%arg0: i32, %arg1: i32, %arg2: memref<1x16x32xf32, #tpu.memory_space<vmem>>, %arg3: memref<1x16x32xf32, #tpu.memory_space<vmem>>, %arg4: memref<1x256x32xbf16, #tpu.memory_space<vmem>>, %arg5: memref<1x16x16xf32, #tpu.memory_space<vmem>>, %arg6: memref<1x16x16xf32, #tpu.memory_space<vmem>>, %arg7: memref<32x32xf32, #tpu.memory_space<vmem>>, %arg8: memref<1x32xf32, #tpu.memory_space<vmem>>, %arg9: memref<32x32xf32, #tpu.memory_space<vmem>>, %arg10: memref<1x32xf32, #tpu.memory_space<vmem>>, %arg11: memref<32x32xf32, #tpu.memory_space<vmem>>, %arg12: memref<1x32xf32, #tpu.memory_space<vmem>>, %arg13: memref<32x32xf32, #tpu.memory_space<vmem>>, %arg14: memref<1x32xf32, #tpu.memory_space<vmem>>, %arg15: memref<1x16x32xf32, #tpu.memory_space<vmem>>, %arg16: memref<1x16x512xf32, #tpu.memory_space<vmem>>, %arg17: memref<1x4x256xf32, #tpu.memory_space<vmem>>) attributes {dimension_semantics = [#tpu.dimension_semantics<parallel>, #tpu.dimension_semantics<parallel>], iteration_bounds = array<i64: 2, 1>, scalar_prefetch = 0 : i64, scratch_operands = 0 : i64, tpu.core_type = #tpu.core_type<tc>, window_params = [{transform_indices = @transform_0, window_bounds = array<i64: 1, 16, 32>}, {transform_indices = @transform_1, window_bounds = array<i64: 1, 16, 32>}, {transform_indices = @transform_2, window_bounds = array<i64: 1, 256, 32>}, {transform_indices = @transform_3, window_bounds = array<i64: 1, 16, 16>}, {transform_indices = @transform_4, window_bounds = array<i64: 1, 16, 16>}, {pipeline_mode = #tpu.pipeline_mode<synchronous>, transform_indices = @transform_5, window_bounds = array<i64: 32, 32>}, {pipeline_mode = #tpu.pipeline_mode<synchronous>, transform_indices = @transform_6, window_bounds = array<i64: 1, 32>}, {pipeline_mode = #tpu.pipeline_mode<synchronous>, transform_indices = @transform_7, window_bounds = array<i64: 32, 32>}, {pipeline_mode = #tpu.pipeline_mode<synchronous>, transform_indices = @transform_8, window_bounds = array<i64: 1, 32>}, {pipeline_mode = #tpu.pipeline_mode<synchronous>, transform_indices = @transform_9, window_bounds = array<i64: 32, 32>}, {pipeline_mode = #tpu.pipeline_mode<synchronous>, transform_indices = @transform_10, window_bounds = array<i64: 1, 32>}, {pipeline_mode = #tpu.pipeline_mode<synchronous>, transform_indices = @transform_11, window_bounds = array<i64: 32, 32>}, {pipeline_mode = #tpu.pipeline_mode<synchronous>, transform_indices = @transform_12, window_bounds = array<i64: 1, 32>}, {transform_indices = @transform_13, window_bounds = array<i64: 1, 16, 32>}, {transform_indices = @transform_14, window_bounds = array<i64: 1, 16, 512>}, {transform_indices = @transform_15, window_bounds = array<i64: 1, 4, 256>}]} {
    %c0 = arith.constant 0 : index
    %c0_0 = arith.constant 0 : index
    %c0_1 = arith.constant 0 : index
    %0 = vector.load %arg2[%c0, %c0_0, %c0_1] : memref<1x16x32xf32, #tpu.memory_space<vmem>>, vector<1x16x32xf32>
    %1 = vector.shape_cast %0 : vector<1x16x32xf32> to vector<16x32xf32>
    %c0_2 = arith.constant 0 : index
    %c0_3 = arith.constant 0 : index
    %c0_4 = arith.constant 0 : index
    %2 = vector.load %arg3[%c0_2, %c0_3, %c0_4] : memref<1x16x32xf32, #tpu.memory_space<vmem>>, vector<1x16x32xf32>
    %3 = vector.shape_cast %2 : vector<1x16x32xf32> to vector<16x32xf32>
    %c0_5 = arith.constant 0 : index
    %c0_6 = arith.constant 0 : index
    %c0_7 = arith.constant 0 : index
    %4 = vector.load %arg5[%c0_5, %c0_6, %c0_7] : memref<1x16x16xf32, #tpu.memory_space<vmem>>, vector<1x16x16xf32>
    %5 = vector.shape_cast %4 : vector<1x16x16xf32> to vector<16x16xf32>
    %c0_8 = arith.constant 0 : index
    %c0_9 = arith.constant 0 : index
    %c0_10 = arith.constant 0 : index
    %6 = vector.load %arg6[%c0_8, %c0_9, %c0_10] : memref<1x16x16xf32, #tpu.memory_space<vmem>>, vector<1x16x16xf32>
    %7 = vector.shape_cast %6 : vector<1x16x16xf32> to vector<16x16xf32>
    %c0_11 = arith.constant 0 : index
    %c0_12 = arith.constant 0 : index
    %c0_13 = arith.constant 0 : index
    %8 = vector.load %arg4[%c0_11, %c0_12, %c0_13] : memref<1x256x32xbf16, #tpu.memory_space<vmem>>, vector<1x256x32xbf16>
    %9 = vector.shape_cast %8 : vector<1x256x32xbf16> to vector<256x32xbf16>
    %10 = arith.extf %9 : vector<256x32xbf16> to vector<256x32xf32>
    %c0_14 = arith.constant 0 : index
    %c0_15 = arith.constant 0 : index
    %11 = vector.load %arg7[%c0_14, %c0_15] : memref<32x32xf32, #tpu.memory_space<vmem>>, vector<32x32xf32>
    %cst = arith.constant dense<0.000000e+00> : vector<16x32xf32>
    %12 = tpu.matmul %1, %11, %cst {dimension_numbers = #tpu.dot_dimension_numbers<[1], [0], [0], [1], [0, 0, 1, 1], [], []>} : vector<16x32xf32>, vector<32x32xf32>, vector<16x32xf32> -> vector<16x32xf32>
    %c0_16 = arith.constant 0 : index
    %c0_17 = arith.constant 0 : index
    %13 = vector.load %arg8[%c0_16, %c0_17] : memref<1x32xf32, #tpu.memory_space<vmem>>, vector<1x32xf32>
    %14 = vector.broadcast %13 : vector<1x32xf32> to vector<16x32xf32>
    %15 = arith.addf %12, %14 : vector<16x32xf32>
    %cst_18 = arith.constant 0.353553385 : f32
    %16 = vector.broadcast %cst_18 : f32 to vector<16x32xf32>
    %17 = arith.mulf %15, %16 : vector<16x32xf32>
    %c0_19 = arith.constant 0 : index
    %c0_20 = arith.constant 0 : index
    %18 = vector.load %arg9[%c0_19, %c0_20] : memref<32x32xf32, #tpu.memory_space<vmem>>, vector<32x32xf32>
    %cst_21 = arith.constant dense<0.000000e+00> : vector<256x32xf32>
    %19 = tpu.matmul %10, %18, %cst_21 {dimension_numbers = #tpu.dot_dimension_numbers<[1], [0], [0], [1], [0, 0, 1, 1], [], []>} : vector<256x32xf32>, vector<32x32xf32>, vector<256x32xf32> -> vector<256x32xf32>
    %c0_22 = arith.constant 0 : index
    %c0_23 = arith.constant 0 : index
    %20 = vector.load %arg10[%c0_22, %c0_23] : memref<1x32xf32, #tpu.memory_space<vmem>>, vector<1x32xf32>
    %21 = vector.broadcast %20 : vector<1x32xf32> to vector<256x32xf32>
    %22 = arith.addf %19, %21 : vector<256x32xf32>
    %23 = vector.shape_cast %17 : vector<16x32xf32> to vector<16x1x32xf32>
    %24 = vector.shape_cast %3 : vector<16x32xf32> to vector<1x16x32xf32>
    %25 = vector.broadcast %23 : vector<16x1x32xf32> to vector<16x16x32xf32>
    %26 = vector.broadcast %24 : vector<1x16x32xf32> to vector<16x16x32xf32>
    %27 = arith.mulf %25, %26 : vector<16x16x32xf32>
    %28 = vector.shape_cast %22 : vector<256x32xf32> to vector<16x16x32xf32>
    %29 = arith.mulf %27, %28 : vector<16x16x32xf32>
    %30 = vector.shape_cast %29 : vector<16x16x32xf32> to vector<256x32xf32>
    %c0_24 = arith.constant 0 : index
    %c0_25 = arith.constant 0 : index
    %31 = vector.load %arg11[%c0_24, %c0_25] : memref<32x32xf32, #tpu.memory_space<vmem>>, vector<32x32xf32>
    %cst_26 = arith.constant dense<0.000000e+00> : vector<256x32xf32>
    %32 = tpu.matmul %30, %31, %cst_26 {dimension_numbers = #tpu.dot_dimension_numbers<[1], [0], [0], [1], [0, 0, 1, 1], [], []>} : vector<256x32xf32>, vector<32x32xf32>, vector<256x32xf32> -> vector<256x32xf32>
    %c0_27 = arith.constant 0 : index
    %c0_28 = arith.constant 0 : index
    %33 = vector.load %arg12[%c0_27, %c0_28] : memref<1x32xf32, #tpu.memory_space<vmem>>, vector<1x32xf32>
    %34 = vector.broadcast %33 : vector<1x32xf32> to vector<256x32xf32>
    %35 = arith.addf %32, %34 : vector<256x32xf32>
    %36 = vector.shape_cast %35 : vector<256x32xf32> to vector<16x16x32xf32>
    %37 = vector.extract_strided_slice %36 {offsets = [0, 0, 0], sizes = [16, 1, 32], strides = [1, 1, 1]} : vector<16x16x32xf32> to vector<16x1x32xf32>
    %38 = vector.shape_cast %37 : vector<16x1x32xf32> to vector<16x32xf32>
    %39 = vector.extract_strided_slice %36 {offsets = [0, 1, 0], sizes = [16, 1, 32], strides = [1, 1, 1]} : vector<16x16x32xf32> to vector<16x1x32xf32>
    %40 = vector.shape_cast %39 : vector<16x1x32xf32> to vector<16x32xf32>
    %41 = vector.extract_strided_slice %36 {offsets = [0, 2, 0], sizes = [16, 1, 32], strides = [1, 1, 1]} : vector<16x16x32xf32> to vector<16x1x32xf32>
    %42 = vector.shape_cast %41 : vector<16x1x32xf32> to vector<16x32xf32>
    %43 = vector.extract_strided_slice %36 {offsets = [0, 3, 0], sizes = [16, 1, 32], strides = [1, 1, 1]} : vector<16x16x32xf32> to vector<16x1x32xf32>
    %44 = vector.shape_cast %43 : vector<16x1x32xf32> to vector<16x32xf32>
    %45 = vector.extract_strided_slice %36 {offsets = [0, 4, 0], sizes = [16, 1, 32], strides = [1, 1, 1]} : vector<16x16x32xf32> to vector<16x1x32xf32>
    %46 = vector.shape_cast %45 : vector<16x1x32xf32> to vector<16x32xf32>
    %47 = vector.extract_strided_slice %36 {offsets = [0, 5, 0], sizes = [16, 1, 32], strides = [1, 1, 1]} : vector<16x16x32xf32> to vector<16x1x32xf32>
    %48 = vector.shape_cast %47 : vector<16x1x32xf32> to vector<16x32xf32>
    %49 = vector.extract_strided_slice %36 {offsets = [0, 6, 0], sizes = [16, 1, 32], strides = [1, 1, 1]} : vector<16x16x32xf32> to vector<16x1x32xf32>
    %50 = vector.shape_cast %49 : vector<16x1x32xf32> to vector<16x32xf32>
    %51 = vector.extract_strided_slice %36 {offsets = [0, 7, 0], sizes = [16, 1, 32], strides = [1, 1, 1]} : vector<16x16x32xf32> to vector<16x1x32xf32>
    %52 = vector.shape_cast %51 : vector<16x1x32xf32> to vector<16x32xf32>
    %53 = vector.extract_strided_slice %36 {offsets = [0, 8, 0], sizes = [16, 1, 32], strides = [1, 1, 1]} : vector<16x16x32xf32> to vector<16x1x32xf32>
    %54 = vector.shape_cast %53 : vector<16x1x32xf32> to vector<16x32xf32>
    %55 = vector.extract_strided_slice %36 {offsets = [0, 9, 0], sizes = [16, 1, 32], strides = [1, 1, 1]} : vector<16x16x32xf32> to vector<16x1x32xf32>
    %56 = vector.shape_cast %55 : vector<16x1x32xf32> to vector<16x32xf32>
    %57 = vector.extract_strided_slice %36 {offsets = [0, 10, 0], sizes = [16, 1, 32], strides = [1, 1, 1]} : vector<16x16x32xf32> to vector<16x1x32xf32>
    %58 = vector.shape_cast %57 : vector<16x1x32xf32> to vector<16x32xf32>
    %59 = vector.extract_strided_slice %36 {offsets = [0, 11, 0], sizes = [16, 1, 32], strides = [1, 1, 1]} : vector<16x16x32xf32> to vector<16x1x32xf32>
    %60 = vector.shape_cast %59 : vector<16x1x32xf32> to vector<16x32xf32>
    %61 = vector.extract_strided_slice %36 {offsets = [0, 12, 0], sizes = [16, 1, 32], strides = [1, 1, 1]} : vector<16x16x32xf32> to vector<16x1x32xf32>
    %62 = vector.shape_cast %61 : vector<16x1x32xf32> to vector<16x32xf32>
    %63 = vector.extract_strided_slice %36 {offsets = [0, 13, 0], sizes = [16, 1, 32], strides = [1, 1, 1]} : vector<16x16x32xf32> to vector<16x1x32xf32>
    %64 = vector.shape_cast %63 : vector<16x1x32xf32> to vector<16x32xf32>
    %65 = vector.extract_strided_slice %36 {offsets = [0, 14, 0], sizes = [16, 1, 32], strides = [1, 1, 1]} : vector<16x16x32xf32> to vector<16x1x32xf32>
    %66 = vector.shape_cast %65 : vector<16x1x32xf32> to vector<16x32xf32>
    %67 = vector.extract_strided_slice %36 {offsets = [0, 15, 0], sizes = [16, 1, 32], strides = [1, 1, 1]} : vector<16x16x32xf32> to vector<16x1x32xf32>
    %68 = vector.shape_cast %67 : vector<16x1x32xf32> to vector<16x32xf32>
    %69 = tpu.concatenate %38, %40, %42, %44, %46, %48, %50, %52, %54, %56, %58, %60, %62, %64, %66, %68 in 1 : vector<16x32xf32>, vector<16x32xf32>, vector<16x32xf32>, vector<16x32xf32>, vector<16x32xf32>, vector<16x32xf32>, vector<16x32xf32>, vector<16x32xf32>, vector<16x32xf32>, vector<16x32xf32>, vector<16x32xf32>, vector<16x32xf32>, vector<16x32xf32>, vector<16x32xf32>, vector<16x32xf32>, vector<16x32xf32> -> vector<16x512xf32>
    %c0_29 = arith.constant 0 : index
    %c0_30 = arith.constant 0 : index
    %c0_31 = arith.constant 0 : index
    %70 = vector.load %arg16[%c0_29, %c0_30, %c0_31] : memref<1x16x512xf32, #tpu.memory_space<vmem>>, vector<1x16x512xf32>
    %71 = vector.shape_cast %70 : vector<1x16x512xf32> to vector<16x512xf32>
    %72 = vector.shape_cast %69 : vector<16x512xf32> to vector<1x16x512xf32>
    tpu.vector_store %arg16[%c0_29, %c0_30, %c0_31], %72 {strides = array<i32>} : memref<1x16x512xf32, #tpu.memory_space<vmem>>, vector<1x16x512xf32>,
    %73 = vector.extract_strided_slice %29 {offsets = [0, 0, 0], sizes = [16, 16, 8], strides = [1, 1, 1]} : vector<16x16x32xf32> to vector<16x16x8xf32>
    %cst_32 = arith.constant dense<0.000000e+00> : vector<16x16xf32>
    %74 = vector.multi_reduction <add>, %73, %cst_32 [2] : vector<16x16x8xf32> to vector<16x16xf32>
    %75 = vector.extract_strided_slice %29 {offsets = [0, 0, 8], sizes = [16, 16, 8], strides = [1, 1, 1]} : vector<16x16x32xf32> to vector<16x16x8xf32>
    %cst_33 = arith.constant dense<0.000000e+00> : vector<16x16xf32>
    %76 = vector.multi_reduction <add>, %75, %cst_33 [2] : vector<16x16x8xf32> to vector<16x16xf32>
    %77 = vector.extract_strided_slice %29 {offsets = [0, 0, 16], sizes = [16, 16, 8], strides = [1, 1, 1]} : vector<16x16x32xf32> to vector<16x16x8xf32>
    %cst_34 = arith.constant dense<0.000000e+00> : vector<16x16xf32>
    %78 = vector.multi_reduction <add>, %77, %cst_34 [2] : vector<16x16x8xf32> to vector<16x16xf32>
    %79 = vector.extract_strided_slice %29 {offsets = [0, 0, 24], sizes = [16, 16, 8], strides = [1, 1, 1]} : vector<16x16x32xf32> to vector<16x16x8xf32>
    %cst_35 = arith.constant dense<0.000000e+00> : vector<16x16xf32>
    %80 = vector.multi_reduction <add>, %79, %cst_35 [2] : vector<16x16x8xf32> to vector<16x16xf32>
    %81 = vector.shape_cast %74 : vector<16x16xf32> to vector<1x16x16xf32>
    %82 = vector.shape_cast %76 : vector<16x16xf32> to vector<1x16x16xf32>
    %83 = vector.shape_cast %78 : vector<16x16xf32> to vector<1x16x16xf32>
    %84 = vector.shape_cast %80 : vector<16x16xf32> to vector<1x16x16xf32>
    %85 = tpu.concatenate %81, %82, %83, %84 in 0 : vector<1x16x16xf32>, vector<1x16x16xf32>, vector<1x16x16xf32>, vector<1x16x16xf32> -> vector<4x16x16xf32>
    %86 = vector.shape_cast %5 : vector<16x16xf32> to vector<1x16x16xf32>
    %87 = vector.broadcast %86 : vector<1x16x16xf32> to vector<4x16x16xf32>
    %88 = arith.addf %87, %85 : vector<4x16x16xf32>
    %cst_36 = arith.constant dense<0xFF800000> : vector<4x16xf32>
    %89 = vector.multi_reduction <maximumf>, %88, %cst_36 [2] : vector<4x16x16xf32> to vector<4x16xf32>
    %90 = vector.shape_cast %89 : vector<4x16xf32> to vector<4x16x1xf32>
    %91 = vector.broadcast %90 : vector<4x16x1xf32> to vector<4x16x16xf32>
    %92 = arith.subf %88, %91 : vector<4x16x16xf32>
    %93 = math.exp %92 : vector<4x16x16xf32>
    %cst_37 = arith.constant dense<0.000000e+00> : vector<4x16xf32>
    %94 = vector.multi_reduction <add>, %93, %cst_37 [2] : vector<4x16x16xf32> to vector<4x16xf32>
    %95 = vector.shape_cast %94 : vector<4x16xf32> to vector<4x16x1xf32>
    %96 = vector.broadcast %95 : vector<4x16x1xf32> to vector<4x16x16xf32>
    %97 = arith.divf %93, %96 : vector<4x16x16xf32>
    %98 = vector.shape_cast %7 : vector<16x16xf32> to vector<1x16x16xf32>
    %99 = vector.broadcast %98 : vector<1x16x16xf32> to vector<4x16x16xf32>
    %100 = arith.mulf %97, %99 : vector<4x16x16xf32>
    %101 = vector.extract_strided_slice %100 {offsets = [0, 0, 0], sizes = [4, 1, 16], strides = [1, 1, 1]} : vector<4x16x16xf32> to vector<4x1x16xf32>
    %102 = vector.shape_cast %101 : vector<4x1x16xf32> to vector<4x16xf32>
    %103 = vector.extract_strided_slice %100 {offsets = [0, 1, 0], sizes = [4, 1, 16], strides = [1, 1, 1]} : vector<4x16x16xf32> to vector<4x1x16xf32>
    %104 = vector.shape_cast %103 : vector<4x1x16xf32> to vector<4x16xf32>
    %105 = vector.extract_strided_slice %100 {offsets = [0, 2, 0], sizes = [4, 1, 16], strides = [1, 1, 1]} : vector<4x16x16xf32> to vector<4x1x16xf32>
    %106 = vector.shape_cast %105 : vector<4x1x16xf32> to vector<4x16xf32>
    %107 = vector.extract_strided_slice %100 {offsets = [0, 3, 0], sizes = [4, 1, 16], strides = [1, 1, 1]} : vector<4x16x16xf32> to vector<4x1x16xf32>
    %108 = vector.shape_cast %107 : vector<4x1x16xf32> to vector<4x16xf32>
    %109 = vector.extract_strided_slice %100 {offsets = [0, 4, 0], sizes = [4, 1, 16], strides = [1, 1, 1]} : vector<4x16x16xf32> to vector<4x1x16xf32>
    %110 = vector.shape_cast %109 : vector<4x1x16xf32> to vector<4x16xf32>
    %111 = vector.extract_strided_slice %100 {offsets = [0, 5, 0], sizes = [4, 1, 16], strides = [1, 1, 1]} : vector<4x16x16xf32> to vector<4x1x16xf32>
    %112 = vector.shape_cast %111 : vector<4x1x16xf32> to vector<4x16xf32>
    %113 = vector.extract_strided_slice %100 {offsets = [0, 6, 0], sizes = [4, 1, 16], strides = [1, 1, 1]} : vector<4x16x16xf32> to vector<4x1x16xf32>
    %114 = vector.shape_cast %113 : vector<4x1x16xf32> to vector<4x16xf32>
    %115 = vector.extract_strided_slice %100 {offsets = [0, 7, 0], sizes = [4, 1, 16], strides = [1, 1, 1]} : vector<4x16x16xf32> to vector<4x1x16xf32>
    %116 = vector.shape_cast %115 : vector<4x1x16xf32> to vector<4x16xf32>
    %117 = vector.extract_strided_slice %100 {offsets = [0, 8, 0], sizes = [4, 1, 16], strides = [1, 1, 1]} : vector<4x16x16xf32> to vector<4x1x16xf32>
    %118 = vector.shape_cast %117 : vector<4x1x16xf32> to vector<4x16xf32>
    %119 = vector.extract_strided_slice %100 {offsets = [0, 9, 0], sizes = [4, 1, 16], strides = [1, 1, 1]} : vector<4x16x16xf32> to vector<4x1x16xf32>
    %120 = vector.shape_cast %119 : vector<4x1x16xf32> to vector<4x16xf32>
    %121 = vector.extract_strided_slice %100 {offsets = [0, 10, 0], sizes = [4, 1, 16], strides = [1, 1, 1]} : vector<4x16x16xf32> to vector<4x1x16xf32>
    %122 = vector.shape_cast %121 : vector<4x1x16xf32> to vector<4x16xf32>
    %123 = vector.extract_strided_slice %100 {offsets = [0, 11, 0], sizes = [4, 1, 16], strides = [1, 1, 1]} : vector<4x16x16xf32> to vector<4x1x16xf32>
    %124 = vector.shape_cast %123 : vector<4x1x16xf32> to vector<4x16xf32>
    %125 = vector.extract_strided_slice %100 {offsets = [0, 12, 0], sizes = [4, 1, 16], strides = [1, 1, 1]} : vector<4x16x16xf32> to vector<4x1x16xf32>
    %126 = vector.shape_cast %125 : vector<4x1x16xf32> to vector<4x16xf32>
    %127 = vector.extract_strided_slice %100 {offsets = [0, 13, 0], sizes = [4, 1, 16], strides = [1, 1, 1]} : vector<4x16x16xf32> to vector<4x1x16xf32>
    %128 = vector.shape_cast %127 : vector<4x1x16xf32> to vector<4x16xf32>
    %129 = vector.extract_strided_slice %100 {offsets = [0, 14, 0], sizes = [4, 1, 16], strides = [1, 1, 1]} : vector<4x16x16xf32> to vector<4x1x16xf32>
    %130 = vector.shape_cast %129 : vector<4x1x16xf32> to vector<4x16xf32>
    %131 = vector.extract_strided_slice %100 {offsets = [0, 15, 0], sizes = [4, 1, 16], strides = [1, 1, 1]} : vector<4x16x16xf32> to vector<4x1x16xf32>
    %132 = vector.shape_cast %131 : vector<4x1x16xf32> to vector<4x16xf32>
    %133 = tpu.concatenate %102, %104, %106, %108, %110, %112, %114, %116, %118, %120, %122, %124, %126, %128, %130, %132 in 1 : vector<4x16xf32>, vector<4x16xf32>, vector<4x16xf32>, vector<4x16xf32>, vector<4x16xf32>, vector<4x16xf32>, vector<4x16xf32>, vector<4x16xf32>, vector<4x16xf32>, vector<4x16xf32>, vector<4x16xf32>, vector<4x16xf32>, vector<4x16xf32>, vector<4x16xf32>, vector<4x16xf32>, vector<4x16xf32> -> vector<4x256xf32>
    %c0_38 = arith.constant 0 : index
    %c0_39 = arith.constant 0 : index
    %c0_40 = arith.constant 0 : index
    %134 = vector.load %arg17[%c0_38, %c0_39, %c0_40] : memref<1x4x256xf32, #tpu.memory_space<vmem>>, vector<1x4x256xf32>
    %135 = vector.shape_cast %134 : vector<1x4x256xf32> to vector<4x256xf32>
    %136 = vector.shape_cast %133 : vector<4x256xf32> to vector<1x4x256xf32>
    tpu.vector_store %arg17[%c0_38, %c0_39, %c0_40], %136 {strides = array<i32>} : memref<1x4x256xf32, #tpu.memory_space<vmem>>, vector<1x4x256xf32>,
    %137 = vector.extract_strided_slice %3 {offsets = [0, 0], sizes = [16, 8], strides = [1, 1]} : vector<16x32xf32> to vector<16x8xf32>
    %138 = vector.extract_strided_slice %3 {offsets = [0, 8], sizes = [16, 8], strides = [1, 1]} : vector<16x32xf32> to vector<16x8xf32>
    %139 = vector.extract_strided_slice %3 {offsets = [0, 16], sizes = [16, 8], strides = [1, 1]} : vector<16x32xf32> to vector<16x8xf32>
    %140 = vector.extract_strided_slice %3 {offsets = [0, 24], sizes = [16, 8], strides = [1, 1]} : vector<16x32xf32> to vector<16x8xf32>
    %141 = vector.shape_cast %137 : vector<16x8xf32> to vector<1x16x8xf32>
    %142 = vector.shape_cast %138 : vector<16x8xf32> to vector<1x16x8xf32>
    %143 = vector.shape_cast %139 : vector<16x8xf32> to vector<1x16x8xf32>
    %144 = vector.shape_cast %140 : vector<16x8xf32> to vector<1x16x8xf32>
    %145 = tpu.concatenate %141, %142, %143, %144 in 0 : vector<1x16x8xf32>, vector<1x16x8xf32>, vector<1x16x8xf32>, vector<1x16x8xf32> -> vector<4x16x8xf32>
    "tpu.trace_start"() <{level = 10 : i32, message = "hqk,hkd->hqd"}> : () -> ()
    %cst_41 = arith.constant dense<0.000000e+00> : vector<4x16x8xf32>
    %146 = tpu.matmul %100, %145, %cst_41 {dimension_numbers = #tpu.dot_dimension_numbers<[2], [1], [1], [2], [0, 0, 0, 1, 1, 2], [0], [0]>} : vector<4x16x16xf32>, vector<4x16x8xf32>, vector<4x16x8xf32> -> vector<4x16x8xf32>
    "tpu.trace_stop"() : () -> ()
    %147 = vector.extract_strided_slice %146 {offsets = [0, 0, 0], sizes = [1, 16, 8], strides = [1, 1, 1]} : vector<4x16x8xf32> to vector<1x16x8xf32>
    %148 = vector.shape_cast %147 : vector<1x16x8xf32> to vector<16x8xf32>
    %149 = vector.extract_strided_slice %146 {offsets = [1, 0, 0], sizes = [1, 16, 8], strides = [1, 1, 1]} : vector<4x16x8xf32> to vector<1x16x8xf32>
    %150 = vector.shape_cast %149 : vector<1x16x8xf32> to vector<16x8xf32>
    %151 = vector.extract_strided_slice %146 {offsets = [2, 0, 0], sizes = [1, 16, 8], strides = [1, 1, 1]} : vector<4x16x8xf32> to vector<1x16x8xf32>
    %152 = vector.shape_cast %151 : vector<1x16x8xf32> to vector<16x8xf32>
    %153 = vector.extract_strided_slice %146 {offsets = [3, 0, 0], sizes = [1, 16, 8], strides = [1, 1, 1]} : vector<4x16x8xf32> to vector<1x16x8xf32>
    %154 = vector.shape_cast %153 : vector<1x16x8xf32> to vector<16x8xf32>
    %155 = tpu.concatenate %148, %150, %152, %154 in 1 : vector<16x8xf32>, vector<16x8xf32>, vector<16x8xf32>, vector<16x8xf32> -> vector<16x32xf32>
    %c0_42 = arith.constant 0 : index
    %c0_43 = arith.constant 0 : index
    %156 = vector.load %arg13[%c0_42, %c0_43] : memref<32x32xf32, #tpu.memory_space<vmem>>, vector<32x32xf32>
    %cst_44 = arith.constant dense<0.000000e+00> : vector<16x32xf32>
    %157 = tpu.matmul %155, %156, %cst_44 {dimension_numbers = #tpu.dot_dimension_numbers<[1], [0], [0], [1], [0, 0, 1, 1], [], []>} : vector<16x32xf32>, vector<32x32xf32>, vector<16x32xf32> -> vector<16x32xf32>
    %c0_45 = arith.constant 0 : index
    %c0_46 = arith.constant 0 : index
    %158 = vector.load %arg14[%c0_45, %c0_46] : memref<1x32xf32, #tpu.memory_space<vmem>>, vector<1x32xf32>
    %159 = vector.broadcast %158 : vector<1x32xf32> to vector<16x32xf32>
    %160 = arith.addf %157, %159 : vector<16x32xf32>
    %c0_47 = arith.constant 0 : index
    %c0_48 = arith.constant 0 : index
    %c0_49 = arith.constant 0 : index
    %161 = vector.load %arg15[%c0_47, %c0_48, %c0_49] : memref<1x16x32xf32, #tpu.memory_space<vmem>>, vector<1x16x32xf32>
    %162 = vector.shape_cast %161 : vector<1x16x32xf32> to vector<16x32xf32>
    %163 = vector.shape_cast %160 : vector<16x32xf32> to vector<1x16x32xf32>
    tpu.vector_store %arg15[%c0_47, %c0_48, %c0_49], %163 {strides = array<i32>} : memref<1x16x32xf32, #tpu.memory_space<vmem>>, vector<1x16x32xf32>,
    return
  }
  func.func @transform_0(%arg0: i32, %arg1: i32) -> (i32, i32, i32) {
    %c0_i32 = arith.constant 0 : i32
    %c0_i32_0 = arith.constant 0 : i32
    return %arg0, %arg1, %c0_i32 : i32, i32, i32
  }
  func.func @transform_1(%arg0: i32, %arg1: i32) -> (i32, i32, i32) {
    %c0_i32 = arith.constant 0 : i32
    %c0_i32_0 = arith.constant 0 : i32
    %c0_i32_1 = arith.constant 0 : i32
    return %arg0, %c0_i32, %c0_i32_0 : i32, i32, i32
  }
  func.func @transform_2(%arg0: i32, %arg1: i32) -> (i32, i32, i32) {
    %c0_i32 = arith.constant 0 : i32
    %c0_i32_0 = arith.constant 0 : i32
    return %arg0, %arg1, %c0_i32 : i32, i32, i32
  }
  func.func @transform_3(%arg0: i32, %arg1: i32) -> (i32, i32, i32) {
    %c0_i32 = arith.constant 0 : i32
    %c0_i32_0 = arith.constant 0 : i32
    return %arg0, %arg1, %c0_i32 : i32, i32, i32
  }
  func.func @transform_4(%arg0: i32, %arg1: i32) -> (i32, i32, i32) {
    %c0_i32 = arith.constant 0 : i32
    %c0_i32_0 = arith.constant 0 : i32
    return %arg0, %arg1, %c0_i32 : i32, i32, i32
  }
  func.func @transform_5(%arg0: i32, %arg1: i32) -> (i32, i32) {
    %c0_i32 = arith.constant 0 : i32
    %c0_i32_0 = arith.constant 0 : i32
    %c0_i32_1 = arith.constant 0 : i32
    return %c0_i32, %c0_i32_0 : i32, i32
  }
  func.func @transform_6(%arg0: i32, %arg1: i32) -> (i32, i32) {
    %c0_i32 = arith.constant 0 : i32
    %c0_i32_0 = arith.constant 0 : i32
    %c0_i32_1 = arith.constant 0 : i32
    return %c0_i32, %c0_i32_0 : i32, i32
  }
  func.func @transform_7(%arg0: i32, %arg1: i32) -> (i32, i32) {
    %c0_i32 = arith.constant 0 : i32
    %c0_i32_0 = arith.constant 0 : i32
    %c0_i32_1 = arith.constant 0 : i32
    return %c0_i32, %c0_i32_0 : i32, i32
  }
  func.func @transform_8(%arg0: i32, %arg1: i32) -> (i32, i32) {
    %c0_i32 = arith.constant 0 : i32
    %c0_i32_0 = arith.constant 0 : i32
    %c0_i32_1 = arith.constant 0 : i32
    return %c0_i32, %c0_i32_0 : i32, i32
  }
  func.func @transform_9(%arg0: i32, %arg1: i32) -> (i32, i32) {
    %c0_i32 = arith.constant 0 : i32
    %c0_i32_0 = arith.constant 0 : i32
    %c0_i32_1 = arith.constant 0 : i32
    return %c0_i32, %c0_i32_0 : i32, i32
  }
  func.func @transform_10(%arg0: i32, %arg1: i32) -> (i32, i32) {
    %c0_i32 = arith.constant 0 : i32
    %c0_i32_0 = arith.constant 0 : i32
    %c0_i32_1 = arith.constant 0 : i32
    return %c0_i32, %c0_i32_0 : i32, i32
  }
  func.func @transform_11(%arg0: i32, %arg1: i32) -> (i32, i32) {
    %c0_i32 = arith.constant 0 : i32
    %c0_i32_0 = arith.constant 0 : i32
    %c0_i32_1 = arith.constant 0 : i32
    return %c0_i32, %c0_i32_0 : i32, i32
  }
  func.func @transform_12(%arg0: i32, %arg1: i32) -> (i32, i32) {
    %c0_i32 = arith.constant 0 : i32
    %c0_i32_0 = arith.constant 0 : i32
    %c0_i32_1 = arith.constant 0 : i32
    return %c0_i32, %c0_i32_0 : i32, i32
  }
  func.func @transform_13(%arg0: i32, %arg1: i32) -> (i32, i32, i32) {
    %c0_i32 = arith.constant 0 : i32
    %c0_i32_0 = arith.constant 0 : i32
    return %arg0, %arg1, %c0_i32 : i32, i32, i32
  }
  func.func @transform_14(%arg0: i32, %arg1: i32) -> (i32, i32, i32) {
    %c0_i32 = arith.constant 0 : i32
    %c0_i32_0 = arith.constant 0 : i32
    return %arg0, %arg1, %c0_i32 : i32, i32, i32
  }
  func.func @transform_15(%arg0: i32, %arg1: i32) -> (i32, i32, i32) {
    %c0_i32 = arith.constant 0 : i32
    %c0_i32_0 = arith.constant 0 : i32
    return %arg0, %c0_i32, %arg1 : i32, i32, i32
  }
}

</mosaic_0001>

<bundles_post_ra>
// kernel: tpu_custom_call.1
= control target key start
LH: loop header
LB: loop body
LE: loop exit
PB: predicated region body
PF: predicated region fallthrough
CT: control target
= control target key end

     0   :  { %s9162_s0 = inlined_call_operand.vmem [shape: f32[2,16,32], index: 0, kind: input, shape index: {}]   ;;  %s9163_s1 = inlined_call_operand.vmem [shape: f32[2,16,32], index: 1, kind: input, shape index: {}]   ;;  %s9164_s2 = inlined_call_operand.vmem [shape: bf16[2,256,32], index: 2, kind: input, shape index: {}]   ;;  %s9165_s3 = inlined_call_operand.vmem [shape: f32[2,16,16], index: 3, kind: input, shape index: {}]   ;;  %s9166_s4 = inlined_call_operand.vmem [shape: f32[2,16,16], index: 4, kind: input, shape index: {}]   ;;  %s9167_s5 = inlined_call_operand.vmem [shape: f32[32,32], index: 5, kind: input, shape index: {}]   ;;  %s9168_s6 = inlined_call_operand.vmem [shape: f32[1,32], index: 6, kind: input, shape index: {}]   ;;  %s9169_s7 = inlined_call_operand.vmem [shape: f32[32,32], index: 7, kind: input, shape index: {}]   ;;  %s9170_s8 = inlined_call_operand.vmem [shape: f32[1,32], index: 8, kind: input, shape index: {}]   ;;  %s9171_s9 = inlined_call_operand.vmem [shape: f32[32,32], index: 9, kind: input, shape index: {}]   ;;  %s9172_s10 = inlined_call_operand.vmem [shape: f32[1,32], index: 10, kind: input, shape index: {}]   ;;  %s9173_s11 = inlined_call_operand.vmem [shape: f32[32,32], index: 11, kind: input, shape index: {}]   ;;  %s9174_s12 = inlined_call_operand.vmem [shape: f32[1,32], index: 12, kind: input, shape index: {}]   ;;  %s9175_s13 = inlined_call_operand.hbm [shape: f32[2,16,32], index: 13, kind: output, shape index: {0}]   ;;  %s9176_s14 = inlined_call_operand.hbm [shape: f32[2,16,512], index: 14, kind: output, shape index: {1}]   ;;  %s9177_s15 = inlined_call_operand.hbm [shape: f32[2,4,256], index: 15, kind: output, shape index: {2}]  }
   0x1   :  { %9197 = sst [smem:[#allocation111_spill]] %s9162_s0 }
   0x2   :  { %9198 = sst [smem:[#allocation112_spill]] %s9163_s1 }
   0x3   :  { %9199 = sst [smem:[#allocation113_spill]] %s9164_s2 }
   0x4   :  { %9200 = sst [smem:[#allocation114_spill]] %s9165_s3 }
   0x5   :  { %9201 = sst [smem:[#allocation115_spill]] %s9166_s4 }
   0x6   :  { %9202 = sst [smem:[#allocation116_spill]] %s9167_s5 }
   0x7   :  { %9203 = sst [smem:[#allocation117_spill]] %s9168_s6 }
   0x8   :  { %21 = vsyncpa [#allocation3], 0 }
   0x9   :  { %23 = vsyncpa [#allocation3 + $0x1], 0 }
   0xa   :  { %24 = vsyncpa [#allocation5], 0 }
   0xb   :  { %26 = vsyncpa [#allocation5 + $0x1], 0  ;;  %s6078_s18 = smov 0   ;;  %s6080_s19 = smov 0  }
   0xc   :  { %s6082_s20 = smov 0   ;;  %s6084_s21 = smov 0  }
   0xd   :  { %s6086_s22 = smov 0   ;;  %s6088_s23 = smov 0  }
   0xe LB: > { %9204 = sst [smem:[#allocation9_spill]] %s5958_s18  ;;  %s9178_s24 = sadd.s32 4294967295, %s5978_s23   ;;  %s5978_s23 = sphi %s6088_s23, %s32_s23   ;;  %s5974_s22 = sphi %s6086_s22, %s9479_s22   ;;  %s5970_s21 = sphi %s6084_s21, %s9478_s21   ;;  %s5966_s20 = sphi %s6082_s20, %s9477_s20   ;;  %s5962_s19 = sphi %s6080_s19, %s9481_s19   ;;  %s5958_s18 = sphi %s6078_s18, %s9480_s18  }
   0xf   : > { %9205 = sst [smem:[#allocation10_spill]] %s5966_s20  ;;  %s9180_s25 = sadd.s32 4294967294, %s5978_s23  }
  0x10   : > { %9206 = sst [smem:[#allocation11_spill]] %s5974_s22  ;;  %s44_s26 = sadd.s32 1, %s5974_s22 }
  0x11   : > { %s359_s27 = sadd.s32 1, %s5966_s20  ;;  %p46_p0 = scmp.ge.s32.totalorder %s44_s26, 2 }
  0x12   : > { %p369_p1 = scmp.ne.s32.totalorder %s5966_s20, %s5962_s19  ;;  %p370_p2 = scmp.eq.s32.totalorder %s9178_s24, 1 }
  0x13   : > { %p375_p3 = scmp.ne.s32.totalorder %s5962_s19, %s5958_s18  ;;  %s9483_s26 = smov (%p46_p0, %s44_s26), 0 }
  0x14   : > { %9207 = sst [smem:[#allocation12_spill]] %s9483_s26  ;;  %p6120_p4 = por %p370_p2, %p369_p1 }
  0x15   : > { %p376_p5 = scmp.eq.s32.totalorder %s9180_s25, 1  ;;  %s354_s29 = ssub.s32 %s5974_s22, %s9483_s26 }
  0x16   : > { %p5202_p6 = scmp.ge.s32.totalorder %s5978_s23, 1  ;;  %p357_p7 = scmp.eq.s32.totalorder %s354_s29, 0 }
  0x17   : > { %p6129_p8 = por %p376_p5, %p375_p3  ;;  %p534_p9 = scmp.lt.s32.totalorder %s5978_s23, 3 }
  0x18   : > { %s6135_s16 = scalar_select %p357_p7, %s5966_s20, %s359_s27  }
  0x19   : > { %p535_p10 = pnand %p5202_p6, %p534_p9 }
  0x1a   : > { %9210 = sst [smem:[#allocation13_spill]] %s6135_s16 }
  0x1b   : > { %538 = sbr.rel (%p535_p10) target bundleno = 2906 (0xb5a), region = 72 }
  0x22   : > { %s9211_s5 = sld [smem:[#allocation116_spill]]  ;;  %v843_v2 = vld [vmem:[%s9169_s7] sm:$0xff]  ;;  %p629_p11 = scmp.lt.s32.totalorder %s5970_s21, 1  ;;  %v844_v4 = vld [vmem:[%s9169_s7 + $0x8] sm:$0xff]  ;;  %v845_v9 = vld [vmem:[%s9169_s7 + $0x10] sm:$0xff]  ;;  %vm759_vm0 = vcmask 261120  }
  0x23   : > { %v5664_v7 = vpack.c.bf16 %v844_v4, %v843_v2  ;;  %v846_v10 = vld [vmem:[%s9169_s7 + $0x18] sm:$0xff]  ;;  %s9212_s0 = sld [smem:[#allocation111_spill]]  ;;  %s9213_s2 = sld [smem:[#allocation113_spill]]  ;;  %v1419_v62 = vld [vmem:[%s9171_s9] sm:$0xff]  ;;  %v1420_v63 = vld [vmem:[%s9171_s9 + $0x8] sm:$0xff]  ;;  %vm2352_vm1 = vcmask 64512  }
  0x24   : > { %s630_s22 = scalar_select %p629_p11, %s5970_s21, 1  ;;  %v5668_v11 = vpack.c.bf16 %v846_v10, %v845_v9  ;;  %v1421_v2 = vld [vmem:[%s9171_s9 + $0x10] sm:$0xff]  ;;  %v5980_v10 = vmov 1966171168   ;;  %vm1768_vm2 = vcmask 1041409   ;;  %vm1771_vm3 = vcmask 1042434  }
  0x25   : > { %5665 = vmatprep.subr.bf16.mxu1 %v5664_v7  ;;  %s9216_s6 = sld [smem:[#allocation117_spill]]  ;;  %s9217_s1 = sld [smem:[#allocation112_spill]]  ;;  %vm1774_vm4 = vcmask 1043459   ;;  %vm1777_vm5 = vcmask 1044484   ;;  %vm1780_vm6 = vcmask 1045509   ;;  %vm1783_vm7 = vcmask 1046534  }
  0x26   : > { %s6163_s20 = sshll.u32 %s630_s22, 4  ;;  %s5309_s16 = sshll.u32 %s630_s22, 7  ;;  %5667 = vmatpush3.bf16.msra.mxu1 %v5664_v7  ;;  %vm1786_vm8 = vcmask 1047559   ;;  %vm2320_vm9 = vcmask 523264   ;;  %vm2323_vm10 = vcmask 785408   ;;  %vm3548_vm11 = vcmask 130112  }
  0x27   : > { %5669 = vmatprep.subr.bf16.mxu1 %v5668_v11  ;;  %s5981_s18 = smov 120   ;;  %s9194_s25 = smov 112   ;;  %vm4189_vm12 = vcmask 130048   ;;  %vm4828_vm13 = vcmask 195584   ;;  %vm4444_vm14 = vcmask 392192   ;;  %vm4447_vm15 = vcmask 654336  }
  0x28   : > { %v748_v0 = vld [vmem:[%s9211_s5] sm:$0xff]  ;;  %v749_v1 = vld [vmem:[%s9211_s5 + $0x8] sm:$0xff]  ;;  %v750_v5 = vld [vmem:[%s9211_s5 + $0x10] sm:$0xff]  ;;  %s9189_s24 = smov 96   ;;  %s9191_s29 = smov 32  }
  0x29   : > { %v5656_v3 = vpack.c.bf16 %v749_v1, %v748_v0  ;;  %v751_v6 = vld [vmem:[%s9211_s5 + $0x18] sm:$0xff]  ;;  %s636_s17 = scalar_lea.vmem %s9212_s0, %s6163_s20  ;;  %s6172_s26 = scalar_lea.vmem %s9213_s2, %s5309_s16  ;;  %v5672_v0 = vpack.c.bf16 %v1420_v63, %v1419_v62  ;;  %v1181_v1 = vlaneseq }
  0x2a   : > { %v5660_v8 = vpack.c.bf16 %v751_v6, %v750_v5  ;;  %v676_v12 = vld [vmem:[%s636_s17] sm:$0xff]  ;;  %v677_v13 = vld [vmem:[%s636_s17 + $0x8] sm:$0xff]  ;;  %5671 = vmatpush3.bf16.msra.mxu1 %v5668_v11  ;;  %v5380_v19 = vld [vmem:[%s6172_s26 + $0x10] sm:$0xff]   ;;  %v1179_v11 = vunpack.c.l.s4 %v5980_v10  ;;  %s9187_s22 = smov 64   ;;  %s7733_s16 = sand.u32 1, %s5962_s19  }
  0x2b   : > { %5657 = vmatprep.subr.bf16.mxu0 %v5656_v3  ;;  %5502 = vmatprep.mubr.msk.f32.mxu0 %vm759_vm0, %v676_v12  ;;  %v5316_v14 = vld [vmem:[%s6172_s26] sm:$0xff]   ;;  %v5379_v15 = vld [vmem:[%s6172_s26 + $0x8] sm:$0xff]   ;;  %v5325_v21 = vunpack.c.l.bf16 %v5380_v19  ;;  %v5381_v22 = vld [vmem:[%s6172_s26 + $0x18] sm:$0xff]   ;;  %v5326_v23 = vunpack.c.h.bf16 %v5380_v19  ;;  %v1182_v5 = vshrl.u32 %v1181_v1, 7  ;;  %v3538_v6 = vand.u32 127, %v1181_v1  ;;  %s6255_s17 = scalar_lea.vmem %s9217_s1, %s6163_s20  ;;  %s5204_s27 = sshll.u32 %s7733_s16, 6 }
  0x2c   : > { %5659 = vmatpush3.bf16.msra.mxu0 %v5656_v3  ;;  %v5317_v16 = vunpack.c.l.bf16 %v5316_v14  ;;  %v5318_v17 = vunpack.c.h.bf16 %v5316_v14  ;;  %v5321_v18 = vunpack.c.l.bf16 %v5379_v15  ;;  %v5322_v20 = vunpack.c.h.bf16 %v5379_v15  ;;  %v5382_v25 = vld [vmem:[%s6172_s26 + $0x20] sm:$0xff]   ;;  %v5383_v28 = vld [vmem:[%s6172_s26 + $0x28] sm:$0xff]   ;;  %v5384_v31 = vld [vmem:[%s6172_s26 + $0x30] sm:$0xff]   ;;  %5704 = vmatprep.subr.bf16.mxu1 %v5672_v0  ;;  %s9443_s3 = sld [smem:[#allocation114_spill]]  ;;  %s9467_s4 = sld [smem:[#allocation115_spill]] }
  0x2d   : > { %5661 = vmatprep.subr.bf16.mxu0 %v5660_v8  ;;  %v5329_v24 = vunpack.c.l.bf16 %v5381_v22  ;;  %v5330_v26 = vunpack.c.h.bf16 %v5381_v22  ;;  %v5333_v27 = vunpack.c.l.bf16 %v5382_v25  ;;  %v5334_v29 = vunpack.c.h.bf16 %v5382_v25  ;;  %v5385_v34 = vld [vmem:[%s6172_s26 + $0x38] sm:$0xff]   ;;  %v5386_v37 = vld [vmem:[%s6172_s26 + $0x40] sm:$0xff]   ;;  %v5387_v40 = vld [vmem:[%s6172_s26 + $0x48] sm:$0xff]  }
  0x2e   : > { %5513 = vmatprep.mubr.msk.f32.mxu1 %vm759_vm0, %v5317_v16  ;;  %v5337_v30 = vunpack.c.l.bf16 %v5383_v28  ;;  %v5338_v32 = vunpack.c.h.bf16 %v5383_v28  ;;  %v5341_v33 = vunpack.c.l.bf16 %v5384_v31  ;;  %v5342_v35 = vunpack.c.h.bf16 %v5384_v31  ;;  %v5388_v43 = vld [vmem:[%s6172_s26 + $0x50] sm:$0xff]   ;;  %v5389_v46 = vld [vmem:[%s6172_s26 + $0x58] sm:$0xff]   ;;  %v5390_v49 = vld [vmem:[%s6172_s26 + $0x60] sm:$0xff]  }
  0x2f   : > { %5514 = vmatmul.mubr.msk.f32.vlgmr.msra.gmra.mrb[0].mxu1 %vm759_vm0, %v5318_v17  ;;  %v5345_v36 = vunpack.c.l.bf16 %v5385_v34  ;;  %v5346_v38 = vunpack.c.h.bf16 %v5385_v34  ;;  %v5349_v39 = vunpack.c.l.bf16 %v5386_v37  ;;  %v5350_v41 = vunpack.c.h.bf16 %v5386_v37  ;;  %v5391_v52 = vld [vmem:[%s6172_s26 + $0x68] sm:$0xff]   ;;  %v5392_v55 = vld [vmem:[%s6172_s26 + $0x70] sm:$0xff]   ;;  %v5393_v58 = vld [vmem:[%s6172_s26 + $0x78] sm:$0xff]   ;;  %s5983_s26 = smov 104  }
  0x30   : > { %5663 = vmatpush3.bf16.msra.mxu0 %v5660_v8  ;;  %5516 = vmatprep.mubr.msk.f32.mxu1 %vm759_vm0, %v5321_v18  ;;  %v5353_v42 = vunpack.c.l.bf16 %v5387_v40  ;;  %v5354_v44 = vunpack.c.h.bf16 %v5387_v40  ;;  %v5357_v45 = vunpack.c.l.bf16 %v5388_v43  ;;  %v5358_v47 = vunpack.c.h.bf16 %v5388_v43  ;;  %v1422_v3 = vld [vmem:[%s9171_s9 + $0x18] sm:$0xff]  ;;  %v6249_v25 = vld [vmem:[%s9170_s8] ss:$0 sm:$0xff] }
  0x31   : > { %v5361_v48 = vunpack.c.l.bf16 %v5389_v46  ;;  %v5362_v50 = vunpack.c.h.bf16 %v5389_v46  ;;  %v5365_v51 = vunpack.c.l.bf16 %v5390_v49  ;;  %v5366_v53 = vunpack.c.h.bf16 %v5390_v49  ;;  %5673 = vmatprep.subr.bf16.mxu0 %v5672_v0  ;;  %5706 = vmatpush3.bf16.msra.mxu1 %v5672_v0 }
  0x32   : > { %v5369_v54 = vunpack.c.l.bf16 %v5391_v52  ;;  %v5370_v56 = vunpack.c.h.bf16 %v5391_v52  ;;  %v5373_v57 = vunpack.c.l.bf16 %v5392_v55  ;;  %v5374_v59 = vunpack.c.h.bf16 %v5392_v55 }
  0x33   : > { %5503 = vmatmul.mubr.msk.f32.vlgmr.msra.gmra.mrb[0].mxu0 %vm759_vm0, %v677_v13  ;;  %5517 = vmatmul.mubr.msk.f32.gmra.mrb[2].mxu1 %vm759_vm0, %v5322_v20  ;;  %v5377_v60 = vunpack.c.l.bf16 %v5393_v58  ;;  %v5378_v61 = vunpack.c.h.bf16 %v5393_v58  ;;  %v5676_v4 = vpack.c.bf16 %v1422_v3, %v1421_v2  ;;  %v6236_v7 = vsub.s32 %v3538_v6, %v1182_v5  ;;  %v5216_v13 = vld [vmem:[%s9216_s6] ss:$0 sm:$0xff] }
  0x34   : > { %5519 = vmatprep.mubr.msk.f32.mxu1 %vm759_vm0, %v5325_v21  ;;  %5675 = vmatpush3.bf16.msra.mxu0 %v5672_v0  ;;  %v3543_v8 = vadd.s32 4294967288, %v3538_v6  ;;  %v1180_v12 = vunpack.c.0.s8 %v1179_v11 }
  0x35   : > { %5677 = vmatprep.subr.bf16.mxu0 %v5676_v4  ;;  %5705 = vmatprep.subr.bf16.mxu1 %v5676_v4  ;;  %9214 = vst [vmem:[#allocation14_spill] sm:$0xff] %v6236_v7 }
  0x36   : > { %5707 = vmatpush3.bf16.msra.mxu1 %v5676_v4  ;;  %v6238_v9 = vsub.s32 %v3543_v8, %v1182_v5  ;;  %v6243_v17 = vsub.s32 %v1180_v12, %v1182_v5 }
  0x37   : > { %5520 = vmatmul.mubr.msk.f32.gmra.mrb[4].mxu1 %vm759_vm0, %v5326_v23 }
  0x38   : > { %5522 = vmatprep.mubr.msk.f32.mxu1 %vm759_vm0, %v5329_v24  ;;  %5679 = vmatpush3.bf16.msra.mxu0 %v5676_v4  ;;  %9215 = vst [vmem:[#allocation15_spill] sm:$0xff] %v6238_v9 }
  0x3b   : > { %5523 = vmatmul.mubr.msk.f32.gmra.mrb[6].mxu1 %vm759_vm0, %v5330_v26 }
  0x3c   : > { %5525 = vmatprep.mubr.msk.f32.mxu1 %vm759_vm0, %v5333_v27  ;;  %v6257_v27 = vsub.s32 0, %v1182_v5 }
  0x3f   : > { %5526 = vmatmul.mubr.msk.f32.gmra.mrb[8].mxu1 %vm759_vm0, %v5334_v29 }
  0x40   : > { %5528 = vmatprep.mubr.msk.f32.mxu1 %vm759_vm0, %v5337_v30 }
  0x43   : > { %5529 = vmatmul.mubr.msk.f32.gmra.mrb[10].mxu1 %vm759_vm0, %v5338_v32 }
  0x44   : > { %5531 = vmatprep.mubr.msk.f32.mxu1 %vm759_vm0, %v5341_v33 }
  0x47   : > { %5532 = vmatmul.mubr.msk.f32.gmra.mrb[12].mxu1 %vm759_vm0, %v5342_v35  ;;  %v6266_v35 = vld [vmem:[%s6255_s17] sm:$0xff] }
  0x48   : > { %5534 = vmatprep.mubr.msk.f32.mxu1 %vm759_vm0, %v5345_v36  ;;  %v6269_v36 = vld [vmem:[%s6255_s17 + $0x8] sm:$0xff] }
  0x4b   : > { %5535 = vmatmul.mubr.msk.f32.gmra.mrb[14].mxu1 %vm759_vm0, %v5346_v38 }
  0x4c   : > { %5537 = vmatprep.mubr.msk.f32.mxu1 %vm759_vm0, %v5349_v39 }
  0x4f   : > { %5538 = vmatmul.mubr.msk.f32.gmra.mrb[16].mxu1 %vm759_vm0, %v5350_v41 }
  0x50   : > { %5540 = vmatprep.mubr.msk.f32.mxu1 %vm759_vm0, %v5353_v42 }
  0x53   : > { %5541 = vmatmul.mubr.msk.f32.gmra.mrb[18].mxu1 %vm759_vm0, %v5354_v44 }
  0x54   : > { %5543 = vmatprep.mubr.msk.f32.mxu1 %vm759_vm0, %v5357_v45 }
  0x57   : > { %5544 = vmatmul.mubr.msk.f32.gmra.mrb[20].mxu1 %vm759_vm0, %v5358_v47 }
  0x58   : > { %5546 = vmatprep.mubr.msk.f32.mxu1 %vm759_vm0, %v5361_v48 }
  0x5b   : > { %5547 = vmatmul.mubr.msk.f32.gmra.mrb[22].mxu1 %vm759_vm0, %v5362_v50 }
  0x5c   : > { %5549 = vmatprep.mubr.msk.f32.mxu1 %vm759_vm0, %v5365_v51 }
  0x5f   : > { %5550 = vmatmul.mubr.msk.f32.gmra.mrb[24].mxu1 %vm759_vm0, %v5366_v53 }
  0x60   : > { %5552 = vmatprep.mubr.msk.f32.mxu1 %vm759_vm0, %v5369_v54 }
  0x63   : > { %5553 = vmatmul.mubr.msk.f32.gmra.mrb[26].mxu1 %vm759_vm0, %v5370_v56 }
  0x64   : > { %5555 = vmatprep.mubr.msk.f32.mxu1 %vm759_vm0, %v5373_v57 }
  0x67   : > { %5556 = vmatmul.mubr.msk.f32.gmra.mrb[28].mxu1 %vm759_vm0, %v5374_v59 }
  0x68   : > { %5558 = vmatprep.mubr.msk.f32.mxu1 %vm759_vm0, %v5377_v60 }
  0x6b   : > { %5559 = vmatmul.mubr.msk.f32.gmra.mrb[30].mxu1 %vm759_vm0, %v5378_v61 }
 0x102   : > { %v5515_v16 = vpop.f32.mrb[0].mxu1 }
 0x103   : > { %v1016_v19 = vpop.f32.mrb[1].mxu1  ;;  %v1022_v32 = vadd.f32 %v5515_v16, %v6249_v25 }
 0x104   : > { %v1017_v33 = vadd.f32 %v6249_v25, %v1016_v19 }
 0x106   : > { %v5504_v14 = vpop.f32.mrb[0].mxu0  ;;  %v5518_v22 = vpop.f32.mrb[2].mxu1 }
 0x107   : > { %v832_v15 = vpop.f32.mrb[1].mxu0  ;;  %v838_v21 = vadd.f32 %v5504_v14, %v5216_v13  ;;  %v1026_v26 = vpop.f32.mrb[3].mxu1  ;;  %v1032_v43 = vadd.f32 %v5518_v22, %v6249_v25 }
 0x108   : > { %v833_v18 = vadd.f32 %v5216_v13, %v832_v15  ;;  %v1027_v44 = vadd.f32 %v6249_v25, %v1026_v26 }
 0x109   : > { %v6261_v31 = vmul.f32 0.35355338, %v838_v21 }
 0x10a   : > { %v841_v20 = vmul.f32 0.35355338, %v833_v18  ;;  %v5521_v34 = vpop.f32.mrb[4].mxu1 }
 0x10b   : > { %v1036_v41 = vpop.f32.mrb[5].mxu1  ;;  %v1042_v45 = vadd.f32 %v5521_v34, %v6249_v25  ;;  %v1233_v21 = vrot.slane %v6261_v31, %v6243_v17 }
 0x10c   : > { %v1177_v23 = vcombine.high %v841_v20, %v841_v20  ;;  %v1184_v24 = vrot.slane %v841_v20, %v6243_v17  ;;  %v1037_v48 = vadd.f32 %v6249_v25, %v1036_v41 }
 0x10e   : > { %v1191_v28 = vrot.slane %v1177_v23, %v6243_v17  ;;  %v1192_v29 = vcombine.high %v1184_v24, %v1184_v24  ;;  %v1200_v30 = vrot.slane %v1184_v24, %v6243_v17  ;;  %v5524_v52 = vpop.f32.mrb[6].mxu1 }
 0x10f   : > { %v1046_v59 = vpop.f32.mrb[7].mxu1  ;;  %v1052_v62 = vadd.f32 %v5524_v52, %v6249_v25 }
 0x110   : > { %v1193_v37 = vcombine.high %v1191_v28, %v1191_v28  ;;  %v1207_v38 = vrot.slane %v1191_v28, %v6243_v17  ;;  %v1214_v39 = vrot.slane %v1192_v29, %v6243_v17  ;;  %v1222_v40 = vcombine.high %v1200_v30, %v1200_v30 }
 0x111   : > { %v1278_v42 = vrot.slane %v1200_v30, %v6257_v27  ;;  %v1047_v5 = vadd.f32 %v6249_v25, %v1046_v59 }
 0x112   : > { %v1282_v46 = vrot.slane %v1214_v39, %v6257_v27  ;;  %v1286_v47 = vrot.slane %v1222_v40, %v6257_v27  ;;  %v1224_v49 = vcombine.high %v1214_v39, %v1214_v39  ;;  %v1294_v53 = vrot.slane %v1207_v38, %v6257_v27  ;;  %v5527_v8 = vpop.f32.mrb[8].mxu1 }
 0x113   : > { %v1356_v50 = vmul.f32 %v1278_v42, %v6269_v36  ;;  %v1355_v51 = vmul.f32 %v1278_v42, %v6266_v35  ;;  %v1221_v54 = vrot.slane %v1193_v37, %v6243_v17  ;;  %v1223_v10 = vcombine.high %v1207_v38, %v1207_v38  ;;  %v1056_v13 = vpop.f32.mrb[9].mxu1 }
 0x114   : > { %v1358_v55 = vmul.f32 %v1282_v46, %v6269_v36  ;;  %v1357_v56 = vmul.f32 %v1282_v46, %v6266_v35  ;;  %v1360_v57 = vmul.f32 %v1286_v47, %v6269_v36  ;;  %v1359_v58 = vmul.f32 %v1286_v47, %v6266_v35 }
 0x115   : > { %v6288_v60 = vmul.f32 %v1356_v50, %v1022_v32  ;;  %v6290_v61 = vmul.f32 %v1355_v51, %v1017_v33  ;;  %v1290_v63 = vrot.slane %v1224_v49, %v6257_v27  ;;  %v1062_v11 = vadd.f32 %v5527_v8, %v6249_v25 }
 0x116   : > { %v6294_v0 = vmul.f32 %v1358_v55, %v1032_v43  ;;  %v6296_v1 = vmul.f32 %v1357_v56, %v1027_v44  ;;  %v6298_v2 = vmul.f32 %v1360_v57, %v1042_v45  ;;  %v6300_v3 = vmul.f32 %v1359_v58, %v1037_v48  ;;  %v5530_v23 = vpop.f32.mrb[10].mxu1 }
 0x117   : > { %v1362_v4 = vmul.f32 %v1290_v63, %v6269_v36  ;;  %v1361_v6 = vmul.f32 %v1290_v63, %v6266_v35  ;;  %2451 = vrot.lane.b32.xlu0 %v6288_v60, %s5981_s18  ;;  %v1364_v12 = vmul.f32 %v1294_v53, %v6269_v36  ;;  %2449 = vrot.lane.b32.xlu1 %v6290_v61, %s5981_s18  ;;  %v1066_v28 = vpop.f32.mrb[11].mxu1 }
 0x118   : > { %5569 = vmatprep.mubr.msk.f32.mxu0 %vm759_vm0, %v6290_v61  ;;  %v1298_v14 = vrot.slane %v1221_v54, %v6257_v27  ;;  %v1057_v18 = vadd.f32 %v6249_v25, %v1056_v13  ;;  %v1363_v19 = vmul.f32 %v1294_v53, %v6266_v35  ;;  %v1072_v24 = vadd.f32 %v5530_v23, %v6249_v25 }
 0x119   : > { %v6314_v15 = vmul.f32 %v1362_v4, %v1052_v62  ;;  %v6316_v16 = vmul.f32 %v1361_v6, %v1047_v5  ;;  %5570 = vmatmul.mubr.msk.f32.vlgmr.msra.gmra.mrb[2].mxu0 %vm759_vm0, %v6288_v60  ;;  %v6322_v20 = vmul.f32 %v1364_v12, %v1062_v11  ;;  %v1302_v29 = vrot.slane %v1223_v10, %v6257_v27 }
 0x11a   : > { %5572 = vmatprep.mubr.msk.f32.mxu0 %vm759_vm0, %v6296_v1  ;;  %v6328_v22 = vmul.f32 %v1363_v19, %v1057_v18  ;;  %v1366_v26 = vmul.f32 %v1298_v14, %v6269_v36  ;;  %v1225_v30 = vcombine.high %v1221_v54, %v1221_v54  ;;  %v1067_v32 = vadd.f32 %v6249_v25, %v1066_v28  ;;  %v5533_v39 = vpop.f32.mrb[12].mxu1 }
 0x11b   : > { %2643 = vrot.lane.b32.xlu0 %v6288_v60, %s9194_s25  ;;  %2641 = vrot.lane.b32.xlu1 %v6290_v61, %s9194_s25  ;;  %v1365_v33 = vmul.f32 %v1298_v14, %v6266_v35  ;;  %v1241_v37 = vcombine.high %v1233_v21, %v1233_v21  ;;  %v1249_v40 = vrot.slane %v1233_v21, %v6243_v17  ;;  %v1076_v43 = vpop.f32.mrb[13].mxu1 }
 0x11c   : > { %v6341_v34 = vmul.f32 %v1366_v26, %v1072_v24  ;;  %v1082_v41 = vadd.f32 %v5533_v39, %v6249_v25  ;;  %v1368_v42 = vmul.f32 %v1302_v29, %v6269_v36  ;;  %v1306_v44 = vrot.slane %v1225_v30, %v6257_v27 }
 0x11d   : > { %5573 = vmatmul.mubr.msk.f32.gmra.mrb[4].mxu0 %vm759_vm0, %v6294_v0  ;;  %v6345_v38 = vmul.f32 %v1365_v33, %v1067_v32  ;;  %v1077_v45 = vadd.f32 %v6249_v25, %v1076_v43  ;;  %v1367_v46 = vmul.f32 %v1302_v29, %v6266_v35  ;;  %v1263_v50 = vrot.slane %v1241_v37, %v6243_v17 }
 0x11e   : > { %5575 = vmatprep.mubr.msk.f32.mxu0 %vm759_vm0, %v6300_v3  ;;  %v6359_v47 = vmul.f32 %v1368_v42, %v1082_v41  ;;  %v5536_v49 = vpop.f32.mrb[14].mxu1  ;;  %v1370_v52 = vmul.f32 %v1306_v44, %v6269_v36  ;;  %v1310_v54 = vrot.slane %v1249_v40, %v6257_v27  ;;  %v1369_v56 = vmul.f32 %v1306_v44, %v6266_v35 }
 0x11f   : > { %2833 = vrot.lane.b32.xlu0 %v6290_v61, %s5983_s26  ;;  %2835 = vrot.lane.b32.xlu1 %v6288_v60, %s5983_s26  ;;  %v6363_v48 = vmul.f32 %v1367_v46, %v1077_v45  ;;  %v1092_v51 = vadd.f32 %v5536_v49, %v6249_v25  ;;  %v1086_v53 = vpop.f32.mrb[15].mxu1  ;;  %v1226_v58 = vcombine.high %v6261_v31, %v6261_v31 }
 0x120   : > { %v1087_v55 = vadd.f32 %v6249_v25, %v1086_v53  ;;  %v1271_v63 = vcombine.high %v1249_v40, %v1249_v40  ;;  %v1372_v5 = vmul.f32 %v1310_v54, %v6269_v36  ;;  %v1314_v8 = vrot.slane %v1263_v50, %v6257_v27 }
 0x121   : > { %5576 = vmatmul.mubr.msk.f32.gmra.mrb[6].mxu0 %vm759_vm0, %v6298_v2  ;;  %v6373_v57 = vmul.f32 %v1370_v52, %v1092_v51  ;;  %v1371_v11 = vmul.f32 %v1310_v54, %v6266_v35  ;;  %v1240_v31 = vrot.slane %v1226_v58, %v6243_v17  ;;  %v1273_v24 = vcombine.high %v1263_v50, %v1263_v50 }
 0x122   : > { %5578 = vmatprep.mubr.msk.f32.mxu0 %vm759_vm0, %v6316_v16  ;;  %v6379_v59 = vmul.f32 %v1369_v56, %v1087_v55  ;;  %v5539_v62 = vpop.f32.mrb[16].mxu1  ;;  %v1374_v19 = vmul.f32 %v1314_v8, %v6269_v36  ;;  %v1318_v23 = vrot.slane %v1271_v63, %v6257_v27  ;;  %v1373_v28 = vmul.f32 %v1314_v8, %v6266_v35 }
 0x123   : > { %v1102_v4 = vadd.f32 %v5539_v62, %v6249_v25  ;;  %v1096_v6 = vpop.f32.mrb[17].mxu1  ;;  %v1242_v30 = vcombine.high %v1240_v31, %v1240_v31  ;;  %v1256_v37 = vrot.slane %v1240_v31, %v6243_v17  ;;  %v1322_v42 = vrot.slane %v1273_v24, %v6257_v27 }
 0x124   : > { %v1097_v10 = vadd.f32 %v6249_v25, %v1096_v6  ;;  %v1376_v40 = vmul.f32 %v1318_v23, %v6269_v36  ;;  %v1375_v44 = vmul.f32 %v1318_v23, %v6266_v35 }
 0x125   : > { %5579 = vmatmul.mubr.msk.f32.gmra.mrb[8].mxu0 %vm759_vm0, %v6314_v15  ;;  %v6388_v12 = vmul.f32 %v1372_v5, %v1102_v4  ;;  %v1378_v51 = vmul.f32 %v1322_v42, %v6269_v36  ;;  %v1326_v53 = vrot.slane %v1256_v37, %v6257_v27  ;;  %v1270_v54 = vrot.slane %v1242_v30, %v6243_v17 }
 0x126   : > { %5581 = vmatprep.mubr.msk.f32.mxu0 %vm759_vm0, %v6328_v22  ;;  %v6393_v13 = vmul.f32 %v1371_v11, %v1097_v10  ;;  %v5542_v14 = vpop.f32.mrb[18].mxu1  ;;  %v1377_v56 = vmul.f32 %v1322_v42, %v6266_v35  ;;  %v1272_v8 = vcombine.high %v1256_v37, %v1256_v37 }
 0x127   : > { %v1112_v18 = vadd.f32 %v5542_v14, %v6249_v25  ;;  %v1106_v21 = vpop.f32.mrb[19].mxu1  ;;  %v1380_v5 = vmul.f32 %v1326_v53, %v6269_v36  ;;  %v1330_v6 = vrot.slane %v1270_v54, %v6257_v27  ;;  %v1379_v11 = vmul.f32 %v1326_v53, %v6266_v35 }
 0x128   : > { %v1107_v26 = vadd.f32 %v6249_v25, %v1106_v21  ;;  %v1334_v24 = vrot.slane %v1272_v8, %v6257_v27  ;;  %v2356_v53 = vsel %vm2352_vm1, %v6288_v60, 0.0  ;;  %v2365_v60 = vsel %vm2352_vm1, %v6300_v3, 0.0 }
 0x129   : > { %5582 = vmatmul.mubr.msk.f32.gmra.mrb[10].mxu0 %vm759_vm0, %v6322_v20  ;;  %v6402_v29 = vmul.f32 %v1374_v19, %v1112_v18  ;;  %v1382_v21 = vmul.f32 %v1330_v6, %v6269_v36  ;;  %v1381_v30 = vmul.f32 %v1330_v6, %v6266_v35 }
 0x12a   : > { %5584 = vmatprep.mubr.msk.f32.mxu0 %vm759_vm0, %v6345_v38  ;;  %v6406_v32 = vmul.f32 %v1373_v28, %v1107_v26  ;;  %v5545_v33 = vpop.f32.mrb[20].mxu1  ;;  %v1274_v26 = vcombine.high %v1270_v54, %v1270_v54  ;;  %v1384_v42 = vmul.f32 %v1334_v24, %v6269_v36 }
 0x12b   : > { %v1122_v39 = vadd.f32 %v5545_v33, %v6249_v25  ;;  %v1116_v41 = vpop.f32.mrb[21].mxu1  ;;  %v2353_v33 = vsel %vm2352_vm1, %v6290_v61, 0.0  ;;  %v1383_v61 = vmul.f32 %v1334_v24, %v6266_v35  ;;  %v2386_v24 = vsel %vm2352_vm1, %v6341_v34, 0.0 }
 0x12c   : > { %v1117_v43 = vadd.f32 %v6249_v25, %v1116_v41 }
 0x12d   : > { %5585 = vmatmul.mubr.msk.f32.gmra.mrb[12].mxu0 %vm759_vm0, %v6341_v34  ;;  %v6416_v45 = vmul.f32 %v1376_v40, %v1122_v39 }
 0x12e   : > { %5587 = vmatprep.mubr.msk.f32.mxu0 %vm759_vm0, %v6363_v48  ;;  %v6420_v46 = vmul.f32 %v1375_v44, %v1117_v43  ;;  %v5548_v49 = vpop.f32.mrb[22].mxu1  ;;  %v1338_v44 = vrot.slane %v1274_v26, %v6257_v27 }
 0x12f   : > { %v1132_v50 = vadd.f32 %v5548_v49, %v6249_v25  ;;  %v1126_v52 = vpop.f32.mrb[23].mxu1 }
 0x130   : > { %v1127_v55 = vadd.f32 %v6249_v25, %v1126_v52  ;;  %v1386_v54 = vmul.f32 %v1338_v44, %v6269_v36  ;;  %v2368_v36 = vsel %vm2352_vm1, %v6298_v2, 0.0 }
 0x131   : > { %5588 = vmatmul.mubr.msk.f32.gmra.mrb[14].mxu0 %vm759_vm0, %v6359_v47  ;;  %v6430_v58 = vmul.f32 %v1378_v51, %v1132_v50 }
 0x132   : > { %5590 = vmatprep.mubr.msk.f32.mxu0 %vm759_vm0, %v6379_v59  ;;  %v6434_v62 = vmul.f32 %v1377_v56, %v1127_v55  ;;  %v5551_v63 = vpop.f32.mrb[24].mxu1 }
 0x133   : > { %v1142_v4 = vadd.f32 %v5551_v63, %v6249_v25  ;;  %v1136_v17 = vpop.f32.mrb[25].mxu1  ;;  %v1385_v63 = vmul.f32 %v1338_v44, %v6266_v35  ;;  %v2362_v35 = vsel %vm2352_vm1, %v6294_v0, 0.0  ;;  %v2377_v44 = vsel %vm2352_vm1, %v6328_v22, 0.0 }
 0x134   : > { %v1137_v10 = vadd.f32 %v6249_v25, %v1136_v17 }
 0x135   : > { %5591 = vmatmul.mubr.msk.f32.gmra.mrb[16].mxu0 %vm759_vm0, %v6373_v57  ;;  %v6443_v31 = vmul.f32 %v1380_v5, %v1142_v4 }
 0x136   : > { %5593 = vmatprep.mubr.msk.f32.mxu0 %vm759_vm0, %v6393_v13  ;;  %v6447_v14 = vmul.f32 %v1379_v11, %v1137_v10  ;;  %v5554_v18 = vpop.f32.mrb[26].mxu1 }
 0x137   : > { %v1152_v19 = vadd.f32 %v5554_v18, %v6249_v25  ;;  %v1146_v23 = vpop.f32.mrb[27].mxu1 }
 0x138   : > { %v1147_v28 = vadd.f32 %v6249_v25, %v1146_v23 }
 0x139   : > { %5594 = vmatmul.mubr.msk.f32.gmra.mrb[18].mxu0 %vm759_vm0, %v6388_v12  ;;  %v6458_v37 = vmul.f32 %v1382_v21, %v1152_v19 }
 0x13a   : > { %5596 = vmatprep.mubr.msk.f32.mxu0 %vm759_vm0, %v6406_v32  ;;  %v6462_v39 = vmul.f32 %v1381_v30, %v1147_v28  ;;  %v5557_v40 = vpop.f32.mrb[28].mxu1 }
 0x13b   : > { %v1162_v41 = vadd.f32 %v5557_v40, %v6249_v25  ;;  %v1156_v43 = vpop.f32.mrb[29].mxu1 }
 0x13c   : > { %v1157_v49 = vadd.f32 %v6249_v25, %v1156_v43 }
 0x13d   : > { %5597 = vmatmul.mubr.msk.f32.gmra.mrb[20].mxu0 %vm759_vm0, %v6402_v29  ;;  %v6471_v50 = vmul.f32 %v1384_v42, %v1162_v41 }
 0x13e   : > { %5599 = vmatprep.mubr.msk.f32.mxu0 %vm759_vm0, %v6420_v46  ;;  %2354 = vadd.xlane.f32.xlu0 %v2353_v33  ;;  %v6475_v51 = vmul.f32 %v1383_v61, %v1157_v49  ;;  %v5560_v52 = vpop.f32.mrb[30].mxu1  ;;  %v5252_v33 = vld [vmem:[%s9172_s10] ss:$0 sm:$0xff] }
 0x13f   : > { %v1172_v27 = vadd.f32 %v5560_v52, %v6249_v25  ;;  %v1166_v55 = vpop.f32.mrb[31].mxu1 }
 0x140   : > { %v1167_v56 = vadd.f32 %v6249_v25, %v1166_v55  ;;  %v2359_v25 = vsel %vm2352_vm1, %v6296_v1, 0.0 }
 0x141   : > { %5600 = vmatmul.mubr.msk.f32.gmra.mrb[22].mxu0 %vm759_vm0, %v6416_v45  ;;  %v6485_v4 = vmul.f32 %v1386_v54, %v1172_v27 }
 0x142   : > { %5602 = vmatprep.mubr.msk.f32.mxu0 %vm759_vm0, %v6434_v62  ;;  %v6489_v5 = vmul.f32 %v1385_v63, %v1167_v56 }
 0x143   : > { %2357 = vadd.xlane.f32.xlu1 %v2356_v53 }
 0x144   : > { %5614 = vmatprep.mubr.msk.f32.mxu1 %vm759_vm0, %v6489_v5 }
 0x145   : > { %5603 = vmatmul.mubr.msk.f32.gmra.mrb[24].mxu0 %vm759_vm0, %v6430_v58  ;;  %5615 = vmatmul.mubr.msk.f32.vlgmr.msra.gmra.mrb[32].mxu1 %vm759_vm0, %v6485_v4 }
 0x146   : > { %5605 = vmatprep.mubr.msk.f32.mxu0 %vm759_vm0, %v6447_v14 }
 0x149   : > { %5606 = vmatmul.mubr.msk.f32.gmra.mrb[26].mxu0 %vm759_vm0, %v6443_v31 }
 0x14a   : > { %5608 = vmatprep.mubr.msk.f32.mxu0 %vm759_vm0, %v6462_v39 }
 0x14d   : > { %5609 = vmatmul.mubr.msk.f32.gmra.mrb[28].mxu0 %vm759_vm0, %v6458_v37 }
 0x14e   : > { %5611 = vmatprep.mubr.msk.f32.mxu0 %vm759_vm0, %v6475_v51 }
 0x151   : > { %5612 = vmatmul.mubr.msk.f32.gmra.mrb[30].mxu0 %vm759_vm0, %v6471_v50 }
 0x154   : > { %2457 = vrot.lane.b32.xlu0 %v6300_v3, %s5981_s18  ;;  %2453 = vrot.lane.b32.xlu1 %v6296_v1, %s5981_s18 }
 0x158   : > { %2649 = vrot.lane.b32.xlu0 %v6300_v3, %s9194_s25  ;;  %2455 = vrot.lane.b32.xlu1 %v6294_v0, %s5981_s18 }
 0x15c   : > { %2837 = vrot.lane.b32.xlu0 %v6296_v1, %s5983_s26  ;;  %2459 = vrot.lane.b32.xlu1 %v6298_v2, %s5981_s18 }
 0x160   : > { %2841 = vrot.lane.b32.xlu0 %v6300_v3, %s5983_s26  ;;  %2645 = vrot.lane.b32.xlu1 %v6296_v1, %s9194_s25  ;;  %v2380_v1 = vsel %vm2352_vm1, %v6322_v20, 0.0 }
 0x164   : > { %2647 = vrot.lane.b32.xlu1 %v6294_v0, %s9194_s25 }
 0x168   : > { %2651 = vrot.lane.b32.xlu1 %v6298_v2, %s9194_s25 }
 0x16c   : > { %2839 = vrot.lane.b32.xlu1 %v6294_v0, %s5983_s26  ;;  %v2374_v0 = vsel %vm2352_vm1, %v6314_v15, 0.0 }
 0x170   : > { %2843 = vrot.lane.b32.xlu1 %v6298_v2, %s5983_s26  ;;  %v2371_v2 = vsel %vm2352_vm1, %v6316_v16, 0.0 }
 0x17f   : > { %2360 = vadd.xlane.f32.xlu0 %v2359_v25 }
 0x183   : > { %2363 = vadd.xlane.f32.xlu0 %v2362_v35 }
 0x187   : > { %2369 = vadd.xlane.f32.xlu0 %v2368_v36 }
 0x194   : > { %2366 = vadd.xlane.f32.xlu1 %v2365_v60 }
 0x19d   : > { %2461 = vrot.lane.b32.xlu0 %v6316_v16, %s5981_s18 }
 0x1a1   : > { %2653 = vrot.lane.b32.xlu0 %v6316_v16, %s9194_s25 }
 0x1a5   : > { %2845 = vrot.lane.b32.xlu0 %v6316_v16, %s5983_s26  ;;  %2463 = vrot.lane.b32.xlu1 %v6314_v15, %s5981_s18 }
 0x1a9   : > { %2655 = vrot.lane.b32.xlu1 %v6314_v15, %s9194_s25 }
 0x1ad   : > { %2847 = vrot.lane.b32.xlu1 %v6314_v15, %s5983_s26 }
 0x1c4   : > { %2375 = vadd.xlane.f32.xlu0 %v2374_v0 }
 0x1c8   : > { %2381 = vadd.xlane.f32.xlu0 %v2380_v1 }
 0x1d1   : > { %2372 = vadd.xlane.f32.xlu1 %v2371_v2 }
 0x1de   : > { %2465 = vrot.lane.b32.xlu0 %v6328_v22, %s5981_s18 }
 0x1e2   : > { %2657 = vrot.lane.b32.xlu0 %v6328_v22, %s9194_s25  ;;  %2467 = vrot.lane.b32.xlu1 %v6322_v20, %s5981_s18 }
 0x1e6   : > { %2849 = vrot.lane.b32.xlu0 %v6328_v22, %s5983_s26  ;;  %2659 = vrot.lane.b32.xlu1 %v6322_v20, %s9194_s25 }
 0x1ea   : > { %2851 = vrot.lane.b32.xlu1 %v6322_v20, %s5983_s26 }
 0x1ec   : > { %v6567_v3 = vpop.f32.mrb[2].mxu0 }
 0x1ed   : > { %v6569_v15 = vpop.f32.mrb[3].mxu0 }
 0x1ee   : > { %9218 = vst [vmem:[#allocation16_spill] sm:$0xff] %v6569_v15 }
 0x1f0   : > { %v6571_v16 = vpop.f32.mrb[4].mxu0 }
 0x1f1   : > { %v6573_v17 = vpop.f32.mrb[5].mxu0 }
 0x1f4   : > { %v6575_v6 = vpop.f32.mrb[6].mxu0 }
 0x1f5   : > { %v6577_v8 = vpop.f32.mrb[7].mxu0 }
 0x1f8   : > { %v6579_v10 = vpop.f32.mrb[8].mxu0 }
 0x1f9   : > { %v6581_v11 = vpop.f32.mrb[9].mxu0 }
 0x1fa   : > { %9219 = vst [vmem:[#allocation17_spill] sm:$0xff] %v6581_v11 }
 0x1fc   : > { %v6583_v18 = vpop.f32.mrb[10].mxu0 }
 0x1fd   : > { %v6585_v19 = vpop.f32.mrb[11].mxu0 }
 0x1fe   : > { %9220 = vst [vmem:[#allocation18_spill] sm:$0xff] %v6585_v19 }
 0x200   : > { %v6587_v20 = vpop.f32.mrb[12].mxu0 }
 0x201   : > { %v6589_v21 = vpop.f32.mrb[13].mxu0 }
 0x202   : > { %9221 = vst [vmem:[#allocation19_spill] sm:$0xff] %v6589_v21 }
 0x204   : > { %v6591_v23 = vpop.f32.mrb[14].mxu0 }
 0x205   : > { %v6595_v26 = vpop.f32.mrb[15].mxu0  ;;  %2387 = vadd.xlane.f32.xlu0 %v2386_v24 }
 0x206   : > { %9222 = vst [vmem:[#allocation20_spill] sm:$0xff] %v6595_v26 }
 0x208   : > { %v6597_v28 = vpop.f32.mrb[16].mxu0 }
 0x209   : > { %9223 = vst [vmem:[#allocation21_spill] sm:$0xff] %v6597_v28  ;;  %v6599_v30 = vpop.f32.mrb[17].mxu0 }
 0x20a   : > { %9224 = vst [vmem:[#allocation22_spill] sm:$0xff] %v6599_v30 }
 0x20c   : > { %v5595_v40 = vpop.f32.mrb[18].mxu0 }
 0x20d   : > { %v6604_v41 = vadd.f32 %v5595_v40, %v5252_v33  ;;  %v1672_v42 = vpop.f32.mrb[19].mxu0 }
 0x20e   : > { %v6606_v43 = vadd.f32 %v5252_v33, %v1672_v42  ;;  %2378 = vadd.xlane.f32.xlu1 %v2377_v44 }
 0x20f   : > { %v2264_v44 = vrot.slane %v6604_v41, 6 }
 0x210   : > { %v5598_v49 = vpop.f32.mrb[20].mxu0 }
 0x211   : > { %v6610_v61 = vadd.f32 %v5598_v49, %v5252_v33  ;;  %v1682_v52 = vpop.f32.mrb[21].mxu0 }
 0x212   : > { %v6612_v53 = vadd.f32 %v5252_v33, %v1682_v52 }
 0x213   : > { %v2265_v49 = vrot.slane %v6610_v61, 5 }
 0x214   : > { %v5601_v27 = vpop.f32.mrb[22].mxu0 }
 0x215   : > { %v6614_v54 = vadd.f32 %v5601_v27, %v5252_v33  ;;  %v1692_v55 = vpop.f32.mrb[23].mxu0 }
 0x216   : > { %v6616_v56 = vadd.f32 %v5252_v33, %v1692_v55 }
 0x217   : > { %v2267_v27 = vrot.slane %v6614_v54, 4  ;;  %v2100_v11 = vrot.slane %v6614_v54, 7 }
 0x218   : > { %v5604_v63 = vpop.f32.mrb[24].mxu0  ;;  %v5616_v1 = vpop.f32.mrb[32].mxu1 }
 0x219   : > { %v6618_v25 = vadd.f32 %v5604_v63, %v5252_v33  ;;  %v1702_v35 = vpop.f32.mrb[25].mxu0  ;;  %v6628_v24 = vadd.f32 %v5616_v1, %v5252_v33  ;;  %v1742_v40 = vpop.f32.mrb[33].mxu1 }
 0x21a   : > { %v6620_v36 = vadd.f32 %v5252_v33, %v1702_v35  ;;  %v6630_v42 = vadd.f32 %v5252_v33, %v1742_v40 }
 0x21b   : > { %2469 = vrot.lane.b32.xlu0 %v6345_v38, %s5981_s18  ;;  %9225 = vst [vmem:[#allocation23_spill] sm:$0xff] %v6628_v24  ;;  %v2269_v55 = vrot.slane %v6618_v25, 3  ;;  %v1985_v24 = vrot.slane %v6612_v53, 5 }
 0x21c   : > { %v5607_v22 = vpop.f32.mrb[26].mxu0 }
 0x21d   : > { %v6624_v60 = vadd.f32 %v5607_v22, %v5252_v33  ;;  %v1712_v0 = vpop.f32.mrb[27].mxu0 }
 0x21e   : > { %v6626_v2 = vadd.f32 %v5252_v33, %v1712_v0  ;;  %v2266_v0 = vsel %vm1768_vm2, %v2265_v49, %v2264_v44 }
 0x21f   : > { %2661 = vrot.lane.b32.xlu0 %v6345_v38, %s9194_s25  ;;  %2471 = vrot.lane.b32.xlu1 %v6341_v34, %s5981_s18  ;;  %v2271_v63 = vrot.slane %v6624_v60, 2  ;;  %v2268_v40 = vsel %vm1771_vm3, %v2267_v27, %v2266_v0  ;;  %v1989_v27 = vrot.slane %v6620_v36, 3 }
 0x220   : > { %v5610_v52 = vpop.f32.mrb[28].mxu0  ;;  %v2270_v7 = vsel %vm1774_vm4, %v2269_v55, %v2268_v40  ;;  %v1991_v0 = vrot.slane %v6626_v2, 2 }
 0x221   : > { %v6641_v35 = vadd.f32 %v5610_v52, %v5252_v33  ;;  %v1722_v22 = vpop.f32.mrb[29].mxu0  ;;  %v1984_v52 = vrot.slane %v6606_v43, 6  ;;  %v2272_v49 = vsel %vm1777_vm5, %v2271_v63, %v2270_v7  ;;  %v2098_v63 = vrot.slane %v6604_v41, 1 }
 0x222   : > { %v6644_v1 = vadd.f32 %v5252_v33, %v1722_v22  ;;  %v1987_v22 = vrot.slane %v6616_v56, 4 }
 0x223   : > { %2853 = vrot.lane.b32.xlu0 %v6345_v38, %s5983_s26  ;;  %v2273_v9 = vrot.slane %v6641_v35, 1  ;;  %2663 = vrot.lane.b32.xlu1 %v6341_v34, %s9194_s25  ;;  %v1986_v28 = vsel %vm1768_vm2, %v1985_v24, %v1984_v52  ;;  %v2102_v24 = vrot.slane %v6618_v25, 6 }
 0x224   : > { %v5613_v44 = vpop.f32.mrb[30].mxu0  ;;  %v1993_v26 = vrot.slane %v6644_v1, 1  ;;  %v1988_v7 = vsel %vm1771_vm3, %v1987_v22, %v1986_v28  ;;  %v2099_v28 = vsel %vm1768_vm2, %v6610_v61, %v2098_v63  ;;  %v2104_v22 = vrot.slane %v6624_v60, 5 }
 0x225   : > { %v6659_v30 = vadd.f32 %v5613_v44, %v5252_v33  ;;  %v1732_v55 = vpop.f32.mrb[31].mxu0  ;;  %v2274_v40 = vsel %vm1780_vm6, %v2273_v9, %v2272_v49  ;;  %v1990_v44 = vsel %vm1774_vm4, %v1989_v27, %v1988_v7  ;;  %v2101_v49 = vsel %vm1771_vm3, %v2100_v11, %v2099_v28 }
 0x226   : > { %v6664_v21 = vadd.f32 %v5252_v33, %v1732_v55  ;;  %v1992_v9 = vsel %vm1777_vm5, %v1991_v0, %v1990_v44  ;;  %v1996_v33 = vrot.slane %v6630_v42, 7  ;;  %v2106_v27 = vrot.slane %v6641_v35, 4 }
 0x227   : > { %v6670_v19 = vsel %vm1783_vm7, %v6659_v30, %v2274_v40  ;;  %2855 = vrot.lane.b32.xlu1 %v6341_v34, %s5983_s26  ;;  %v1994_v52 = vsel %vm1780_vm6, %v1993_v26, %v1992_v9  ;;  %v2103_v0 = vsel %vm1774_vm4, %v2102_v24, %v2101_v49  ;;  %v2108_v55 = vrot.slane %v6659_v30, 3 }
 0x228   : > { %9226 = vst [vmem:[#allocation24_spill] sm:$0xff] %v6670_v19  ;;  %v1995_v34 = vsel %vm1783_vm7, %v6664_v21, %v1994_v52  ;;  %v2105_v7 = vsel %vm1777_vm5, %v2104_v22, %v2103_v0  ;;  %v2132_v26 = vrot.slane %v6604_v41, 2  ;;  %v2133_v11 = vrot.slane %v6610_v61, 1 }
 0x229   : > { %v6690_v40 = vsel %vm1786_vm8, %v1996_v33, %v1995_v34  ;;  %v2107_v63 = vsel %vm1780_vm6, %v2106_v27, %v2105_v7  ;;  %v2136_v44 = vrot.slane %v6618_v25, 7  ;;  %v2138_v9 = vrot.slane %v6624_v60, 6 }
 0x22a   : > { %9227 = vst [vmem:[#allocation25_spill] sm:$0xff] %v6690_v40  ;;  %v6699_v28 = vsel %vm1783_vm7, %v2108_v55, %v2107_v63  ;;  %v2134_v24 = vsel %vm1768_vm2, %v2133_v11, %v2132_v26  ;;  %v2140_v33 = vrot.slane %v6641_v35, 5  ;;  %v2142_v49 = vrot.slane %v6659_v30, 4 }
 0x22b   : > { %9228 = vst [vmem:[#allocation26_spill] sm:$0xff] %v6699_v28  ;;  %v2135_v52 = vsel %vm1771_vm3, %v6614_v54, %v2134_v24  ;;  %v1818_v22 = vrot.slane %v6606_v43, 1  ;;  %v1820_v27 = vrot.slane %v6616_v56, 7  ;;  %v1822_v0 = vrot.slane %v6620_v36, 6 }
 0x22c   : > { %v2137_v34 = vsel %vm1774_vm4, %v2136_v44, %v2135_v52  ;;  %v1824_v55 = vrot.slane %v6626_v2, 5  ;;  %v1826_v11 = vrot.slane %v6644_v1, 4  ;;  %v1828_v63 = vrot.slane %v6664_v21, 3 }
 0x22d   : > { %v2139_v7 = vsel %vm1777_vm5, %v2138_v9, %v2137_v34  ;;  %v1819_v26 = vsel %vm1768_vm2, %v6612_v53, %v1818_v22  ;;  %v2166_v40 = vrot.slane %v6604_v41, 3  ;;  %v2167_v44 = vrot.slane %v6610_v61, 2 }
 0x22e   : > { %v2141_v24 = vsel %vm1780_vm6, %v2140_v33, %v2139_v7  ;;  %v1821_v28 = vsel %vm1771_vm3, %v1820_v27, %v1819_v26  ;;  %v2169_v34 = vrot.slane %v6614_v54, 1  ;;  %v2172_v22 = vrot.slane %v6624_v60, 7 }
 0x22f   : > { %v6721_v52 = vsel %vm1783_vm7, %v2142_v49, %v2141_v24  ;;  %v1823_v9 = vsel %vm1774_vm4, %v1822_v0, %v1821_v28  ;;  %v2168_v15 = vsel %vm1768_vm2, %v2167_v44, %v2166_v40  ;;  %v2174_v33 = vrot.slane %v6641_v35, 6 }
 0x230   : > { %9229 = vst [vmem:[#allocation27_spill] sm:$0xff] %v6721_v52  ;;  %v1825_v19 = vsel %vm1777_vm5, %v1824_v55, %v1823_v9  ;;  %v1830_v7 = vrot.slane %v6630_v42, 2  ;;  %v2170_v26 = vsel %vm1771_vm3, %v2169_v34, %v2168_v15  ;;  %v2176_v49 = vrot.slane %v6659_v30, 5 }
 0x231   : > { %v1827_v27 = vsel %vm1780_vm6, %v1826_v11, %v1825_v19  ;;  %v2171_v0 = vsel %vm1774_vm4, %v6618_v25, %v2170_v26  ;;  %v2230_v24 = vrot.slane %v6604_v41, 5  ;;  %v2231_v55 = vrot.slane %v6610_v61, 4 }
 0x232   : > { %v1829_v28 = vsel %vm1783_vm7, %v1828_v63, %v1827_v27  ;;  %v2173_v19 = vsel %vm1777_vm5, %v2172_v22, %v2171_v0  ;;  %v2233_v11 = vrot.slane %v6614_v54, 3  ;;  %v2235_v15 = vrot.slane %v6618_v25, 2 }
 0x233   : > { %v6739_v40 = vsel %vm1786_vm8, %v1830_v7, %v1829_v28  ;;  %v2175_v44 = vsel %vm1780_vm6, %v2174_v33, %v2173_v19  ;;  %v2232_v63 = vsel %vm1768_vm2, %v2231_v55, %v2230_v24  ;;  %v2237_v9 = vrot.slane %v6624_v60, 1 }
 0x234   : > { %9230 = vst [vmem:[#allocation28_spill] sm:$0xff] %v6739_v40  ;;  %v6748_v34 = vsel %vm1783_vm7, %v2176_v49, %v2175_v44  ;;  %v2234_v27 = vsel %vm1771_vm3, %v2233_v11, %v2232_v63  ;;  %v2240_v7 = vrot.slane %v6659_v30, 7  ;;  %v2298_v22 = vrot.slane %v6604_v41, 7 }
 0x235   : > { %9231 = vst [vmem:[#allocation29_spill] sm:$0xff] %v6748_v34  ;;  %v2236_v26 = vsel %vm1774_vm4, %v2235_v15, %v2234_v27  ;;  %v2299_v28 = vrot.slane %v6610_v61, 6  ;;  %v2301_v0 = vrot.slane %v6614_v54, 5  ;;  %v2303_v24 = vrot.slane %v6618_v25, 4 }
 0x236   : > { %v2238_v33 = vsel %vm1777_vm5, %v2237_v9, %v2236_v26  ;;  %v2305_v55 = vrot.slane %v6624_v60, 3  ;;  %v2307_v49 = vrot.slane %v6641_v35, 2  ;;  %v2309_v15 = vrot.slane %v6659_v30, 1 }
 0x237   : > { %v2239_v19 = vsel %vm1780_vm6, %v6641_v35, %v2238_v33  ;;  %v2300_v11 = vsel %vm1768_vm2, %v2299_v28, %v2298_v22  ;;  %v1852_v44 = vrot.slane %v6606_v43, 2  ;;  %v1853_v27 = vrot.slane %v6612_v53, 1 }
 0x238   : > { %v6766_v63 = vsel %vm1783_vm7, %v2240_v7, %v2239_v19  ;;  %v2302_v9 = vsel %vm1771_vm3, %v2301_v0, %v2300_v11  ;;  %v1856_v26 = vrot.slane %v6620_v36, 7  ;;  %v1858_v40 = vrot.slane %v6626_v2, 6 }
 0x239   : > { %9232 = vst [vmem:[#allocation30_spill] sm:$0xff] %v6766_v63  ;;  %v2304_v34 = vsel %vm1774_vm4, %v2303_v24, %v2302_v9  ;;  %v1854_v22 = vsel %vm1768_vm2, %v1853_v27, %v1852_v44  ;;  %v1860_v28 = vrot.slane %v6644_v1, 5  ;;  %v1862_v0 = vrot.slane %v6664_v21, 4 }
 0x23a   : > { %v2306_v33 = vsel %vm1777_vm5, %v2305_v55, %v2304_v34  ;;  %v1855_v7 = vsel %vm1771_vm3, %v6616_v56, %v1854_v22  ;;  %v2392_v11 = vsel %vm2352_vm1, %v6359_v47, 0.0  ;;  %v1886_v9 = vrot.slane %v6606_v43, 3 }
 0x23b   : > { %v2308_v52 = vsel %vm1780_vm6, %v2307_v49, %v2306_v33  ;;  %v1857_v24 = vsel %vm1774_vm4, %v1856_v26, %v1855_v7  ;;  %v1864_v49 = vrot.slane %v6630_v42, 3  ;;  %v1887_v27 = vrot.slane %v6612_v53, 2 }
 0x23c   : > { %v6781_v19 = vsel %vm1783_vm7, %v2309_v15, %v2308_v52  ;;  %v1859_v34 = vsel %vm1777_vm5, %v1858_v40, %v1857_v24  ;;  %v1889_v15 = vrot.slane %v6616_v56, 1  ;;  %v1892_v26 = vrot.slane %v6626_v2, 7 }
 0x23d   : > { %9233 = vst [vmem:[#allocation31_spill] sm:$0xff] %v6781_v19  ;;  %v1861_v55 = vsel %vm1780_vm6, %v1860_v28, %v1859_v34  ;;  %v1888_v40 = vsel %vm1768_vm2, %v1887_v27, %v1886_v9  ;;  %v1894_v33 = vrot.slane %v6644_v1, 6  ;;  %v2383_v22 = vsel %vm2352_vm1, %v6345_v38, 0.0 }
 0x23e   : > { %v1863_v44 = vsel %vm1783_vm7, %v1862_v0, %v1861_v55  ;;  %v1890_v28 = vsel %vm1771_vm3, %v1889_v15, %v1888_v40  ;;  %v1896_v7 = vrot.slane %v6664_v21, 5  ;;  %v1950_v24 = vrot.slane %v6606_v43, 5 }
 0x23f   : > { %v6793_v52 = vsel %vm1786_vm8, %v1864_v49, %v1863_v44  ;;  %v1891_v0 = vsel %vm1774_vm4, %v6620_v36, %v1890_v28  ;;  %v1953_v34 = vrot.slane %v6616_v56, 3  ;;  %v1898_v49 = vrot.slane %v6630_v42, 4 }
 0x240   : > { %9234 = vst [vmem:[#allocation32_spill] sm:$0xff] %v6793_v52  ;;  %v1893_v55 = vsel %vm1777_vm5, %v1892_v26, %v1891_v0  ;;  %v1955_v44 = vrot.slane %v6620_v36, 2  ;;  %v1957_v38 = vrot.slane %v6626_v2, 1  ;;  %v1960_v15 = vrot.slane %v6664_v21, 7 }
 0x241   : > { %v1895_v9 = vsel %vm1780_vm6, %v1894_v33, %v1893_v55  ;;  %v2018_v40 = vrot.slane %v6606_v43, 7  ;;  %v2019_v26 = vrot.slane %v6612_v53, 6  ;;  %v2021_v0 = vrot.slane %v6616_v56, 5 }
 0x242   : > { %2393 = vadd.xlane.f32.xlu0 %v2392_v11  ;;  %v1951_v11 = vrot.slane %v6612_v53, 4  ;;  %v1897_v28 = vsel %vm1783_vm7, %v1896_v7, %v1895_v9  ;;  %v2023_v33 = vrot.slane %v6620_v36, 4  ;;  %v1962_v9 = vrot.slane %v6630_v42, 6 }
 0x243   : > { %v6821_v19 = vsel %vm1786_vm8, %v1898_v49, %v1897_v28  ;;  %v2020_v7 = vsel %vm1768_vm2, %v2019_v26, %v2018_v40  ;;  %v2070_v26 = vrot.slane %v6614_v54, 6 }
 0x244   : > { %v1952_v27 = vsel %vm1768_vm2, %v1951_v11, %v1950_v24  ;;  %v2025_v24 = vrot.slane %v6626_v2, 3  ;;  %v2022_v49 = vsel %vm1771_vm3, %v2021_v0, %v2020_v7  ;;  %v2072_v0 = vrot.slane %v6618_v25, 5 }
 0x245   : > { %v1954_v52 = vsel %vm1771_vm3, %v1953_v34, %v1952_v27  ;;  %v2027_v34 = vrot.slane %v6644_v1, 2  ;;  %v2024_v27 = vsel %vm1774_vm4, %v2023_v33, %v2022_v49  ;;  %v2076_v7 = vrot.slane %v6641_v35, 3 }
 0x246   : > { %v1956_v63 = vsel %vm1774_vm4, %v1955_v44, %v1954_v52  ;;  %v2029_v52 = vrot.slane %v6664_v21, 1 }
 0x247   : > { %v1958_v11 = vsel %vm1777_vm5, %v1957_v38, %v1956_v63  ;;  %v2026_v63 = vsel %vm1777_vm5, %v2025_v24, %v2024_v27  ;;  %v2074_v24 = vrot.slane %v6624_v60, 4 }
 0x248   : > { %v1959_v55 = vsel %vm1780_vm6, %v6644_v1, %v1958_v11  ;;  %v2028_v38 = vsel %vm1780_vm6, %v2027_v34, %v2026_v63  ;;  %v2078_v34 = vrot.slane %v6659_v30, 2 }
 0x249   : > { %v1961_v44 = vsel %vm1783_vm7, %v1960_v15, %v1959_v55  ;;  %v2030_v40 = vsel %vm1783_vm7, %v2029_v52, %v2028_v38  ;;  %v2068_v15 = vrot.slane %v6610_v61, 7  ;;  %v1790_v52 = vrot.slane %v6616_v56, 6 }
 0x24a   : > { %v6844_v28 = vsel %vm1786_vm8, %v6630_v42, %v2030_v40  ;;  %v1794_v38 = vrot.slane %v6626_v2, 4 }
 0x24b   : > { %2384 = vadd.xlane.f32.xlu1 %v2383_v22  ;;  %v6837_v22 = vsel %vm1786_vm8, %v1962_v9, %v1961_v44  ;;  %v2069_v33 = vsel %vm1768_vm2, %v2068_v15, %v6604_v41  ;;  %v1788_v9 = vrot.slane %v6612_v53, 7  ;;  %v1792_v44 = vrot.slane %v6620_v36, 5 }
 0x24c   : > { %v2071_v11 = vsel %vm1771_vm3, %v2070_v26, %v2069_v33  ;;  %v1796_v26 = vrot.slane %v6644_v1, 3 }
 0x24d   : > { %v2073_v55 = vsel %vm1774_vm4, %v2072_v0, %v2071_v11  ;;  %v1789_v63 = vsel %vm1768_vm2, %v1788_v9, %v6606_v43  ;;  %v1798_v0 = vrot.slane %v6664_v21, 2 }
 0x24e   : > { %v2075_v49 = vsel %vm1777_vm5, %v2074_v24, %v2073_v55  ;;  %v1791_v15 = vsel %vm1771_vm3, %v1790_v52, %v1789_v63  ;;  %v2200_v24 = vrot.slane %v6604_v41, 4  ;;  %v2205_v55 = vrot.slane %v6618_v25, 1 }
 0x24f   : > { %v2077_v27 = vsel %vm1780_vm6, %v2076_v7, %v2075_v49  ;;  %v1793_v33 = vsel %vm1774_vm4, %v1792_v44, %v1791_v15  ;;  %v2201_v7 = vrot.slane %v6610_v61, 3  ;;  %v1800_v49 = vrot.slane %v6630_v42, 1 }
 0x250   : > { %v6871_v40 = vsel %vm1783_vm7, %v2078_v34, %v2077_v27  ;;  %v1795_v11 = vsel %vm1777_vm5, %v1794_v38, %v1793_v33  ;;  %v2203_v34 = vrot.slane %v6614_v54, 2  ;;  %v2208_v41 = vrot.slane %v6641_v35, 7 }
 0x251   : > { %9235 = vst [vmem:[#allocation33_spill] sm:$0xff] %v6871_v40  ;;  %v1797_v9 = vsel %vm1780_vm6, %v1796_v26, %v1795_v11  ;;  %v2202_v44 = vsel %vm1768_vm2, %v2201_v7, %v2200_v24  ;;  %v2210_v27 = vrot.slane %v6659_v30, 6  ;;  %v1920_v54 = vrot.slane %v6606_v43, 4 }
 0x252   : > { %v1799_v52 = vsel %vm1783_vm7, %v1798_v0, %v1797_v9  ;;  %v2204_v61 = vsel %vm1771_vm3, %v2203_v34, %v2202_v44  ;;  %v1921_v25 = vrot.slane %v6612_v53, 3  ;;  %v1923_v15 = vrot.slane %v6616_v56, 2 }
 0x253   : > { %v6891_v63 = vsel %vm1786_vm8, %v1800_v49, %v1799_v52  ;;  %v2206_v38 = vsel %vm1774_vm4, %v2205_v55, %v2204_v61  ;;  %v1925_v26 = vrot.slane %v6620_v36, 1  ;;  %v1928_v0 = vrot.slane %v6644_v1, 7 }
 0x254   : > { %9236 = vst [vmem:[#allocation34_spill] sm:$0xff] %v6891_v63  ;;  %v2207_v35 = vsel %vm1777_vm5, %v6624_v60, %v2206_v38  ;;  %v1922_v30 = vsel %vm1768_vm2, %v1921_v25, %v1920_v54  ;;  %v1930_v43 = vrot.slane %v6664_v21, 6  ;;  %v1932_v11 = vrot.slane %v6630_v42, 5  ;;  %v7024_v54 = vpop.permute.xlu0 %2451 }
 0x255   : > { %v2209_v33 = vsel %vm1780_vm6, %v2208_v41, %v2207_v35  ;;  %v1924_v24 = vsel %vm1771_vm3, %v1923_v15, %v1922_v30  ;;  %v2398_v21 = vsel %vm2352_vm1, %v6373_v57, 0.0  ;;  %v2389_v34 = vsel %vm2352_vm1, %v6363_v48, 0.0 }
 0x256   : > { %v6907_v53 = vsel %vm1783_vm7, %v2210_v27, %v2209_v33  ;;  %v1926_v56 = vsel %vm1774_vm4, %v1925_v26, %v1924_v24  ;;  %v2395_v42 = vsel %vm2352_vm1, %v6379_v59, 0.0  ;;  %v2410_v55 = vsel %vm2352_vm1, %v6402_v29, 0.0 }
 0x257   : > { %9237 = vst [vmem:[#allocation35_spill] sm:$0xff] %v6907_v53  ;;  %v1927_v36 = vsel %vm1777_vm5, %v6626_v2, %v1926_v56  ;;  %v2404_v2 = vsel %vm2352_vm1, %v6388_v12, 0.0  ;;  %v2401_v9 = vsel %vm2352_vm1, %v6393_v13, 0.0  ;;  %v2419_v49 = vsel %vm2352_vm1, %v6434_v62, 0.0 }
 0x258   : > { %2473 = vrot.lane.b32.xlu0 %v6363_v48, %s5981_s18  ;;  %v1929_v60 = vsel %vm1780_vm6, %v1928_v0, %v1927_v36  ;;  %v7028_v38 = vpop.permute.xlu0 %2643  ;;  %v2434_v26 = vsel %vm2352_vm1, %v6458_v37, 0.0  ;;  %v2425_v0 = vsel %vm2352_vm1, %v6447_v14, 0.0 }
 0x259   : > { %v1931_v1 = vsel %vm1783_vm7, %v1930_v43, %v1929_v60 }
 0x25a   : > { %v6916_v7 = vsel %vm1786_vm8, %v1932_v11, %v1931_v1 }
 0x25b   : > { %9238 = vst [vmem:[#allocation36_spill] sm:$0xff] %v6916_v7 }
 0x25c   : > { %2665 = vrot.lane.b32.xlu0 %v6363_v48, %s9194_s25  ;;  %2475 = vrot.lane.b32.xlu1 %v6359_v47, %s5981_s18  ;;  %v7034_v35 = vpop.permute.xlu0 %2833 }
 0x260   : > { %2667 = vrot.lane.b32.xlu1 %v6359_v47, %s9194_s25  ;;  %v7040_v33 = vpop.xlane.xlu0 %2354 }
 0x261   : > { %9240 = vst [vmem:[#allocation38_spill] sm:$0xff] %v7040_v33 }
 0x264   : > { %v7044_v43 = vpop.permute.xlu0 %2457 }
 0x268   : > { %v7048_v36 = vpop.permute.xlu0 %2649 }
 0x27b   : > { %2399 = vadd.xlane.f32.xlu0 %v2398_v21 }
 0x284   : > { %2390 = vadd.xlane.f32.xlu1 %v2389_v34 }
 0x291   : > { %2477 = vrot.lane.b32.xlu0 %v6379_v59, %s5981_s18 }
 0x295   : > { %2669 = vrot.lane.b32.xlu0 %v6379_v59, %s9194_s25  ;;  %2479 = vrot.lane.b32.xlu1 %v6373_v57, %s5981_s18 }
 0x299   : > { %2671 = vrot.lane.b32.xlu1 %v6373_v57, %s9194_s25 }
 0x2b4   : > { %2405 = vadd.xlane.f32.xlu0 %v2404_v2 }
 0x2bd   : > { %2396 = vadd.xlane.f32.xlu1 %v2395_v42 }
 0x2ca   : > { %2481 = vrot.lane.b32.xlu0 %v6393_v13, %s5981_s18 }
 0x2ce   : > { %2673 = vrot.lane.b32.xlu0 %v6393_v13, %s9194_s25  ;;  %2483 = vrot.lane.b32.xlu1 %v6388_v12, %s5981_s18 }
 0x2d2   : > { %2865 = vrot.lane.b32.xlu0 %v6393_v13, %s5983_s26  ;;  %2675 = vrot.lane.b32.xlu1 %v6388_v12, %s9194_s25  ;;  %v2407_v13 = vsel %vm2352_vm1, %v6406_v32, 0.0 }
 0x2d6   : > { %2867 = vrot.lane.b32.xlu1 %v6388_v12, %s5983_s26  ;;  %v2416_v12 = vsel %vm2352_vm1, %v6416_v45, 0.0 }
 0x2f1   : > { %2411 = vadd.xlane.f32.xlu0 %v2410_v55 }
 0x2fa   : > { %2402 = vadd.xlane.f32.xlu1 %v2401_v9 }
 0x307   : > { %2485 = vrot.lane.b32.xlu0 %v6406_v32, %s5981_s18 }
 0x30b   : > { %2677 = vrot.lane.b32.xlu0 %v6406_v32, %s9194_s25  ;;  %2487 = vrot.lane.b32.xlu1 %v6402_v29, %s5981_s18 }
 0x30f   : > { %2869 = vrot.lane.b32.xlu0 %v6406_v32, %s5983_s26  ;;  %2679 = vrot.lane.b32.xlu1 %v6402_v29, %s9194_s25  ;;  %v2413_v32 = vsel %vm2352_vm1, %v6420_v46, 0.0 }
 0x313   : > { %2871 = vrot.lane.b32.xlu1 %v6402_v29, %s5983_s26  ;;  %v2422_v29 = vsel %vm2352_vm1, %v6430_v58, 0.0 }
 0x32e   : > { %2417 = vadd.xlane.f32.xlu0 %v2416_v12 }
 0x337   : > { %2408 = vadd.xlane.f32.xlu1 %v2407_v13 }
 0x344   : > { %2489 = vrot.lane.b32.xlu0 %v6420_v46, %s5981_s18 }
 0x348   : > { %2681 = vrot.lane.b32.xlu0 %v6420_v46, %s9194_s25  ;;  %2491 = vrot.lane.b32.xlu1 %v6416_v45, %s5981_s18 }
 0x34c   : > { %2873 = vrot.lane.b32.xlu0 %v6420_v46, %s5983_s26  ;;  %2683 = vrot.lane.b32.xlu1 %v6416_v45, %s9194_s25  ;;  %v6996_v46 = vpop.permute.xlu1 %2449 }
 0x350   : > { %2875 = vrot.lane.b32.xlu1 %v6416_v45, %s5983_s26  ;;  %v2428_v45 = vsel %vm2352_vm1, %v6443_v31, 0.0  ;;  %v7000_v52 = vpop.permute.xlu1 %2641 }
 0x354   : > { %v7002_v44 = vpop.permute.xlu1 %2835 }
 0x358   : > { %v7006_v41 = vpop.xlane.xlu1 %2357 }
 0x359   : > { %9239 = vst [vmem:[#allocation37_spill] sm:$0xff] %v7006_v41 }
 0x36b   : > { %2423 = vadd.xlane.f32.xlu0 %v2422_v29 }
 0x374   : > { %2414 = vadd.xlane.f32.xlu1 %v2413_v32  ;;  %v2440_v32 = vsel %vm2352_vm1, %v6471_v50, 0.0 }
 0x381   : > { %2493 = vrot.lane.b32.xlu0 %v6434_v62, %s5981_s18 }
 0x385   : > { %2685 = vrot.lane.b32.xlu0 %v6434_v62, %s9194_s25  ;;  %2495 = vrot.lane.b32.xlu1 %v6430_v58, %s5981_s18 }
 0x389   : > { %2877 = vrot.lane.b32.xlu0 %v6434_v62, %s5983_s26  ;;  %2687 = vrot.lane.b32.xlu1 %v6430_v58, %s9194_s25 }
 0x38d   : > { %2879 = vrot.lane.b32.xlu1 %v6430_v58, %s5983_s26  ;;  %v7012_v58 = vpop.permute.xlu1 %2453 }
 0x391   : > { %v7018_v62 = vpop.permute.xlu1 %2455 }
 0x395   : > { %v7020_v27 = vpop.permute.xlu1 %2459 }
 0x399   : > { %v7022_v61 = vpop.permute.xlu1 %2645 }
 0x39d   : > { %v7026_v25 = vpop.permute.xlu1 %2647 }
 0x3a1   : > { %v7030_v15 = vpop.permute.xlu1 %2651 }
 0x3a5   : > { %v7036_v30 = vpop.permute.xlu1 %2839 }
 0x3a8   : > { %2429 = vadd.xlane.f32.xlu0 %v2428_v45 }
 0x3a9   : > { %v7042_v24 = vpop.permute.xlu1 %2843 }
 0x3aa   : > { %9241 = vst [vmem:[#allocation39_spill] sm:$0xff] %v7042_v24 }
 0x3ad   : > { %v7046_v56 = vpop.xlane.xlu1 %2366 }
 0x3ae   : > { %9242 = vst [vmem:[#allocation40_spill] sm:$0xff] %v7046_v56 }
 0x3b1   : > { %2420 = vadd.xlane.f32.xlu1 %v2419_v49  ;;  %v7050_v60 = vpop.permute.xlu1 %2463 }
 0x3b5   : > { %v7060_v11 = vpop.permute.xlu1 %2655 }
 0x3b6   : > { %9243 = vst [vmem:[#allocation41_spill] sm:$0xff] %v7060_v11 }
 0x3b9   : > { %v7066_v21 = vpop.permute.xlu1 %2847 }
 0x3ba   : > { %9245 = vst [vmem:[#allocation43_spill] sm:$0xff] %v7066_v21 }
 0x3bd   : > { %v7070_v2 = vpop.xlane.xlu1 %2372 }
 0x3be   : > { %2497 = vrot.lane.b32.xlu0 %v6447_v14, %s5981_s18  ;;  %9247 = vst [vmem:[#allocation45_spill] sm:$0xff] %v7070_v2 }
 0x3c1   : > { %v7074_v55 = vpop.permute.xlu1 %2467 }
 0x3c2   : > { %2689 = vrot.lane.b32.xlu0 %v6447_v14, %s9194_s25  ;;  %2499 = vrot.lane.b32.xlu1 %v6443_v31, %s5981_s18 }
 0x3c5   : > { %v7078_v12 = vpop.permute.xlu1 %2659 }
 0x3c6   : > { %2881 = vrot.lane.b32.xlu0 %v6447_v14, %s5983_s26  ;;  %2691 = vrot.lane.b32.xlu1 %v6443_v31, %s9194_s25  ;;  %v7056_v14 = vpop.permute.xlu0 %2837  ;;  %9250 = vst [vmem:[#allocation48_spill] sm:$0xff] %v7078_v12 }
 0x3c9   : > { %v7082_v29 = vpop.permute.xlu1 %2851 }
 0x3ca   : > { %v7064_v1 = vpop.permute.xlu0 %2841  ;;  %9251 = vst [vmem:[#allocation49_spill] sm:$0xff] %v7082_v29 }
 0x3cb   : > { %9244 = vst [vmem:[#allocation42_spill] sm:$0xff] %v7064_v1 }
 0x3cd   : > { %v7086_v45 = vpop.xlane.xlu1 %2378 }
 0x3ce   : > { %v7068_v34 = vpop.xlane.xlu0 %2360  ;;  %9252 = vst [vmem:[#allocation50_spill] sm:$0xff] %v7086_v45 }
 0x3cf   : > { %9246 = vst [vmem:[#allocation44_spill] sm:$0xff] %v7068_v34 }
 0x3d2   : > { %v7072_v42 = vpop.xlane.xlu0 %2363 }
 0x3d3   : > { %9248 = vst [vmem:[#allocation46_spill] sm:$0xff] %v7072_v42 }
 0x3d6   : > { %v7076_v9 = vpop.xlane.xlu0 %2369 }
 0x3d7   : > { %9249 = vst [vmem:[#allocation47_spill] sm:$0xff] %v7076_v9 }
 0x3da   : > { %v7080_v13 = vpop.permute.xlu0 %2461 }
 0x3de   : > { %v7088_v49 = vpop.permute.xlu0 %2653 }
 0x3e2   : > { %v7094_v9 = vpop.permute.xlu0 %2845 }
 0x3e3   : > { %9253 = vst [vmem:[#allocation51_spill] sm:$0xff] %v7094_v9 }
 0x3e5   : > { %2435 = vadd.xlane.f32.xlu0 %v2434_v26  ;;  %v2431_v26 = vsel %vm2352_vm1, %v6462_v39, 0.0 }
 0x3e6   : > { %v7096_v56 = vpop.xlane.xlu0 %2375 }
 0x3e7   : > { %9254 = vst [vmem:[#allocation52_spill] sm:$0xff] %v7096_v56 }
 0x3ea   : > { %2426 = vadd.xlane.f32.xlu1 %v2425_v0  ;;  %v7092_v0 = vpop.permute.xlu1 %2471  ;;  %v7100_v34 = vpop.xlane.xlu0 %2381 }
 0x3eb   : > { %9256 = vst [vmem:[#allocation54_spill] sm:$0xff] %v7100_v34 }
 0x3ee   : > { %v7098_v42 = vpop.permute.xlu1 %2663 }
 0x3ef   : > { %9255 = vst [vmem:[#allocation53_spill] sm:$0xff] %v7098_v42 }
 0x3f2   : > { %v7102_v33 = vpop.permute.xlu1 %2855 }
 0x3f3   : > { %9257 = vst [vmem:[#allocation55_spill] sm:$0xff] %v7102_v33 }
 0x3fb   : > { %2501 = vrot.lane.b32.xlu0 %v6462_v39, %s5981_s18  ;;  %2503 = vrot.lane.b32.xlu1 %v6458_v37, %s5981_s18 }
 0x3ff   : > { %2693 = vrot.lane.b32.xlu0 %v6462_v39, %s9194_s25  ;;  %2695 = vrot.lane.b32.xlu1 %v6458_v37, %s9194_s25 }
 0x41e   : > { %2441 = vadd.xlane.f32.xlu0 %v2440_v32  ;;  %v7108_v32 = vpop.xlane.xlu1 %2384 }
 0x41f   : > { %9258 = vst [vmem:[#allocation56_spill] sm:$0xff] %v7108_v32  ;;  %v2446_v32 = vsel %vm2352_vm1, %v6485_v4, 0.0 }
 0x422   : > { %v7112_v45 = vpop.permute.xlu1 %2475 }
 0x423   : > { %2432 = vadd.xlane.f32.xlu1 %v2431_v26  ;;  %v7110_v26 = vpop.permute.xlu0 %2465 }
 0x426   : > { %v7116_v56 = vpop.permute.xlu1 %2667 }
 0x427   : > { %v7114_v2 = vpop.permute.xlu0 %2657  ;;  %9260 = vst [vmem:[#allocation58_spill] sm:$0xff] %v7116_v56 }
 0x428   : > { %9259 = vst [vmem:[#allocation57_spill] sm:$0xff] %v7114_v2 }
 0x42a   : > { %v7120_v34 = vpop.xlane.xlu1 %2390 }
 0x42b   : > { %v7118_v7 = vpop.permute.xlu0 %2849  ;;  %9262 = vst [vmem:[#allocation60_spill] sm:$0xff] %v7120_v34 }
 0x42c   : > { %9261 = vst [vmem:[#allocation59_spill] sm:$0xff] %v7118_v7  ;;  %v2437_v7 = vsel %vm2352_vm1, %v6475_v51, 0.0 }
 0x42e   : > { %v7124_v63 = vpop.permute.xlu1 %2479 }
 0x42f   : > { %v7122_v41 = vpop.xlane.xlu0 %2387 }
 0x430   : > { %9263 = vst [vmem:[#allocation61_spill] sm:$0xff] %v7122_v41 }
 0x432   : > { %v7128_v40 = vpop.permute.xlu1 %2671 }
 0x433   : > { %v7126_v53 = vpop.permute.xlu0 %2469  ;;  %9264 = vst [vmem:[#allocation62_spill] sm:$0xff] %v7128_v40 }
 0x434   : > { %2505 = vrot.lane.b32.xlu0 %v6475_v51, %s5981_s18  ;;  %2507 = vrot.lane.b32.xlu1 %v6471_v50, %s5981_s18 }
 0x436   : > { %v7134_v9 = vpop.xlane.xlu1 %2396 }
 0x437   : > { %v7132_v33 = vpop.permute.xlu0 %2661  ;;  %9266 = vst [vmem:[#allocation64_spill] sm:$0xff] %v7134_v9 }
 0x438   : > { %9265 = vst [vmem:[#allocation63_spill] sm:$0xff] %v7132_v33 }
 0x43a   : > { %v7140_v41 = vpop.permute.xlu1 %2483 }
 0x43b   : > { %v7138_v34 = vpop.permute.xlu0 %2853 }
 0x43c   : > { %9267 = vst [vmem:[#allocation65_spill] sm:$0xff] %v7138_v34 }
 0x43e   : > { %v7144_v2 = vpop.permute.xlu1 %2675 }
 0x43f   : > { %v7142_v56 = vpop.xlane.xlu0 %2393 }
 0x440   : > { %9268 = vst [vmem:[#allocation66_spill] sm:$0xff] %v7142_v56 }
 0x442   : > { %v7148_v29 = vpop.permute.xlu1 %2867 }
 0x443   : > { %v7146_v40 = vpop.permute.xlu0 %2473  ;;  %9269 = vst [vmem:[#allocation67_spill] sm:$0xff] %v7148_v29  ;;  %v2545_v29 = vsel %vm2352_vm1, %v6996_v46, 0.0 }
 0x447   : > { %v7150_v33 = vpop.permute.xlu0 %2665 }
 0x448   : > { %9270 = vst [vmem:[#allocation68_spill] sm:$0xff] %v7150_v33 }
 0x453   : > { %2447 = vadd.xlane.f32.xlu0 %v2446_v32  ;;  %v7156_v32 = vpop.xlane.xlu1 %2402 }
 0x454   : > { %9271 = vst [vmem:[#allocation69_spill] sm:$0xff] %v7156_v32 }
 0x457   : > { %v2488_v56 = vpop.permute.xlu1 %2487 }
 0x458   : > { %2438 = vadd.xlane.f32.xlu1 %v2437_v7  ;;  %v7158_v7 = vpop.xlane.xlu0 %2399 }
 0x459   : > { %9272 = vst [vmem:[#allocation70_spill] sm:$0xff] %v7158_v7 }
 0x45b   : > { %v7168_v34 = vpop.permute.xlu1 %2679 }
 0x45c   : > { %v7164_v9 = vpop.permute.xlu0 %2477 }
 0x45f   : > { %v7178_v32 = vpop.permute.xlu1 %2871 }
 0x460   : > { %v7170_v33 = vpop.permute.xlu0 %2669  ;;  %9275 = vst [vmem:[#allocation73_spill] sm:$0xff] %v7178_v32 }
 0x461   : > { %9273 = vst [vmem:[#allocation71_spill] sm:$0xff] %v7170_v33  ;;  %v2443_v33 = vsel %vm2352_vm1, %v6489_v5, 0.0 }
 0x464   : > { %v7174_v7 = vpop.xlane.xlu0 %2405 }
 0x465   : > { %9274 = vst [vmem:[#allocation72_spill] sm:$0xff] %v7174_v7 }
 0x468   : > { %v7182_v42 = vpop.permute.xlu0 %2481 }
 0x469   : > { %2509 = vrot.lane.b32.xlu0 %v6489_v5, %s5981_s18  ;;  %2511 = vrot.lane.b32.xlu1 %v6485_v4, %s5981_s18 }
 0x46d   : > { %2697 = vrot.lane.b32.xlu0 %v6475_v51, %s9194_s25 }
 0x471   : > { %2857 = vrot.lane.b32.xlu0 %v6363_v48, %s5983_s26  ;;  %v7180_v48 = vpop.xlane.xlu1 %2408 }
 0x472   : > { %9276 = vst [vmem:[#allocation74_spill] sm:$0xff] %v7180_v48 }
 0x475   : > { %2885 = vrot.lane.b32.xlu0 %v6462_v39, %s5983_s26  ;;  %v2492_v1 = vpop.permute.xlu1 %2491  ;;  %v7184_v39 = vpop.permute.xlu0 %2673 }
 0x479   : > { %2701 = vrot.lane.b32.xlu0 %v6489_v5, %s9194_s25  ;;  %v7188_v21 = vpop.permute.xlu1 %2683  ;;  %v7190_v12 = vpop.permute.xlu0 %2865 }
 0x47d   : > { %2861 = vrot.lane.b32.xlu0 %v6379_v59, %s5983_s26  ;;  %v7192_v7 = vpop.xlane.xlu0 %2411  ;;  %v7194_v59 = vpop.permute.xlu1 %2875 }
 0x47e   : > { %9277 = vst [vmem:[#allocation75_spill] sm:$0xff] %v7192_v7  ;;  %v2554_v7 = vsel %vm2352_vm1, %v7018_v62, 0.0  ;;  %v2566_v62 = vsel %vm2352_vm1, %v7050_v60, 0.0 }
 0x481   : > { %v7196_v32 = vpop.xlane.xlu1 %2414  ;;  %v7198_v48 = vpop.permute.xlu0 %2485 }
 0x482   : > { %9278 = vst [vmem:[#allocation76_spill] sm:$0xff] %v7196_v32 }
 0x485   : > { %v2496_v24 = vpop.permute.xlu1 %2495  ;;  %v7202_v11 = vpop.permute.xlu0 %2677 }
 0x489   : > { %v7212_v32 = vpop.permute.xlu1 %2687  ;;  %v7214_v46 = vpop.permute.xlu0 %2869 }
 0x48a   : > { %9279 = vst [vmem:[#allocation77_spill] sm:$0xff] %v7214_v46 }
 0x48d   : > { %2444 = vadd.xlane.f32.xlu1 %v2443_v33  ;;  %v2551_v33 = vsel %vm2352_vm1, %v7012_v58, 0.0  ;;  %v7220_v58 = vpop.xlane.xlu0 %2417 }
 0x48e   : > { %9280 = vst [vmem:[#allocation78_spill] sm:$0xff] %v7220_v58 }
 0x49c   : > { %2546 = vadd.xlane.f32.xlu0 %v2545_v29  ;;  %v7222_v29 = vpop.permute.xlu1 %2879 }
 0x49d   : > { %9281 = vst [vmem:[#allocation79_spill] sm:$0xff] %v7222_v29 }
 0x49e   : > { %2883 = vrot.lane.b32.xlu1 %v6443_v31, %s5983_s26  ;;  %v2560_v31 = vsel %vm2352_vm1, %v7020_v27, 0.0 }
 0x4a0   : > { %2552 = vadd.xlane.f32.xlu0 %v2551_v33  ;;  %v7230_v33 = vpop.permute.xlu0 %2489 }
 0x4a2   : > { %2699 = vrot.lane.b32.xlu1 %v6471_v50, %s9194_s25 }
 0x4a4   : > { %2555 = vadd.xlane.f32.xlu0 %v2554_v7  ;;  %v7228_v7 = vpop.xlane.xlu1 %2420  ;;  %v7240_v60 = vpop.permute.xlu0 %2681 }
 0x4a5   : > { %9282 = vst [vmem:[#allocation80_spill] sm:$0xff] %v7228_v7  ;;  %v2608_v7 = vsel %vm2352_vm1, %v2492_v1, 0.0 }
 0x4a6   : > { %2859 = vrot.lane.b32.xlu1 %v6359_v47, %s5983_s26  ;;  %v2572_v47 = vsel %vm2352_vm1, %v7074_v55, 0.0  ;;  %v2590_v55 = vsel %vm2352_vm1, %v7124_v63, 0.0 }
 0x4a8   : > { %2561 = vadd.xlane.f32.xlu0 %v2560_v31  ;;  %v2500_v27 = vpop.permute.xlu1 %2499  ;;  %v2584_v31 = vsel %vm2352_vm1, %v7112_v45, 0.0  ;;  %v7246_v58 = vpop.permute.xlu0 %2873 }
 0x4a9   : > { %9283 = vst [vmem:[#allocation81_spill] sm:$0xff] %v7246_v58 }
 0x4aa   : > { %2887 = vrot.lane.b32.xlu1 %v6458_v37, %s5983_s26  ;;  %v2578_v37 = vsel %vm2352_vm1, %v7092_v0, 0.0  ;;  %v2596_v0 = vsel %vm2352_vm1, %v7140_v41, 0.0  ;;  %v2620_v41 = vsel %vm2352_vm1, %v2500_v27, 0.0 }
 0x4ac   : > { %2567 = vadd.xlane.f32.xlu0 %v2566_v62  ;;  %v7244_v62 = vpop.permute.xlu1 %2691 }
 0x4ae   : > { %2703 = vrot.lane.b32.xlu1 %v6485_v4, %s9194_s25 }
 0x4b0   : > { %2573 = vadd.xlane.f32.xlu0 %v2572_v47  ;;  %v7252_v47 = vpop.xlane.xlu0 %2423 }
 0x4b1   : > { %9285 = vst [vmem:[#allocation83_spill] sm:$0xff] %v7252_v47 }
 0x4b2   : > { %2863 = vrot.lane.b32.xlu1 %v6373_v57, %s5983_s26  ;;  %v7250_v57 = vpop.xlane.xlu1 %2426 }
 0x4b3   : > { %9284 = vst [vmem:[#allocation82_spill] sm:$0xff] %v7250_v57  ;;  %v9306_v57 = vld [vmem:[#allocation21_spill] sm:$0xff] }
 0x4b4   : > { %2579 = vadd.xlane.f32.xlu0 %v2578_v37  ;;  %v2602_v37 = vsel %vm2352_vm1, %v2488_v56, 0.0 }
 0x4b6   : > { %v2504_v45 = vpop.permute.xlu1 %2503 }
 0x4b7   : > { %v2626_v56 = vsel %vm2352_vm1, %v2504_v45, 0.0 }
 0x4b8   : > { %2585 = vadd.xlane.f32.xlu0 %v2584_v31  ;;  %v2494_v31 = vpop.permute.xlu0 %2493 }
 0x4ba   : > { %v7258_v58 = vpop.permute.xlu1 %2695 }
 0x4bb   : > { %9286 = vst [vmem:[#allocation84_spill] sm:$0xff] %v7258_v58 }
 0x4bc   : > { %2591 = vadd.xlane.f32.xlu0 %v2590_v55  ;;  %v7260_v63 = vpop.permute.xlu0 %2685  ;;  %v2614_v55 = vsel %vm2352_vm1, %v2496_v24, 0.0 }
 0x4bd   : > { %9287 = vst [vmem:[#allocation85_spill] sm:$0xff] %v7260_v63 }
 0x4be   : > { %v7263_v47 = vpop.xlane.xlu1 %2432 }
 0x4bf   : > { %9288 = vst [vmem:[#allocation86_spill] sm:$0xff] %v7263_v47 }
 0x4c0   : > { %2597 = vadd.xlane.f32.xlu0 %v2596_v0  ;;  %v7266_v0 = vpop.permute.xlu0 %2877 }
 0x4c1   : > { %9289 = vst [vmem:[#allocation87_spill] sm:$0xff] %v7266_v0 }
 0x4c4   : > { %2603 = vadd.xlane.f32.xlu0 %v2602_v37  ;;  %v2508_v37 = vpop.permute.xlu1 %2507  ;;  %v7269_v1 = vpop.xlane.xlu0 %2429 }
 0x4c5   : > { %9290 = vst [vmem:[#allocation88_spill] sm:$0xff] %v7269_v1  ;;  %v2632_v24 = vsel %vm2352_vm1, %v2508_v37, 0.0  ;;  %v2575_v37 = vsel %vm2352_vm1, %v7126_v53, 0.0  ;;  %v2593_v53 = vsel %vm2352_vm1, %v7182_v42, 0.0 }
 0x4c8   : > { %2609 = vadd.xlane.f32.xlu0 %v2608_v7  ;;  %v2548_v7 = vsel %vm2352_vm1, %v7024_v54, 0.0  ;;  %v2498_v27 = vpop.permute.xlu0 %2497 }
 0x4c9   : > { %v2617_v42 = vsel %vm2352_vm1, %v2498_v27, 0.0  ;;  %v2743_v27 = vsel %vm2352_vm1, %v7022_v61, 0.0 }
 0x4cc   : > { %2615 = vadd.xlane.f32.xlu0 %v2614_v55  ;;  %v2557_v55 = vsel %vm2352_vm1, %v7044_v43, 0.0  ;;  %v7278_v45 = vpop.permute.xlu0 %2689 }
 0x4cd   : > { %9291 = vst [vmem:[#allocation89_spill] sm:$0xff] %v7278_v45 }
 0x4d0   : > { %2621 = vadd.xlane.f32.xlu0 %v2620_v41  ;;  %v2563_v41 = vsel %vm2352_vm1, %v7080_v13, 0.0 }
 0x4d4   : > { %2627 = vadd.xlane.f32.xlu0 %v2626_v56  ;;  %v2569_v56 = vsel %vm2352_vm1, %v7110_v26, 0.0  ;;  %v2587_v26 = vsel %vm2352_vm1, %v7164_v9, 0.0  ;;  %v2611_v9 = vsel %vm2352_vm1, %v2494_v31, 0.0 }
 0x4d6   : > { %2549 = vadd.xlane.f32.xlu1 %v2548_v7  ;;  %v7286_v7 = vpop.permute.xlu0 %2881 }
 0x4d7   : > { %9293 = vst [vmem:[#allocation91_spill] sm:$0xff] %v7286_v7 }
 0x4d8   : > { %2633 = vadd.xlane.f32.xlu0 %v2632_v24  ;;  %v2581_v24 = vsel %vm2352_vm1, %v7146_v40, 0.0  ;;  %v2605_v40 = vsel %vm2352_vm1, %v7230_v33, 0.0 }
 0x4da   : > { %2558 = vadd.xlane.f32.xlu1 %v2557_v55  ;;  %v7290_v13 = vpop.xlane.xlu0 %2435 }
 0x4db   : > { %9294 = vst [vmem:[#allocation92_spill] sm:$0xff] %v7290_v13 }
 0x4de   : > { %2564 = vadd.xlane.f32.xlu1 %v2563_v41  ;;  %v2502_v41 = vpop.permute.xlu0 %2501 }
 0x4df   : > { %v2623_v33 = vsel %vm2352_vm1, %v2502_v41, 0.0  ;;  %v5837_v41 = vld [vmem:[%s9172_s10] ss:$0 sm:$0xff] }
 0x4e0   : > { %v7344_v61 = vadd.f32 %v5837_v41, %v6583_v18  ;;  %v9301_v18 = vld [vmem:[#allocation17_spill] sm:$0xff] }
 0x4e2   : > { %2570 = vadd.xlane.f32.xlu1 %v2569_v56  ;;  %v2599_v56 = vsel %vm2352_vm1, %v7198_v48, 0.0 }
 0x4e5   : > { %v7282_v54 = vpop.xlane.xlu1 %2438 }
 0x4e6   : > { %9292 = vst [vmem:[#allocation90_spill] sm:$0xff] %v7282_v54  ;;  %2576 = vadd.xlane.f32.xlu1 %v2575_v37  ;;  %v7299_v37 = vpop.permute.xlu0 %2693 }
 0x4e7   : > { %9295 = vst [vmem:[#allocation93_spill] sm:$0xff] %v7299_v37 }
 0x4e9   : > { %v2512_v43 = vpop.permute.xlu1 %2511 }
 0x4ea   : > { %2582 = vadd.xlane.f32.xlu1 %v2581_v24  ;;  %v2638_v55 = vsel %vm2352_vm1, %v2512_v43, 0.0  ;;  %v7303_v43 = vpop.xlane.xlu0 %2441 }
 0x4eb   : > { %2639 = vadd.xlane.f32.xlu0 %v2638_v55  ;;  %9296 = vst [vmem:[#allocation94_spill] sm:$0xff] %v7303_v43 }
 0x4ee   : > { %2588 = vadd.xlane.f32.xlu1 %v2587_v26  ;;  %v2506_v24 = vpop.permute.xlu0 %2505 }
 0x4ef   : > { %v2629_v55 = vsel %vm2352_vm1, %v2506_v24, 0.0  ;;  %v9300_v24 = vld [vmem:[#allocation16_spill] sm:$0xff] }
 0x4f2   : > { %2594 = vadd.xlane.f32.xlu1 %v2593_v53  ;;  %v7309_v48 = vpop.xlane.xlu0 %2447  ;;  %v7330_v53 = vadd.f32 %v5837_v41, %v6571_v16  ;;  %v7350_v16 = vadd.f32 %v5837_v41, %v6587_v20 }
 0x4f3   : > { %9297 = vst [vmem:[#allocation95_spill] sm:$0xff] %v7309_v48  ;;  %v9305_v48 = vld [vmem:[#allocation20_spill] sm:$0xff] }
 0x4f4   : > { %v7381_v43 = vadd.f32 %v5837_v41, %v9305_v48  ;;  %v2251_v37 = vrot.slane %v7330_v53, 5 }
 0x4f6   : > { %2600 = vadd.xlane.f32.xlu1 %v2599_v56  ;;  %v2510_v26 = vpop.permute.xlu0 %2509  ;;  %v7341_v56 = vadd.f32 %v5837_v41, %v6579_v10 }
 0x4f7   : > { %v2635_v31 = vsel %vm2352_vm1, %v2510_v26, 0.0  ;;  %v9303_v26 = vld [vmem:[#allocation18_spill] sm:$0xff] }
 0x4f8   : > { %v2122_v45 = vrot.slane %v7341_v56, 7 }
 0x4fa   : > { %2606 = vadd.xlane.f32.xlu1 %v2605_v40  ;;  %v7347_v40 = vadd.f32 %v5837_v41, %v6573_v17 }
 0x4fe   : > { %2612 = vadd.xlane.f32.xlu1 %v2611_v9  ;;  %v2285_v9 = vrot.slane %v7330_v53, 6 }
 0x501   : > { %2889 = vrot.lane.b32.xlu0 %v6475_v51, %s5983_s26  ;;  %v2737_v51 = vsel %vm2352_vm1, %v7000_v52, 0.0  ;;  %v7338_v52 = vadd.f32 %v5837_v41, %v6567_v3  ;;  %v7357_v3 = vadd.f32 %v5837_v41, %v6591_v23  ;;  %v2291_v23 = vrot.slane %v7344_v61, 3 }
 0x502   : > { %2618 = vadd.xlane.f32.xlu1 %v2617_v42  ;;  %v7361_v42 = vadd.f32 %v5837_v41, %v9300_v24  ;;  %v2293_v24 = vrot.slane %v7350_v16, 2 }
 0x503   : > { %v2284_v20 = vrot.slane %v7338_v52, 7  ;;  %v2295_v1 = vrot.slane %v7357_v3, 1 }
 0x504   : > { %v1838_v7 = vrot.slane %v7361_v42, 2 }
 0x505   : > { %2893 = vrot.lane.b32.xlu0 %v6489_v5, %s5983_s26  ;;  %v7322_v5 = vpop.permute.xlu0 %2697 }
 0x506   : > { %2624 = vadd.xlane.f32.xlu1 %v2623_v33  ;;  %9298 = vst [vmem:[#allocation96_spill] sm:$0xff] %v7322_v5  ;;  %v7364_v33 = vadd.f32 %v5837_v41, %v9301_v18  ;;  %v2005_v18 = vrot.slane %v7347_v40, 6  ;;  %v2015_v5 = vrot.slane %v7381_v43, 1 }
 0x508   : > { %v2009_v47 = vrot.slane %v7364_v33, 4 }
 0x50a   : > { %2630 = vadd.xlane.f32.xlu1 %v2629_v55  ;;  %v2289_v55 = vrot.slane %v7341_v56, 4 }
 0x50e   : > { %2636 = vadd.xlane.f32.xlu1 %v2635_v31  ;;  %v9304_v31 = vld [vmem:[#allocation19_spill] sm:$0xff] }
 0x51f   : > { %2891 = vrot.lane.b32.xlu1 %v6471_v50, %s5983_s26  ;;  %v7332_v50 = vpop.permute.xlu0 %2857 }
 0x520   : > { %9299 = vst [vmem:[#allocation97_spill] sm:$0xff] %v7332_v50 }
 0x523   : > { %2895 = vrot.lane.b32.xlu1 %v6485_v4, %s5983_s26  ;;  %v7335_v4 = vadd.f32 %v5837_v41, %v6575_v6  ;;  %v7354_v6 = vadd.f32 %v5837_v41, %v6577_v8  ;;  %v7366_v17 = vpop.permute.xlu0 %2885  ;;  %v7371_v8 = vadd.f32 %v5837_v41, %v9303_v26 }
 0x524   : > { %2738 = vadd.xlane.f32.xlu0 %v2737_v51  ;;  %9302 = vst [vmem:[#allocation16_spill] sm:$0xff] %v7366_v17  ;;  %v7375_v51 = vadd.f32 %v5837_v41, %v9304_v31  ;;  %v2004_v31 = vrot.slane %v7361_v42, 7  ;;  %v7392_v17 = vadd.f32 %v5837_v41, %v9306_v57 }
 0x525   : > { %v2287_v10 = vrot.slane %v7335_v4, 5  ;;  %v2007_v26 = vrot.slane %v7354_v6, 5 }
 0x526   : > { %v2013_v50 = vrot.slane %v7375_v51, 2 }
 0x527   : > { %v7394_v48 = vpop.permute.xlu0 %2701 }
 0x528   : > { %2744 = vadd.xlane.f32.xlu0 %v2743_v27  ;;  %v2286_v27 = vsel %vm1768_vm2, %v2285_v9, %v2284_v20  ;;  %v2011_v20 = vrot.slane %v7371_v8, 3  ;;  %9307 = vst [vmem:[#allocation17_spill] sm:$0xff] %v7394_v48  ;;  %v2118_v48 = vrot.slane %v7338_v52, 2 }
 0x529   : > { %v2288_v13 = vsel %vm1771_vm3, %v2287_v10, %v2286_v27  ;;  %v2006_v27 = vsel %vm1768_vm2, %v2005_v18, %v2004_v31  ;;  %v2086_v31 = vrot.slane %v7335_v4, 7 }
 0x52a   : > { %v2290_v54 = vsel %vm1774_vm4, %v2289_v55, %v2288_v13  ;;  %v2008_v55 = vsel %vm1771_vm3, %v2007_v26, %v2006_v27  ;;  %v2216_v26 = vrot.slane %v7338_v52, 5  ;;  %v2088_v27 = vrot.slane %v7341_v56, 6 }
 0x52b   : > { %v2292_v9 = vsel %vm1777_vm5, %v2291_v23, %v2290_v54  ;;  %v2740_v54 = vsel %vm2352_vm1, %v7028_v38, 0.0  ;;  %v2010_v57 = vsel %vm1774_vm4, %v2009_v47, %v2008_v55  ;;  %v2084_v23 = vrot.slane %v7338_v52, 1 }
 0x52c   : > { %v2294_v10 = vsel %vm1780_vm6, %v2293_v24, %v2292_v9  ;;  %v2152_v24 = vrot.slane %v7338_v52, 3  ;;  %v2012_v18 = vsel %vm1777_vm5, %v2011_v20, %v2010_v57  ;;  %v9308_v9 = vld [vmem:[#allocation22_spill] sm:$0xff]  ;;  %v2090_v55 = vrot.slane %v7344_v61, 5 }
 0x52d   : > { %v2296_v13 = vsel %vm1783_vm7, %v2295_v1, %v2294_v10  ;;  %v2119_v1 = vrot.slane %v7330_v53, 1  ;;  %v7413_v10 = vadd.f32 %v5837_v41, %v9308_v9  ;;  %v2014_v47 = vsel %vm1780_vm6, %v2013_v50, %v2012_v18  ;;  %v7424_v41 = vpop.permute.xlu0 %2861 }
 0x52e   : > { %v2297_v38 = vsel %vm1786_vm8, %v7392_v17, %v2296_v13  ;;  %v2016_v20 = vsel %vm1783_vm7, %v2015_v5, %v2014_v47  ;;  %v2250_v57 = vrot.slane %v7338_v52, 6  ;;  %9309 = vst [vmem:[#allocation18_spill] sm:$0xff] %v7424_v41  ;;  %v2085_v13 = vsel %vm1768_vm2, %v7330_v53, %v2084_v23 }
 0x52f   : > { %v2092_v50 = vrot.slane %v7350_v16, 4  ;;  %v2153_v18 = vrot.slane %v7330_v53, 2  ;;  %v2217_v9 = vrot.slane %v7330_v53, 4  ;;  %v2094_v5 = vrot.slane %v7357_v3, 3 }
 0x530   : > { %v2120_v47 = vsel %vm1768_vm2, %v2119_v1, %v2118_v48  ;;  %v2017_v41 = vsel %vm1786_vm8, %v7413_v10, %v2016_v20  ;;  %v2096_v23 = vrot.slane %v7392_v17, 2  ;;  %v1839_v48 = vrot.slane %v7347_v40, 1 }
 0x531   : > { %v7445_v1 = vpop.xlane.xlu0 %2546  ;;  %v2218_v63 = vsel %vm1768_vm2, %v2217_v9, %v2216_v26  ;;  %v2252_v29 = vsel %vm1768_vm2, %v2251_v37, %v2250_v57  ;;  %v2253_v9 = vrot.slane %v7335_v4, 4  ;;  %v2221_v57 = vrot.slane %v7341_v56, 2 }
 0x532   : > { %9310 = vst [vmem:[#allocation19_spill] sm:$0xff] %v7445_v1 }
 0x53e   : > { %2312 = vrot.lane.b32.xlu0 %v2297_v38, %s9189_s24  ;;  %v2087_v38 = vsel %vm1771_vm3, %v2086_v31, %v2085_v13  ;;  %v2124_v31 = vrot.slane %v7344_v61, 6  ;;  %v2155_v13 = vrot.slane %v7335_v4, 1 }
 0x53f   : > { %v2089_v0 = vsel %vm1774_vm4, %v2088_v27, %v2087_v38  ;;  %v2126_v27 = vrot.slane %v7350_v16, 5  ;;  %v2154_v38 = vsel %vm1768_vm2, %v2153_v18, %v2152_v24  ;;  %v2158_v18 = vrot.slane %v7344_v61, 7 }
 0x540   : > { %v2091_v58 = vsel %vm1777_vm5, %v2090_v55, %v2089_v0  ;;  %v2121_v0 = vsel %vm1771_vm3, %v7335_v4, %v2120_v47  ;;  %v2128_v55 = vrot.slane %v7357_v3, 4  ;;  %v2156_v26 = vsel %vm1771_vm3, %v2155_v13, %v2154_v38  ;;  %v7469_v47 = vpop.xlane.xlu1 %2444 }
 0x541   : > { %v2093_v20 = vsel %vm1780_vm6, %v2092_v50, %v2091_v58  ;;  %v2123_v1 = vsel %vm1774_vm4, %v2122_v45, %v2121_v0  ;;  %v2130_v58 = vrot.slane %v7392_v17, 3  ;;  %v2219_v50 = vrot.slane %v7335_v4, 3  ;;  %9311 = vst [vmem:[#allocation20_spill] sm:$0xff] %v7469_v47 }
 0x542   : > { %2032 = vrot.lane.b32.xlu0 %v2017_v41, %s9189_s24  ;;  %v2095_v41 = vsel %vm1783_vm7, %v2094_v5, %v2093_v20  ;;  %v2125_v24 = vsel %vm1777_vm5, %v2124_v31, %v2123_v1  ;;  %v2160_v45 = vrot.slane %v7350_v16, 6  ;;  %v2255_v5 = vrot.slane %v7341_v56, 3  ;;  %v7475_v1 = vpop.xlane.xlu0 %2552 }
 0x543   : > { %v2097_v46 = vsel %vm1786_vm8, %v2096_v23, %v2095_v41  ;;  %v2127_v37 = vsel %vm1780_vm6, %v2126_v27, %v2125_v24  ;;  %v2162_v23 = vrot.slane %v7357_v3, 5  ;;  %v2223_v31 = vrot.slane %v7344_v61, 1 }
 0x544   : > { %v2257_v13 = vrot.slane %v7344_v61, 2  ;;  %v2157_v20 = vsel %vm1774_vm4, %v7341_v56, %v2156_v26  ;;  %v2164_v27 = vrot.slane %v7392_v17, 4  ;;  %v2259_v38 = vrot.slane %v7350_v16, 1 }
 0x545   : > { %v2159_v41 = vsel %vm1777_vm5, %v2158_v18, %v2157_v20  ;;  %v2220_v0 = vsel %vm1771_vm3, %v2219_v50, %v2218_v63  ;;  %v1840_v26 = vsel %vm1768_vm2, %v1839_v48, %v1838_v7  ;;  %v2262_v7 = vrot.slane %v7392_v17, 7 }
 0x546   : > { %2112 = vrot.lane.b32.xlu0 %v2097_v46, %s9191_s29  ;;  %v2129_v46 = vsel %vm1783_vm7, %v2128_v55, %v2127_v37  ;;  %v2254_v55 = vsel %vm1771_vm3, %v2253_v9, %v2252_v29  ;;  %v2161_v24 = vsel %vm1780_vm6, %v2160_v45, %v2159_v41  ;;  %v2228_v29 = vrot.slane %v7392_v17, 6  ;;  %v7497_v9 = vpop.permute.xlu1 %2883 }
 0x547   : > { %2741 = vadd.xlane.f32.xlu1 %v2740_v54  ;;  %v2131_v54 = vsel %vm1786_vm8, %v2130_v58, %v2129_v46  ;;  %v2222_v58 = vsel %vm1774_vm4, %v2221_v57, %v2220_v0  ;;  %v2256_v37 = vsel %vm1774_vm4, %v2255_v5, %v2254_v55  ;;  %v2163_v46 = vsel %vm1783_vm7, %v2162_v23, %v2161_v24  ;;  %v7504_v5 = vpop.xlane.xlu0 %2555 }
 0x548   : > { %v2224_v47 = vsel %vm1777_vm5, %v2223_v31, %v2222_v58  ;;  %v2258_v18 = vsel %vm1777_vm5, %v2257_v13, %v2256_v37  ;;  %v2165_v63 = vsel %vm1786_vm8, %v2164_v27, %v2163_v46  ;;  %v1842_v48 = vrot.slane %v7364_v33, 7 }
 0x549   : > { %v2260_v50 = vsel %vm1780_vm6, %v2259_v38, %v2258_v18  ;;  %v1804_v45 = vrot.slane %v7361_v42, 1  ;;  %v1872_v57 = vrot.slane %v7361_v42, 3  ;;  %v2225_v23 = vsel %vm1780_vm6, %v7350_v16, %v2224_v47 }
 0x54a   : > { %2146 = vrot.lane.b32.xlu0 %v2131_v54, %s9187_s22  ;;  %v2226_v54 = vrot.slane %v7357_v3, 7  ;;  %v1841_v31 = vsel %vm1771_vm3, %v7354_v6, %v1840_v26  ;;  %v1844_v13 = vrot.slane %v7371_v8, 6  ;;  %v1936_v20 = vrot.slane %v7361_v42, 5 }
 0x54b   : > { %v2261_v38 = vsel %vm1783_vm7, %v7357_v3, %v2260_v50  ;;  %v1846_v41 = vrot.slane %v7375_v51, 5  ;;  %v1806_v0 = vrot.slane %v7354_v6, 7  ;;  %v1848_v47 = vrot.slane %v7381_v43, 4 }
 0x54c   : > { %v2227_v27 = vsel %vm1783_vm7, %v2226_v54, %v2225_v23  ;;  %v1808_v24 = vrot.slane %v7364_v33, 6  ;;  %v1873_v58 = vrot.slane %v7347_v40, 2  ;;  %v2263_v37 = vsel %vm1786_vm8, %v2262_v7, %v2261_v38  ;;  %v7531_v23 = vpop.permute.xlu1 %2699  ;;  %v7537_v38 = vpop.xlane.xlu0 %2561 }
 0x54d   : > { %v2229_v55 = vsel %vm1786_vm8, %v2228_v29, %v2227_v27  ;;  %v1843_v26 = vsel %vm1774_vm4, %v1842_v48, %v1841_v31  ;;  %v1810_v46 = vrot.slane %v7371_v8, 5  ;;  %v1875_v54 = vrot.slane %v7354_v6, 1  ;;  %9312 = vst [vmem:[#allocation21_spill] sm:$0xff] %v7537_v38 }
 0x54e   : > { %2180 = vrot.lane.b32.xlu0 %v2165_v63, %s9189_s24  ;;  %v1845_v18 = vsel %vm1777_vm5, %v1844_v13, %v1843_v26  ;;  %v1850_v63 = vrot.slane %v7413_v10, 3  ;;  %v1805_v29 = vsel %vm1768_vm2, %v7347_v40, %v1804_v45  ;;  %v1812_v50 = vrot.slane %v7375_v51, 4 }
 0x54f   : > { %v1847_v27 = vsel %vm1780_vm6, %v1846_v41, %v1845_v18  ;;  %v1807_v7 = vsel %vm1771_vm3, %v1806_v0, %v1805_v29  ;;  %v1814_v48 = vrot.slane %v7381_v43, 3  ;;  %v1816_v31 = vrot.slane %v7413_v10, 2 }
 0x550   : > { %v1849_v13 = vsel %vm1783_vm7, %v1848_v47, %v1847_v27  ;;  %v1874_v45 = vsel %vm1768_vm2, %v1873_v58, %v1872_v57  ;;  %v1937_v26 = vrot.slane %v7347_v40, 4  ;;  %v1878_v18 = vrot.slane %v7371_v8, 7 }
 0x551   : > { %v1876_v0 = vsel %vm1771_vm3, %v1875_v54, %v1874_v45  ;;  %v1939_v29 = vrot.slane %v7354_v6, 3  ;;  %v1851_v38 = vsel %vm1786_vm8, %v1850_v63, %v1849_v13  ;;  %v1941_v57 = vrot.slane %v7364_v33, 2  ;;  %v7562_v13 = vpop.permute.xlu1 %2859  ;;  %v7568_v45 = vpop.xlane.xlu0 %2567 }
 0x552   : > { %2244 = vrot.lane.b32.xlu0 %v2229_v55, %s9191_s29  ;;  %v1809_v55 = vsel %vm1774_vm4, %v1808_v24, %v1807_v7  ;;  %v1880_v24 = vrot.slane %v7375_v51, 6  ;;  %v1943_v54 = vrot.slane %v7371_v8, 1  ;;  %v1877_v63 = vsel %vm1774_vm4, %v7364_v33, %v1876_v0  ;;  %9313 = vst [vmem:[#allocation22_spill] sm:$0xff] %v7568_v45 }
 0x553   : > { %v1811_v41 = vsel %vm1777_vm5, %v1810_v46, %v1809_v55  ;;  %v1884_v46 = vrot.slane %v7413_v10, 4  ;;  %v1971_v7 = vrot.slane %v7347_v40, 5  ;;  %v1973_v55 = vrot.slane %v7354_v6, 4 }
 0x554   : > { %v1813_v47 = vsel %vm1780_vm6, %v1812_v50, %v1811_v41  ;;  %v1938_v50 = vsel %vm1768_vm2, %v1937_v26, %v1936_v20  ;;  %v1970_v20 = vrot.slane %v7361_v42, 6  ;;  %v1975_v26 = vrot.slane %v7364_v33, 3 }
 0x555   : > { %v1815_v58 = vsel %vm1783_vm7, %v1814_v48, %v1813_v47  ;;  %v1879_v48 = vsel %vm1777_vm5, %v1878_v18, %v1877_v63  ;;  %v1946_v18 = vrot.slane %v7381_v43, 7 }
 0x556   : > { %2278 = vrot.lane.b32.xlu0 %v2263_v37, %s9187_s22  ;;  %v1882_v37 = vrot.slane %v7381_v43, 5  ;;  %v1817_v27 = vsel %vm1786_vm8, %v1816_v31, %v1815_v58  ;;  %v1881_v31 = vsel %vm1780_vm6, %v1880_v24, %v1879_v48  ;;  %v1972_v24 = vsel %vm1768_vm2, %v1971_v7, %v1970_v20 }
 0x557   : > { %v1974_v63 = vsel %vm1771_vm3, %v1973_v55, %v1972_v24 }
 0x558   : > { %1866 = vrot.lane.b32.xlu1 %v1851_v38, %s9187_s22  ;;  %v1940_v38 = vsel %vm1771_vm3, %v1939_v29, %v1938_v50  ;;  %v1883_v0 = vsel %vm1783_vm7, %v1882_v37, %v1881_v31  ;;  %v1977_v29 = vrot.slane %v7371_v8, 2  ;;  %v7587_v50 = vpop.permute.xlu1 %2887 }
 0x559   : > { %v1942_v41 = vsel %vm1774_vm4, %v1941_v57, %v1940_v38  ;;  %v1885_v58 = vsel %vm1786_vm8, %v1884_v46, %v1883_v0  ;;  %v1979_v57 = vrot.slane %v7375_v51, 1  ;;  %v7591_v38 = vpop.xlane.xlu0 %2573 }
 0x55a   : > { %1832 = vrot.lane.b32.xlu0 %v1817_v27, %s9191_s29  ;;  %v1944_v47 = vsel %vm1777_vm5, %v1943_v54, %v1942_v41  ;;  %v1948_v27 = vrot.slane %v7413_v10, 6  ;;  %v1976_v54 = vsel %vm1774_vm4, %v1975_v26, %v1974_v63  ;;  %9314 = vst [vmem:[#allocation98_spill] sm:$0xff] %v7591_v38  ;;  %v1982_v41 = vrot.slane %v7413_v10, 7 }
 0x55b   : > { %v1945_v37 = vsel %vm1780_vm6, %v7375_v51, %v1944_v47  ;;  %v1978_v46 = vsel %vm1777_vm5, %v1977_v29, %v1976_v54  ;;  %v2785_v54 = vsel %vm2352_vm1, %v7184_v39, 0.0  ;;  %v2752_v39 = vsel %vm2352_vm1, %v7030_v15, 0.0 }
 0x55c   : > { %v1947_v48 = vsel %vm1783_vm7, %v1946_v18, %v1945_v37  ;;  %v1980_v31 = vsel %vm1780_vm6, %v1979_v57, %v1978_v46  ;;  %v7600_v26 = vpop.permute.xlu1 %2703  ;;  %v2749_v57 = vsel %vm2352_vm1, %v7048_v36, 0.0  ;;  %v2791_v46 = vsel %vm2352_vm1, %v7202_v11, 0.0 }
 0x55d   : > { %v1949_v7 = vsel %vm1786_vm8, %v1948_v27, %v1947_v48  ;;  %v1981_v55 = vsel %vm1783_vm7, %v7381_v43, %v1980_v31  ;;  %v7603_v0 = vpop.xlane.xlu0 %2579  ;;  %v2929_v36 = vsel %vm2352_vm1, %v7034_v35, 0.0  ;;  %v2935_v11 = vsel %vm2352_vm1, %v7056_v14, 0.0 }
 0x55e   : > { %1900 = vrot.lane.b32.xlu0 %v1885_v58, %s9189_s24  ;;  %v1983_v20 = vsel %vm1786_vm8, %v1982_v41, %v1981_v55  ;;  %9315 = vst [vmem:[#allocation99_spill] sm:$0xff] %v7603_v0  ;;  %v2755_v35 = vsel %vm2352_vm1, %v7088_v49, 0.0  ;;  %v2794_v15 = vsel %vm2352_vm1, %v7168_v34, 0.0  ;;  %v2932_v14 = vsel %vm2352_vm1, %v7002_v44, 0.0  ;;  %v9327_v34 = vld [vmem:[#allocation23_spill] sm:$0xff]  ;;  %v9330_v44 = vld [vmem:[#allocation25_spill] sm:$0xff] }
 0x55f   : > { %v9338_v0 = vld [vmem:[#allocation32_spill] sm:$0xff] }
 0x560   : > { %v7605_v47 = vpop.permute.xlu1 %2863 }
 0x561   : > { %v7607_v18 = vpop.xlane.xlu0 %2585 }
 0x562   : > { %1964 = vrot.lane.b32.xlu0 %v1949_v7, %s9191_s29  ;;  %9316 = vst [vmem:[#allocation100_spill] sm:$0xff] %v7607_v18  ;;  %v2746_v7 = vsel %vm2352_vm1, %v7026_v25, 0.0  ;;  %v2788_v25 = vsel %vm2352_vm1, %v7144_v2, 0.0  ;;  %v9334_v18 = vld [vmem:[#allocation29_spill] sm:$0xff] }
 0x564   : > { %v7609_v29 = vpop.xlane.xlu1 %2549 }
 0x565   : > { %v7611_v58 = vpop.xlane.xlu0 %2591 }
 0x566   : > { %1998 = vrot.lane.b32.xlu0 %v1983_v20, %s9187_s22  ;;  %9317 = vst [vmem:[#allocation101_spill] sm:$0xff] %v7611_v58 }
 0x568   : > { %v7613_v27 = vpop.xlane.xlu1 %2558 }
 0x569   : > { %v7615_v24 = vpop.xlane.xlu0 %2597 }
 0x56a   : > { %9318 = vst [vmem:[#allocation102_spill] sm:$0xff] %v7615_v24  ;;  %v5987_v24 = vmov 0  }
 0x56b   : > { %5789 = vset.pattern.permute.xlu0 %v5987_v24  ;;  %5788 = vset.pattern.permute.xlu1 %v5987_v24 }
 0x56c   : > { %v7619_v63 = vpop.xlane.xlu1 %2564 }
 0x56d   : > { %v7621_v37 = vpop.xlane.xlu0 %2603 }
 0x56e   : > { %9319 = vst [vmem:[#allocation103_spill] sm:$0xff] %v7621_v37  ;;  %v2187_v37 = vrot.slane %v7330_v53, 3 }
 0x570   : > { %v7625_v48 = vpop.xlane.xlu1 %2570 }
 0x571   : > { %v7631_v31 = vpop.xlane.xlu0 %2609 }
 0x572   : > { %9320 = vst [vmem:[#allocation104_spill] sm:$0xff] %v7631_v31  ;;  %v2064_v31 = vrot.slane %v7357_v3, 2 }
 0x574   : > { %v7635_v41 = vpop.xlane.xlu1 %2576 }
 0x575   : > { %v7639_v55 = vpop.xlane.xlu0 %2615 }
 0x576   : > { %9321 = vst [vmem:[#allocation105_spill] sm:$0xff] %v7639_v55  ;;  %v2058_v55 = vrot.slane %v7341_v56, 5 }
 0x578   : > { %v7645_v20 = vpop.xlane.xlu1 %2582 }
 0x579   : > { %9322 = vst [vmem:[#allocation106_spill] sm:$0xff] %v7645_v20  ;;  %v2066_v20 = vrot.slane %v7392_v17, 1 }
 0x57c   : > { %2750 = vadd.xlane.f32.xlu1 %v2749_v57  ;;  %v7651_v57 = vpop.xlane.xlu0 %2621 }
 0x57d   : > { %9323 = vst [vmem:[#allocation107_spill] sm:$0xff] %v7651_v57 }
 0x580   : > { %2786 = vadd.xlane.f32.xlu1 %v2785_v54  ;;  %v7653_v54 = vpop.xlane.xlu1 %2588  ;;  %v7657_v2 = vpop.xlane.xlu0 %2627 }
 0x581   : > { %9324 = vst [vmem:[#allocation108_spill] sm:$0xff] %v7653_v54  ;;  %9325 = vst [vmem:[#allocation109_spill] sm:$0xff] %v7657_v2  ;;  %v9333_v2 = vld [vmem:[#allocation28_spill] sm:$0xff] }
 0x584   : > { %2792 = vadd.xlane.f32.xlu1 %v2791_v46  ;;  %v2938_v46 = vsel %vm2352_vm1, %v7036_v30, 0.0  ;;  %v7661_v49 = vpop.xlane.xlu1 %2594 }
 0x585   : > { %2747 = vadd.xlane.f32.xlu0 %v2746_v7  ;;  %v7663_v7 = vpop.xlane.xlu0 %2633 }
 0x586   : > { %9326 = vst [vmem:[#allocation110_spill] sm:$0xff] %v7663_v7 }
 0x588   : > { %2930 = vadd.xlane.f32.xlu1 %v2929_v36  ;;  %v2276_v36 = vrot.slane %v9327_v34, 7 }
 0x589   : > { %2753 = vadd.xlane.f32.xlu0 %v2752_v39  ;;  %v7666_v39 = vpop.xlane.xlu1 %2600 }
 0x58c   : > { %2936 = vadd.xlane.f32.xlu1 %v2935_v11  ;;  %v9328_v11 = vld [vmem:[#allocation24_spill] sm:$0xff] }
 0x58d   : > { %2789 = vadd.xlane.f32.xlu0 %v2788_v25  ;;  %v2277_v25 = vsel %vm1786_vm8, %v2276_v36, %v9328_v11  ;;  %v7675_v30 = vpop.xlane.xlu1 %2606  ;;  %v2144_v36 = vrot.slane %v9327_v34, 3 }
 0x590   : > { %2756 = vadd.xlane.f32.xlu1 %v2755_v35  ;;  %v7670_v35 = vpop.xlane.xlu0 %2639 }
 0x591   : > { %2795 = vadd.xlane.f32.xlu0 %v2794_v15  ;;  %9329 = vst [vmem:[#allocation23_spill] sm:$0xff] %v7670_v35  ;;  %v2110_v15 = vrot.slane %v9327_v34, 2  ;;  %v7684_v11 = vpop.xlane.xlu1 %2612  ;;  %v9332_v35 = vld [vmem:[#allocation27_spill] sm:$0xff] }
 0x595   : > { %2933 = vadd.xlane.f32.xlu0 %v2932_v14  ;;  %v7678_v14 = vpop.permute.xlu0 %2889 }
 0x599   : > { %2939 = vadd.xlane.f32.xlu0 %v2938_v46  ;;  %v9331_v46 = vld [vmem:[#allocation26_spill] sm:$0xff]  ;;  %v7688_v58 = vpop.permute.xlu0 %2893 }
 0x59a   : > { %v2111_v7 = vsel %vm1786_vm8, %v2110_v15, %v9331_v46  ;;  %v7699_v46 = vpop.xlane.xlu1 %2618 }
 0x59e   : > { %v7707_v54 = vpop.xlane.xlu1 %2624 }
 0x59f   : > { %9336 = vst [vmem:[#allocation24_spill] sm:$0xff] %v7707_v54 }
 0x5a1   : > { %2280 = vrot.lane.b32.xlu1 %v2277_v25, %s9187_s22  ;;  %v2145_v25 = vsel %vm1786_vm8, %v2144_v36, %v9332_v35  ;;  %v2242_v35 = vrot.slane %v9327_v34, 6  ;;  %v9335_v36 = vld [vmem:[#allocation30_spill] sm:$0xff] }
 0x5a3   : > { %v2243_v57 = vsel %vm1786_vm8, %v2242_v35, %v9335_v36  ;;  %v2054_v35 = vrot.slane %v7330_v53, 7  ;;  %v7720_v36 = vpop.xlane.xlu1 %2630 }
 0x5a4   : > { %9339 = vst [vmem:[#allocation25_spill] sm:$0xff] %v7720_v36 }
 0x5a5   : > { %2000 = vrot.lane.b32.xlu1 %v9330_v44, %s9187_s22  ;;  %v2178_v44 = vrot.slane %v9327_v34, 4  ;;  %v2055_v38 = vsel %vm1768_vm2, %v2054_v35, %v7338_v52 }
 0x5a7   : > { %v2179_v15 = vsel %vm1786_vm8, %v2178_v44, %v9334_v18  ;;  %v7737_v45 = vpop.xlane.xlu1 %2636 }
 0x5a9   : > { %2114 = vrot.lane.b32.xlu1 %v2111_v7, %s9191_s29 }
 0x5ad   : > { %2148 = vrot.lane.b32.xlu1 %v2145_v25, %s9187_s22 }
 0x5af   : > { %1834 = vrot.lane.b32.xlu0 %v9333_v2, %s9191_s29  ;;  %v9337_v2 = vld [vmem:[#allocation31_spill] sm:$0xff] }
 0x5b0   : > { %v2311_v18 = vsel %vm1786_vm8, %v9327_v34, %v9337_v2  ;;  %v2060_v2 = vrot.slane %v7344_v61, 4 }
 0x5b1   : > { %v7696_v7 = vpop.xlane.xlu0 %2738  ;;  %2182 = vrot.lane.b32.xlu1 %v2179_v15, %s9189_s24 }
 0x5b5   : > { %v7704_v25 = vpop.xlane.xlu0 %2744  ;;  %2246 = vrot.lane.b32.xlu1 %v2243_v57, %s9191_s29  ;;  %v2056_v57 = vrot.slane %v7335_v4, 6 }
 0x5b9   : > { %v7712_v44 = vpop.permute.xlu0 %2312  ;;  %2314 = vrot.lane.b32.xlu1 %v2311_v18, %s9189_s24  ;;  %v2062_v18 = vrot.slane %v7350_v16, 3 }
 0x5bd   : > { %v7715_v15 = vpop.permute.xlu0 %2032  ;;  %1868 = vrot.lane.b32.xlu1 %v9338_v0, %s9187_s22  ;;  %v2057_v0 = vsel %vm1771_vm3, %v2056_v57, %v2055_v38  ;;  %s7761_s22 = scalar_lea.vmem [#allocation4], %s5204_s27  ;;  %s5991_s27 = smov 48  }
 0x5be   : > { %v2059_v36 = vsel %vm1774_vm4, %v2058_v55, %v2057_v0  ;;  %v2189_v55 = vrot.slane %v7335_v4, 2  ;;  %v2186_v0 = vrot.slane %v7338_v52, 4  ;;  %s4970_s1 = sshll.u32 %s7761_s22, 4  ;;  %s9053_s1 = int_to_ptr.vmem [resolvable:$true] %s4970_s1 }
 0x5bf   : > { %v2061_v35 = vsel %vm1777_vm5, %v2060_v2, %v2059_v36  ;;  %v2191_v36 = vrot.slane %v7341_v56, 1  ;;  %s5840_s2 = scalar_lea.vmem %s9053_s1, 1024 }
 0x5c0   : > { %v2188_v2 = vsel %vm1768_vm2, %v2187_v37, %v2186_v0  ;;  %v2196_v37 = vrot.slane %v7357_v3, 6  ;;  %v1773_v3 = vrot.slane %v7364_v33, 5  ;;  %p5841_p12 = scmp.ne.s32.totalorder %s9053_s1, %s5840_s2 }
 0x5c1   : > { %v2113_v54 = vpop.permute.xlu0 %2112  ;;  %1902 = vrot.lane.b32.xlu1 %v6821_v19, %s9189_s24  ;;  %v2063_v19 = vsel %vm1780_vm6, %v2062_v18, %v2061_v35  ;;  %v2190_v4 = vsel %vm1771_vm3, %v2189_v55, %v2188_v2  ;;  %v1767_v55 = vrot.slane %v7347_v40, 7  ;;  %v2800_v2 = vsel %vm2352_vm1, %v7188_v21, 0.0 }
 0x5c2   : > { %v2065_v57 = vsel %vm1783_vm7, %v2064_v31, %v2063_v19  ;;  %v7756_v31 = vpop.permute.xlu1 %2891  ;;  %v2192_v56 = vsel %vm1774_vm4, %v2191_v36, %v2190_v4  ;;  %v9340_v19 = vld [vmem:[#allocation41_spill] sm:$0xff]  ;;  %v1776_v36 = vrot.slane %v7371_v8, 4  ;;  %p5842_p13 = pnand %p5841_p12, %p6120_p4 }
 0x5c3   : > { %v2067_v53 = vsel %vm1786_vm8, %v2066_v20, %v2065_v57  ;;  %v2194_v20 = vrot.slane %v7350_v16, 7  ;;  %v1770_v16 = vrot.slane %v7354_v6, 6 }
 0x5c4   : > { %v2332_v24 = vsel %vm759_vm0, %v2067_v53, %v2113_v54  ;;  %v2198_v54 = vrot.slane %v7392_v17, 5  ;;  %p5843_p0 = pneg %p5842_p13 }
 0x5c5   : > { %v2147_v38 = vpop.permute.xlu0 %2146  ;;  %1966 = vrot.lane.b32.xlu1 %v6837_v22, %s9191_s29  ;;  %s8344_s29 = scalar_lea.vmem %s9443_s3, %s6163_s20 }
 0x5c6   : > { %v2334_v18 = vsel %vm2320_vm9, %v2332_v24, %v2147_v38  ;;  %v2758_v38 = vsel %vm2352_vm1, %v9340_v19, 0.0  ;;  %v7775_v17 = vpop.permute.xlu1 %2895 }
 0x5c9   : > { %v2181_v22 = vpop.permute.xlu0 %2180  ;;  %2034 = vrot.lane.b32.xlu1 %v6844_v28, %s9189_s24  ;;  %v2193_v28 = vsel %vm1777_vm5, %v7344_v61, %v2192_v56  ;;  %v1782_v56 = vrot.slane %v7381_v43, 2  ;;  %s5992_s24 = smov 80  }
 0x5ca   : > { %v2336_v52 = vsel %vm2323_vm10, %v2334_v18, %v2181_v22  ;;  %v2195_v57 = vsel %vm1780_vm6, %v2194_v20, %v2193_v28  ;;  %v1769_v18 = vsel %vm1768_vm2, %v1767_v55, %v7361_v42  ;;  %v1779_v22 = vrot.slane %v7375_v51, 3  ;;  %v9341_v55 = vld [vmem:[#allocation39_spill] sm:$0xff] }
 0x5cb   : > { %2346 = vst [vmem:[%s7761_s22 + $0x10] sm:$0xff] %v2336_v52  ;;  %v2197_v0 = vsel %vm1783_vm7, %v2196_v37, %v2195_v57  ;;  %v1772_v52 = vsel %vm1771_vm3, %v1770_v16, %v1769_v18  ;;  %v2944_v57 = vsel %vm2352_vm1, %v9341_v55, 0.0  ;;  %v1909_v16 = vrot.slane %v7354_v6, 2  ;;  %v9342_v18 = vld [vmem:[#allocation67_spill] sm:$0xff] }
 0x5cc   : > { %v2199_v61 = vsel %vm1786_vm8, %v2198_v54, %v2197_v0  ;;  %v1775_v37 = vsel %vm1774_vm4, %v1773_v3, %v1772_v52  ;;  %v1785_v54 = vrot.slane %v7413_v10, 1  ;;  %v1906_v0 = vrot.slane %v7361_v42, 4 }
 0x5cd   : > { %v2245_v35 = vpop.permute.xlu0 %2244  ;;  %v1778_v28 = vsel %vm1777_vm5, %v1776_v36, %v1775_v37  ;;  %v1911_v3 = vrot.slane %v7364_v33, 1  ;;  %v2980_v6 = vsel %vm2352_vm1, %v9342_v18, 0.0  ;;  %v1914_v33 = vrot.slane %v7375_v51, 7 }
 0x5ce   : > { %2759 = vadd.xlane.f32.xlu0 %v2758_v38  ;;  %v2338_v53 = vsel %vm759_vm0, %v2199_v61, %v2245_v35  ;;  %v1907_v35 = vrot.slane %v7347_v40, 3  ;;  %v1781_v19 = vsel %vm1780_vm6, %v1779_v22, %v1778_v28  ;;  %v1916_v52 = vrot.slane %v7381_v43, 6  ;;  %v9344_v43 = vld [vmem:[#allocation48_spill] sm:$0xff] }
 0x5d1   : > { %v2279_v24 = vpop.permute.xlu0 %2278 }
 0x5d2   : > { %v2340_v4 = vsel %vm2320_vm9, %v2338_v53, %v2279_v24  ;;  %2801 = vadd.xlane.f32.xlu0 %v2800_v2  ;;  %v1908_v53 = vsel %vm1768_vm2, %v1907_v35, %v1906_v0 }
 0x5d3   : > { %v2342_v20 = vsel %vm2323_vm10, %v2340_v4, %v7712_v44  ;;  %v1784_v44 = vsel %vm1783_vm7, %v1782_v56, %v1781_v19  ;;  %v1910_v22 = vsel %vm1771_vm3, %v1909_v16, %v1908_v53  ;;  %v1918_v56 = vrot.slane %v7413_v10, 5 }
 0x5d4   : > { %2347 = vst [vmem:[%s7761_s22 + $0x18] sm:$0xff] %v2342_v20  ;;  %v7793_v21 = vpop.xlane.xlu1 %2741  ;;  %v1787_v61 = vsel %vm1786_vm8, %v1785_v54, %v1784_v44  ;;  %v1912_v42 = vsel %vm1774_vm4, %v1911_v3, %v1910_v22  ;;  %v9343_v54 = vld [vmem:[#allocation73_spill] sm:$0xff]  ;;  %v2764_v10 = vsel %vm2352_vm1, %v9344_v43, 0.0  ;;  %v2806_v16 = vsel %vm2352_vm1, %v7212_v32, 0.0  ;;  %v9345_v44 = vld [vmem:[#allocation43_spill] sm:$0xff] }
 0x5d5   : > { %v1833_v38 = vpop.permute.xlu0 %1832  ;;  %v1913_v20 = vsel %vm1777_vm5, %v7371_v8, %v1912_v42  ;;  %v2986_v28 = vsel %vm2352_vm1, %v9343_v54, 0.0  ;;  %v2950_v0 = vsel %vm2352_vm1, %v9345_v44, 0.0  ;;  %v2797_v3 = vsel %vm2352_vm1, %v7240_v60, 0.0  ;;  %v9352_v42 = vld [vmem:[#allocation85_spill] sm:$0xff] }
 0x5d6   : > { %2945 = vadd.xlane.f32.xlu0 %v2944_v57  ;;  %v2318_v40 = vsel %vm759_vm0, %v1787_v61, %v1833_v38  ;;  %v1915_v35 = vsel %vm1780_vm6, %v1914_v33, %v1913_v20  ;;  %v2992_v61 = vsel %vm2352_vm1, %v7194_v59, 0.0  ;;  %v2977_v53 = vsel %vm2352_vm1, %v7190_v12, 0.0  ;;  %v9353_v33 = vld [vmem:[#allocation58_spill] sm:$0xff] }
 0x5d7   : > { %v1917_v19 = vsel %vm1783_vm7, %v1916_v52, %v1915_v35  ;;  %v2812_v60 = vsel %vm2352_vm1, %v7244_v62, 0.0  ;;  %v2803_v62 = vsel %vm2352_vm1, %v9352_v42, 0.0  ;;  %v2776_v52 = vsel %vm2352_vm1, %v9353_v33, 0.0  ;;  %v9365_v42 = vld [vmem:[#allocation65_spill] sm:$0xff] }
 0x5d8   : > { %v1867_v36 = vpop.permute.xlu1 %1866  ;;  %v1919_v51 = vsel %vm1786_vm8, %v1918_v56, %v1917_v19  ;;  %v9354_v56 = vld [vmem:[#allocation51_spill] sm:$0xff] }
 0x5d9   : > { %v2321_v24 = vsel %vm2320_vm9, %v2318_v40, %v1867_v36  ;;  %v1901_v2 = vpop.permute.xlu0 %1900  ;;  %v9346_v40 = vld [vmem:[#allocation42_spill] sm:$0xff]  ;;  %v9347_v36 = vld [vmem:[#allocation53_spill] sm:$0xff]  ;;  %v2947_v20 = vsel %vm2352_vm1, %v9354_v56, 0.0  ;;  %v9366_v56 = vld [vmem:[#allocation91_spill] sm:$0xff] }
 0x5da   : > { %v2324_v4 = vsel %vm2323_vm10, %v2321_v24, %v1901_v2  ;;  %2981 = vadd.xlane.f32.xlu0 %v2980_v6  ;;  %v2770_v32 = vsel %vm2352_vm1, %v9347_v36, 0.0  ;;  %v9348_v24 = vld [vmem:[#allocation77_spill] sm:$0xff]  ;;  %v9362_v36 = vld [vmem:[#allocation87_spill] sm:$0xff] }
 0x5db   : > { %2344 = vst [vmem:[%s7761_s22] sm:$0xff] %v2324_v4  ;;  %v2983_v59 = vsel %vm2352_vm1, %v9348_v24, 0.0  ;;  %v9349_v2 = vld [vmem:[#allocation49_spill] sm:$0xff]  ;;  %v9351_v4 = vld [vmem:[#allocation79_spill] sm:$0xff]  ;;  %v2968_v24 = vsel %vm2352_vm1, %v7562_v13, 0.0  ;;  %v2830_v13 = vsel %vm2352_vm1, %v7600_v26, 0.0  ;;  %v3016_v26 = vsel %vm2352_vm1, %v7756_v31, 0.0 }
 0x5dc   : > { %v2956_v18 = vsel %vm2352_vm1, %v9349_v2, 0.0  ;;  %v9350_v6 = vld [vmem:[#allocation57_spill] sm:$0xff]  ;;  %v2998_v12 = vsel %vm2352_vm1, %v9351_v4, 0.0 }
 0x5dd   : > { %v1965_v37 = vpop.permute.xlu0 %1964  ;;  %v2761_v22 = vsel %vm2352_vm1, %v9350_v6, 0.0 }
 0x5de   : > { %2987 = vadd.xlane.f32.xlu0 %v2986_v28  ;;  %v2326_v38 = vsel %vm759_vm0, %v1919_v51, %v1965_v37  ;;  %v9355_v37 = vld [vmem:[#allocation84_spill] sm:$0xff]  ;;  %v9356_v28 = vld [vmem:[#allocation81_spill] sm:$0xff]  ;;  %v9357_v51 = vld [vmem:[#allocation55_spill] sm:$0xff] }
 0x5df   : > { %v2818_v54 = vsel %vm2352_vm1, %v9355_v37, 0.0  ;;  %v2989_v35 = vsel %vm2352_vm1, %v9356_v28, 0.0  ;;  %v9367_v28 = vld [vmem:[#allocation71_spill] sm:$0xff] }
 0x5e1   : > { %v1999_v55 = vpop.permute.xlu0 %1998 }
 0x5e2   : > { %v2328_v57 = vsel %vm2320_vm9, %v2326_v38, %v1999_v55  ;;  %2765 = vadd.xlane.f32.xlu0 %v2764_v10  ;;  %v2962_v38 = vsel %vm2352_vm1, %v9357_v51, 0.0  ;;  %v9358_v55 = vld [vmem:[#allocation63_spill] sm:$0xff]  ;;  %v2080_v51 = vrot.slane %v9327_v34, 1 }
 0x5e3   : > { %v2330_v8 = vsel %vm2323_vm10, %v2328_v57, %v7715_v15  ;;  %v2941_v15 = vsel %vm2352_vm1, %v9346_v40, 0.0  ;;  %v2767_v43 = vsel %vm2352_vm1, %v9358_v55, 0.0  ;;  %v3004_v57 = vsel %vm2352_vm1, %v7497_v9, 0.0  ;;  %v9368_v55 = vld [vmem:[#allocation33_spill] sm:$0xff] }
 0x5e4   : > { %2345 = vst [vmem:[%s7761_s22 + $0x8] sm:$0xff] %v2330_v8  ;;  %v9359_v8 = vld [vmem:[#allocation89_spill] sm:$0xff]  ;;  %v2824_v9 = vsel %vm2352_vm1, %v7531_v23, 0.0  ;;  %v3010_v23 = vsel %vm2352_vm1, %v7587_v50, 0.0  ;;  %v2974_v50 = vsel %vm2352_vm1, %v7605_v47, 0.0 }
 0x5e6   : > { %2807 = vadd.xlane.f32.xlu0 %v2806_v16  ;;  %v2809_v16 = vsel %vm2352_vm1, %v9359_v8, 0.0 }
 0x5ea   : > { %2951 = vadd.xlane.f32.xlu0 %v2950_v0  ;;  %v9360_v0 = vld [vmem:[#allocation62_spill] sm:$0xff] }
 0x5ed   : > { %2798 = vadd.xlane.f32.xlu1 %v2797_v3  ;;  %v2782_v3 = vsel %vm2352_vm1, %v9360_v0, 0.0 }
 0x5ee   : > { %2993 = vadd.xlane.f32.xlu0 %v2992_v61  ;;  %v9361_v61 = vld [vmem:[#allocation59_spill] sm:$0xff] }
 0x5ef   : > { %v2953_v40 = vsel %vm2352_vm1, %v9361_v61, 0.0 }
 0x5f1   : > { %2942 = vadd.xlane.f32.xlu1 %v2941_v15 }
 0x5f2   : > { %2771 = vadd.xlane.f32.xlu0 %v2770_v32  ;;  %v2995_v32 = vsel %vm2352_vm1, %v9362_v36, 0.0  ;;  %v9371_v36 = vld [vmem:[#allocation35_spill] sm:$0xff] }
 0x5f5   : > { %2978 = vadd.xlane.f32.xlu1 %v2977_v53 }
 0x5f6   : > { %2813 = vadd.xlane.f32.xlu0 %v2812_v60 }
 0x5f9   : > { %2984 = vadd.xlane.f32.xlu1 %v2983_v59  ;;  %v9363_v59 = vld [vmem:[#allocation68_spill] sm:$0xff] }
 0x5fa   : > { %2957 = vadd.xlane.f32.xlu0 %v2956_v18  ;;  %v2773_v2 = vsel %vm2352_vm1, %v9363_v59, 0.0 }
 0x5fd   : > { %2762 = vadd.xlane.f32.xlu1 %v2761_v22  ;;  %v9364_v22 = vld [vmem:[#allocation93_spill] sm:$0xff] }
 0x5fe   : > { %2999 = vadd.xlane.f32.xlu0 %v2998_v12  ;;  %v2815_v4 = vsel %vm2352_vm1, %v9364_v22, 0.0 }
 0x601   : > { %2804 = vadd.xlane.f32.xlu1 %v2803_v62  ;;  %v2959_v62 = vsel %vm2352_vm1, %v9365_v42, 0.0  ;;  %v9373_v42 = vld [vmem:[#allocation17_spill] sm:$0xff] }
 0x602   : > { %2777 = vadd.xlane.f32.xlu0 %v2776_v52 }
 0x605   : > { %2948 = vadd.xlane.f32.xlu1 %v2947_v20  ;;  %v3001_v20 = vsel %vm2352_vm1, %v9366_v56, 0.0 }
 0x606   : > { %2819 = vadd.xlane.f32.xlu0 %v2818_v54 }
 0x609   : > { %2990 = vadd.xlane.f32.xlu1 %v2989_v35  ;;  %v7865_v19 = vpop.xlane.xlu1 %2750  ;;  %v2779_v35 = vsel %vm2352_vm1, %v9367_v28, 0.0 }
 0x60a   : > { %2963 = vadd.xlane.f32.xlu0 %v2962_v38  ;;  %v3022_v38 = vsel %vm2352_vm1, %v7775_v17, 0.0  ;;  %v2212_v17 = vrot.slane %v9327_v34, 5 }
 0x60d   : > { %2768 = vadd.xlane.f32.xlu1 %v2767_v43  ;;  %v7871_v10 = vpop.xlane.xlu1 %2786  ;;  %v2081_v43 = vsel %vm1786_vm8, %v2080_v51, %v9368_v55 }
 0x60e   : > { %3005 = vadd.xlane.f32.xlu0 %v3004_v57  ;;  %v9369_v57 = vld [vmem:[#allocation96_spill] sm:$0xff] }
 0x60f   : > { %v2821_v8 = vsel %vm2352_vm1, %v9369_v57, 0.0  ;;  %v9378_v57 = vld [vmem:[#allocation45_spill] sm:$0xff] }
 0x611   : > { %2810 = vadd.xlane.f32.xlu1 %v2809_v16  ;;  %v7877_v44 = vpop.xlane.xlu1 %2792 }
 0x612   : > { %2783 = vadd.xlane.f32.xlu0 %v2782_v3  ;;  %v7889_v53 = vpop.xlane.xlu0 %2747 }
 0x615   : > { %2954 = vadd.xlane.f32.xlu1 %v2953_v40  ;;  %v7883_v15 = vpop.xlane.xlu1 %2930  ;;  %v9370_v40 = vld [vmem:[#allocation97_spill] sm:$0xff] }
 0x616   : > { %2825 = vadd.xlane.f32.xlu0 %v2824_v9  ;;  %v7901_v6 = vpop.xlane.xlu0 %2753  ;;  %v2965_v9 = vsel %vm2352_vm1, %v9370_v40, 0.0  ;;  %v9381_v40 = vld [vmem:[#allocation80_spill] sm:$0xff] }
 0x619   : > { %2996 = vadd.xlane.f32.xlu1 %v2995_v32  ;;  %v7891_v60 = vpop.xlane.xlu1 %2936  ;;  %v2213_v32 = vsel %vm1786_vm8, %v2212_v17, %v9371_v36  ;;  %v9379_v17 = vld [vmem:[#allocation76_spill] sm:$0xff]  ;;  %v9383_v36 = vld [vmem:[#allocation38_spill] sm:$0xff] }
 0x61a   : > { %2969 = vadd.xlane.f32.xlu0 %v2968_v24  ;;  %v7909_v33 = vpop.xlane.xlu0 %2789 }
 0x61d   : > { %2774 = vadd.xlane.f32.xlu1 %v2773_v2  ;;  %v7897_v18 = vpop.xlane.xlu1 %2756 }
 0x61e   : > { %3011 = vadd.xlane.f32.xlu0 %v3010_v23  ;;  %v7917_v54 = vpop.xlane.xlu0 %2795  ;;  %v9372_v23 = vld [vmem:[#allocation16_spill] sm:$0xff] }
 0x61f   : > { %v3007_v22 = vsel %vm2352_vm1, %v9372_v23, 0.0  ;;  %v9387_v23 = vld [vmem:[#allocation46_spill] sm:$0xff] }
 0x621   : > { %2816 = vadd.xlane.f32.xlu1 %v2815_v4  ;;  %v2281_v12 = vpop.permute.xlu1 %2280 }
 0x622   : > { %2831 = vadd.xlane.f32.xlu0 %v2830_v13  ;;  %v7929_v16 = vpop.xlane.xlu0 %2933 }
 0x625   : > { %2960 = vadd.xlane.f32.xlu1 %v2959_v62  ;;  %v2001_v52 = vpop.permute.xlu1 %2000  ;;  %v2827_v62 = vsel %vm2352_vm1, %v9373_v42, 0.0  ;;  %v9390_v42 = vld [vmem:[#allocation47_spill] sm:$0xff] }
 0x626   : > { %2975 = vadd.xlane.f32.xlu0 %v2974_v50  ;;  %v7940_v2 = vpop.xlane.xlu0 %2939 }
 0x629   : > { %3002 = vadd.xlane.f32.xlu1 %v3001_v20  ;;  %v2115_v37 = vpop.permute.xlu1 %2114  ;;  %v9374_v20 = vld [vmem:[#allocation34_spill] sm:$0xff] }
 0x62a   : > { %3017 = vadd.xlane.f32.xlu0 %v3016_v26  ;;  %v2333_v31 = vsel %vm759_vm0, %v2081_v43, %v2115_v37  ;;  %v1835_v50 = vpop.permute.xlu0 %1834  ;;  %v9375_v26 = vld [vmem:[#allocation18_spill] sm:$0xff]  ;;  %v9377_v43 = vld [vmem:[#allocation36_spill] sm:$0xff] }
 0x62b   : > { %v2319_v37 = vsel %vm759_vm0, %v9374_v20, %v1835_v50  ;;  %v2971_v28 = vsel %vm2352_vm1, %v9375_v26, 0.0  ;;  %v9391_v50 = vld [vmem:[#allocation86_spill] sm:$0xff] }
 0x62c   : > { %v9394_v26 = vld [vmem:[#allocation74_spill] sm:$0xff] }
 0x62d   : > { %2780 = vadd.xlane.f32.xlu1 %v2779_v35  ;;  %v2149_v47 = vpop.permute.xlu1 %2148 }
 0x62e   : > { %3023 = vadd.xlane.f32.xlu0 %v3022_v38  ;;  %v2335_v0 = vsel %vm2320_vm9, %v2333_v31, %v2149_v47  ;;  %v9376_v47 = vld [vmem:[#allocation37_spill] sm:$0xff]  ;;  %v3013_v38 = vsel %vm2352_vm1, %v7678_v14, 0.0  ;;  %v9380_v14 = vld [vmem:[#allocation50_spill] sm:$0xff] }
 0x631   : > { %2822 = vadd.xlane.f32.xlu1 %v2821_v8  ;;  %v2183_v3 = vpop.permute.xlu1 %2182  ;;  %v3019_v8 = vsel %vm2352_vm1, %v7688_v58, 0.0  ;;  %v9384_v58 = vld [vmem:[#allocation82_spill] sm:$0xff] }
 0x632   : > { %v2337_v61 = vsel %vm2323_vm10, %v2335_v0, %v2183_v3 }
 0x633   : > { %2350 = vst [vmem:[%s7761_s22 + $0x30] sm:$0xff] %v2337_v61 }
 0x635   : > { %2966 = vadd.xlane.f32.xlu1 %v2965_v9  ;;  %v2247_v24 = vpop.permute.xlu1 %2246  ;;  %v9382_v9 = vld [vmem:[#allocation56_spill] sm:$0xff] }
 0x636   : > { %v2339_v59 = vsel %vm759_vm0, %v2213_v32, %v2247_v24  ;;  %v9385_v24 = vld [vmem:[#allocation44_spill] sm:$0xff] }
 0x637   : > { %v2341_v4 = vsel %vm2320_vm9, %v2339_v59, %v2281_v12  ;;  %v9386_v59 = vld [vmem:[#allocation19_spill] sm:$0xff] }
 0x639   : > { %3008 = vadd.xlane.f32.xlu1 %v3007_v22  ;;  %v2315_v34 = vpop.permute.xlu1 %2314 }
 0x63a   : > { %v2343_v13 = vsel %vm2323_vm10, %v2341_v4, %v2315_v34  ;;  %v9388_v4 = vld [vmem:[#allocation40_spill] sm:$0xff] }
 0x63b   : > { %2351 = vst [vmem:[%s7761_s22 + $0x38] sm:$0xff] %v2343_v13  ;;  %v9389_v13 = vld [vmem:[#allocation60_spill] sm:$0xff] }
 0x63d   : > { %2828 = vadd.xlane.f32.xlu1 %v2827_v62  ;;  %v1869_v56 = vpop.permute.xlu1 %1868 }
 0x63e   : > { %v2322_v35 = vsel %vm2320_vm9, %v2319_v37, %v1869_v56  ;;  %v9392_v56 = vld [vmem:[#allocation69_spill] sm:$0xff]  ;;  %v9393_v37 = vld [vmem:[#allocation72_spill] sm:$0xff] }
 0x641   : > { %2972 = vadd.xlane.f32.xlu1 %v2971_v28  ;;  %v1903_v12 = vpop.permute.xlu1 %1902 }
 0x642   : > { %v2325_v51 = vsel %vm2323_vm10, %v2322_v35, %v1903_v12  ;;  %v9395_v35 = vld [vmem:[#allocation75_spill] sm:$0xff] }
 0x643   : > { %2348 = vst [vmem:[%s7761_s22 + $0x20] sm:$0xff] %v2325_v51 }
 0x644   : > { %3157 = vperm.xlu0 %5789, %v9376_v47   ;;  %v9396_v47 = vld [vmem:[#allocation64_spill] sm:$0xff] }
 0x645   : > { %3014 = vadd.xlane.f32.xlu1 %v3013_v38  ;;  %v1967_v55 = vpop.permute.xlu1 %1966 }
 0x646   : > { %v2327_v31 = vsel %vm759_vm0, %v9377_v43, %v1967_v55  ;;  %v9399_v43 = vld [vmem:[#allocation78_spill] sm:$0xff] }
 0x647   : > { %v2329_v0 = vsel %vm2320_vm9, %v2327_v31, %v2001_v52 }
 0x648   : > { %3172 = vperm.xlu0 %5789, %v9378_v57   ;;  %v9400_v57 = vld [vmem:[#allocation54_spill] sm:$0xff] }
 0x649   : > { %3020 = vadd.xlane.f32.xlu1 %v3019_v8  ;;  %v2035_v3 = vpop.permute.xlu1 %2034 }
 0x64a   : > { %v2331_v61 = vsel %vm2323_vm10, %v2329_v0, %v2035_v3  ;;  %v9401_v3 = vld [vmem:[#allocation83_spill] sm:$0xff] }
 0x64b   : > { %2349 = vst [vmem:[%s7761_s22 + $0x28] sm:$0xff] %v2331_v61 }
 0x64c   : > { %3214 = vperm.xlu0 %5789, %v9379_v17  }
 0x650   : > { %3178 = vperm.xlu0 %5789, %v9380_v14   ;;  %v9402_v14 = vld [vmem:[#allocation20_spill] sm:$0xff] }
 0x654   : > { %3220 = vperm.xlu0 %5789, %v9381_v40   ;;  %v9403_v40 = vld [vmem:[#allocation61_spill] sm:$0xff] }
 0x658   : > { %3184 = vperm.xlu0 %5789, %v9382_v9  }
 0x65a   : > { %3154 = vperm.xlu1 %5788, %v9383_v36   ;;  %v9404_v36 = vld [vmem:[#allocation88_spill] sm:$0xff] }
 0x65b   : > { %v7972_v32 = vpop.xlane.xlu0 %2759 }
 0x65c   : > { %3226 = vperm.xlu0 %5789, %v9384_v58  }
 0x65e   : > { %3160 = vperm.xlu1 %5788, %v9385_v24  }
 0x65f   : > { %v7976_v52 = vpop.xlane.xlu0 %2801 }
 0x660   : > { %3250 = vperm.xlu0 %5789, %v9386_v59  }
 0x662   : > { %3163 = vperm.xlu1 %5788, %v9387_v23  }
 0x663   : > { %v7980_v22 = vpop.xlane.xlu0 %2945 }
 0x664   : > { %3256 = vperm.xlu0 %5789, %v7475_v1  }
 0x666   : > { %3166 = vperm.xlu1 %5788, %v9388_v4   ;;  %v9405_v4 = vld [vmem:[#allocation66_spill] sm:$0xff] }
 0x667   : > { %v7984_v34 = vpop.xlane.xlu0 %2981 }
 0x668   : > { %3190 = vperm.xlu0 %5789, %v9389_v13  }
 0x66a   : > { %3169 = vperm.xlu1 %5788, %v9390_v42  }
 0x66b   : > { %v7988_v62 = vpop.xlane.xlu0 %2987 }
 0x66c   : > { %3232 = vperm.xlu0 %5789, %v9391_v50  }
 0x66e   : > { %3202 = vperm.xlu1 %5788, %v9392_v56   ;;  %v9408_v56 = vld [vmem:[#allocation102_spill] sm:$0xff] }
 0x66f   : > { %v7992_v20 = vpop.xlane.xlu0 %2765 }
 0x670   : > { %3262 = vperm.xlu0 %5789, %v7613_v27   ;;  %v9397_v27 = vld [vmem:[#allocation52_spill] sm:$0xff] }
 0x672   : > { %3205 = vperm.xlu1 %5788, %v9393_v37  }
 0x673   : > { %v7996_v1 = vpop.xlane.xlu0 %2807 }
 0x674   : > { %3298 = vperm.xlu0 %5789, %v7661_v49   ;;  %v9398_v49 = vld [vmem:[#allocation90_spill] sm:$0xff] }
 0x676   : > { %3208 = vperm.xlu1 %5788, %v9394_v26   ;;  %v9409_v26 = vld [vmem:[#allocation103_spill] sm:$0xff] }
 0x677   : > { %v8000_v28 = vpop.xlane.xlu0 %2951 }
 0x678   : > { %3304 = vperm.xlu0 %5789, %v7666_v39  }
 0x67a   : > { %3211 = vperm.xlu1 %5788, %v9395_v35   ;;  %v8004_v12 = vpop.xlane.xlu1 %2798 }
 0x67b   : > { %v8006_v51 = vpop.xlane.xlu0 %2993 }
 0x67c   : > { %3196 = vperm.xlu0 %5789, %v9396_v47   ;;  %v9410_v47 = vld [vmem:[#allocation70_spill] sm:$0xff] }
 0x67e   : > { %3175 = vperm.xlu1 %5788, %v9397_v27   ;;  %v8010_v38 = vpop.xlane.xlu1 %2942 }
 0x67f   : > { %v8012_v55 = vpop.xlane.xlu0 %2771 }
 0x680   : > { %3238 = vperm.xlu0 %5789, %v9398_v49   ;;  %v9411_v49 = vld [vmem:[#allocation94_spill] sm:$0xff] }
 0x682   : > { %3217 = vperm.xlu1 %5788, %v9399_v43   ;;  %v8016_v31 = vpop.xlane.xlu1 %2978 }
 0x683   : > { %v8018_v39 = vpop.xlane.xlu0 %2813 }
 0x684   : > { %3268 = vperm.xlu0 %5789, %v7619_v63  }
 0x686   : > { %3181 = vperm.xlu1 %5788, %v9400_v57   ;;  %v8022_v8 = vpop.xlane.xlu1 %2984  ;;  %v9412_v57 = vld [vmem:[#allocation22_spill] sm:$0xff] }
 0x687   : > { %v8024_v0 = vpop.xlane.xlu0 %2957 }
 0x688   : > { %3310 = vperm.xlu0 %5789, %v7675_v30  }
 0x68a   : > { %3223 = vperm.xlu1 %5788, %v9401_v3   ;;  %v8028_v61 = vpop.xlane.xlu1 %2762 }
 0x68b   : > { %v8030_v17 = vpop.xlane.xlu0 %2999 }
 0x68c   : > { %3244 = vperm.xlu0 %5789, %v9402_v14   ;;  %v9414_v14 = vld [vmem:[#allocation104_spill] sm:$0xff] }
 0x68e   : > { %3187 = vperm.xlu1 %5788, %v9403_v40   ;;  %v8034_v9 = vpop.xlane.xlu1 %2804 }
 0x68f   : > { %v8036_v63 = vpop.xlane.xlu0 %2777 }
 0x690   : > { %3274 = vperm.xlu0 %5789, %v7625_v48  }
 0x692   : > { %3229 = vperm.xlu1 %5788, %v9404_v36   ;;  %v8040_v58 = vpop.xlane.xlu1 %2948 }
 0x693   : > { %v8042_v30 = vpop.xlane.xlu0 %2819 }
 0x694   : > { %3316 = vperm.xlu0 %5789, %v7684_v11  }
 0x696   : > { %3253 = vperm.xlu1 %5788, %v7609_v29   ;;  %v8046_v24 = vpop.xlane.xlu1 %2990  ;;  %v9406_v29 = vld [vmem:[#allocation92_spill] sm:$0xff] }
 0x697   : > { %v8048_v59 = vpop.xlane.xlu0 %2963 }
 0x698   : > { %3346 = vperm.xlu0 %5789, %v7696_v7  }
 0x69a   : > { %3259 = vperm.xlu1 %5788, %v7504_v5   ;;  %v8052_v23 = vpop.xlane.xlu1 %2768  ;;  %v9407_v5 = vld [vmem:[#allocation21_spill] sm:$0xff] }
 0x69b   : > { %v8054_v48 = vpop.xlane.xlu0 %3005 }
 0x69c   : > { %3352 = vperm.xlu0 %5789, %v7704_v25  }
 0x69e   : > { %3193 = vperm.xlu1 %5788, %v9405_v4   ;;  %v8058_v13 = vpop.xlane.xlu1 %2810  ;;  %v9416_v4 = vld [vmem:[#allocation95_spill] sm:$0xff] }
 0x69f   : > { %v8060_v11 = vpop.xlane.xlu0 %2783 }
 0x6a0   : > { %3280 = vperm.xlu0 %5789, %v7635_v41  }
 0x6a2   : > { %3235 = vperm.xlu1 %5788, %v9406_v29   ;;  %v8064_v42 = vpop.xlane.xlu1 %2954 }
 0x6a3   : > { %v8066_v7 = vpop.xlane.xlu0 %2825 }
 0x6a4   : > { %3322 = vperm.xlu0 %5789, %v7699_v46  }
 0x6a6   : > { %3265 = vperm.xlu1 %5788, %v9407_v5   ;;  %v8070_v50 = vpop.xlane.xlu1 %2996  ;;  %v9417_v5 = vld [vmem:[#allocation98_spill] sm:$0xff] }
 0x6a7   : > { %v8072_v25 = vpop.xlane.xlu0 %2969 }
 0x6a8   : > { %3358 = vperm.xlu0 %5789, %v7865_v19  }
 0x6aa   : > { %3301 = vperm.xlu1 %5788, %v9408_v56   ;;  %v8076_v37 = vpop.xlane.xlu1 %2774 }
 0x6ab   : > { %v8078_v41 = vpop.xlane.xlu0 %3011 }
 0x6ac   : > { %3394 = vperm.xlu0 %5789, %v7871_v10  }
 0x6ae   : > { %3307 = vperm.xlu1 %5788, %v9409_v26   ;;  %v8082_v35 = vpop.xlane.xlu1 %2816 }
 0x6af   : > { %v8084_v46 = vpop.xlane.xlu0 %2831 }
 0x6b0   : > { %3400 = vperm.xlu0 %5789, %v7877_v44   ;;  %v9413_v44 = vld [vmem:[#allocation106_spill] sm:$0xff] }
 0x6b2   : > { %3199 = vperm.xlu1 %5788, %v9410_v47   ;;  %v8088_v27 = vpop.xlane.xlu1 %2960  ;;  %v9418_v47 = vld [vmem:[#allocation105_spill] sm:$0xff] }
 0x6b3   : > { %v8090_v19 = vpop.xlane.xlu0 %2975 }
 0x6b4   : > { %3442 = vperm.xlu0 %5789, %v7883_v15   ;;  %v9415_v15 = vld [vmem:[#allocation24_spill] sm:$0xff] }
 0x6b6   : > { %3241 = vperm.xlu1 %5788, %v9411_v49   ;;  %v8094_v43 = vpop.xlane.xlu1 %3002 }
 0x6b7   : > { %v8097_v10 = vpop.xlane.xlu0 %3017 }
 0x6b8   : > { %3448 = vperm.xlu0 %5789, %v7891_v60  }
 0x6ba   : > { %3271 = vperm.xlu1 %5788, %v9412_v57   ;;  %v8100_v3 = vpop.xlane.xlu1 %2780 }
 0x6bb   : > { %v8106_v36 = vpop.xlane.xlu0 %3023 }
 0x6bc   : > { %3286 = vperm.xlu0 %5789, %v9413_v44  }
 0x6be   : > { %3313 = vperm.xlu1 %5788, %v9414_v14   ;;  %v8104_v40 = vpop.xlane.xlu1 %2822 }
 0x6c0   : > { %3328 = vperm.xlu0 %5789, %v9415_v15  }
 0x6c2   : > { %3247 = vperm.xlu1 %5788, %v9416_v4   ;;  %v8110_v29 = vpop.xlane.xlu1 %2966  ;;  %v9420_v4 = vld [vmem:[#allocation99_spill] sm:$0xff] }
 0x6c3   : > { %v8112_v60 = vpop.permute.xlu0 %3157 }
 0x6c4   : > { %3364 = vperm.xlu0 %5789, %v7897_v18  }
 0x6c6   : > { %3277 = vperm.xlu1 %5788, %v9417_v5   ;;  %v8116_v56 = vpop.xlane.xlu1 %3008 }
 0x6c7   : > { %v8118_v26 = vpop.permute.xlu0 %3172 }
 0x6c8   : > { %3406 = vperm.xlu0 %5789, %v8004_v12  }
 0x6ca   : > { %3319 = vperm.xlu1 %5788, %v9418_v47   ;;  %v8122_v49 = vpop.xlane.xlu1 %2828  ;;  %v9422_v47 = vld [vmem:[#allocation107_spill] sm:$0xff] }
 0x6cb   : > { %v8124_v57 = vpop.permute.xlu0 %3214 }
 0x6cc   : > { %9419 = vst [vmem:[#allocation26_spill] sm:$0xff] %v8124_v57  ;;  %3454 = vperm.xlu0 %5789, %v8010_v38   ;;  %v9423_v57 = vld [vmem:[#allocation25_spill] sm:$0xff] }
 0x6ce   : > { %3349 = vperm.xlu1 %5788, %v7793_v21   ;;  %v8128_v44 = vpop.xlane.xlu1 %2972  ;;  %v9421_v21 = vld [vmem:[#allocation108_spill] sm:$0xff] }
 0x6cf   : > { %v8130_v18 = vpop.permute.xlu0 %3178 }
 0x6d0   : > { %3490 = vperm.xlu0 %5789, %v8016_v31  }
 0x6d2   : > { %v8133_v14 = vpop.xlane.xlu1 %3014  ;;  %3355 = vperm.xlu1 %5788, %v7889_v53  }
 0x6d3   : > { %v8136_v12 = vpop.permute.xlu0 %3220 }
 0x6d4   : > { %3496 = vperm.xlu0 %5789, %v8022_v8  }
 0x6d6   : > { %v8139_v15 = vpop.xlane.xlu1 %3020  ;;  %3283 = vperm.xlu1 %5788, %v9420_v4  }
 0x6d7   : > { %v8142_v38 = vpop.permute.xlu0 %3184 }
 0x6d8   : > { %3292 = vperm.xlu0 %5789, %v9421_v21  }
 0x6da   : > { %v8145_v5 = vpop.permute.xlu1 %3154  ;;  %3325 = vperm.xlu1 %5788, %v9422_v47  }
 0x6db   : > { %v8148_v31 = vpop.permute.xlu0 %3226 }
 0x6dc   : > { %3334 = vperm.xlu0 %5789, %v9423_v57  }
 0x6de   : > { %v8151_v53 = vpop.permute.xlu1 %3160  ;;  %3361 = vperm.xlu1 %5788, %v7901_v6  }
 0x6df   : > { %v8154_v8 = vpop.permute.xlu0 %3250 }
 0x6e0   : > { %9424 = vst [vmem:[#allocation27_spill] sm:$0xff] %v8154_v8  ;;  %3370 = vperm.xlu0 %5789, %v8028_v61   ;;  %v9426_v8 = vld [vmem:[#allocation100_spill] sm:$0xff] }
 0x6e2   : > { %v8157_v4 = vpop.permute.xlu1 %3163  ;;  %3397 = vperm.xlu1 %5788, %v7909_v33  }
 0x6e3   : > { %v8160_v21 = vpop.permute.xlu0 %3256 }
 0x6e4   : > { %9425 = vst [vmem:[#allocation28_spill] sm:$0xff] %v8160_v21  ;;  %3412 = vperm.xlu0 %5789, %v8034_v9   ;;  %v9427_v21 = vld [vmem:[#allocation109_spill] sm:$0xff] }
 0x6e6   : > { %v8163_v47 = vpop.permute.xlu1 %3166  ;;  %3403 = vperm.xlu1 %5788, %v7917_v54  }
 0x6e7   : > { %v8166_v57 = vpop.permute.xlu0 %3190 }
 0x6e8   : > { %3460 = vperm.xlu0 %5789, %v8040_v58  }
 0x6ea   : > { %v8169_v6 = vpop.permute.xlu1 %3169  ;;  %3445 = vperm.xlu1 %5788, %v7929_v16  }
 0x6eb   : > { %v8172_v61 = vpop.permute.xlu0 %3232 }
 0x6ec   : > { %3502 = vperm.xlu0 %5789, %v8046_v24  }
 0x6ee   : > { %v8175_v33 = vpop.permute.xlu1 %3202  ;;  %3451 = vperm.xlu1 %5788, %v7940_v2  }
 0x6ef   : > { %v8178_v9 = vpop.permute.xlu0 %3262 }
 0x6f0   : > { %3340 = vperm.xlu0 %5789, %v7737_v45  }
 0x6f2   : > { %v8181_v54 = vpop.permute.xlu1 %3205  ;;  %3289 = vperm.xlu1 %5788, %v9426_v8  }
 0x6f3   : > { %v8184_v58 = vpop.permute.xlu0 %3298 }
 0x6f4   : > { %3376 = vperm.xlu0 %5789, %v8052_v23  }
 0x6f6   : > { %v8187_v16 = vpop.permute.xlu1 %3208  ;;  %3331 = vperm.xlu1 %5788, %v9427_v21  }
 0x6f7   : > { %v8190_v24 = vpop.permute.xlu0 %3304 }
 0x6f8   : > { %9428 = vst [vmem:[#allocation29_spill] sm:$0xff] %v8190_v24  ;;  %3418 = vperm.xlu0 %5789, %v8058_v13   ;;  %v9430_v24 = vld [vmem:[#allocation101_spill] sm:$0xff] }
 0x6fa   : > { %v8193_v2 = vpop.permute.xlu1 %3211  ;;  %3367 = vperm.xlu1 %5788, %v7972_v32  }
 0x6fb   : > { %v8196_v45 = vpop.permute.xlu0 %3196 }
 0x6fc   : > { %3466 = vperm.xlu0 %5789, %v8064_v42  }
 0x6fe   : > { %v8199_v8 = vpop.permute.xlu1 %3175  ;;  %3409 = vperm.xlu1 %5788, %v7976_v52  }
 0x6ff   : > { %v8202_v23 = vpop.permute.xlu0 %3238 }
 0x700   : > { %3508 = vperm.xlu0 %5789, %v8070_v50  }
 0x702   : > { %v8205_v21 = vpop.permute.xlu1 %3217  ;;  %3457 = vperm.xlu1 %5788, %v7980_v22  }
 0x703   : > { %v8208_v13 = vpop.permute.xlu0 %3268 }
 0x704   : > { %3382 = vperm.xlu0 %5789, %v8076_v37  }
 0x706   : > { %v8211_v32 = vpop.permute.xlu1 %3181  ;;  %3493 = vperm.xlu1 %5788, %v7984_v34  }
 0x707   : > { %v8214_v42 = vpop.permute.xlu0 %3310 }
 0x708   : > { %9429 = vst [vmem:[#allocation30_spill] sm:$0xff] %v8214_v42  ;;  %3424 = vperm.xlu0 %5789, %v8082_v35   ;;  %v9431_v42 = vld [vmem:[#allocation110_spill] sm:$0xff] }
 0x70a   : > { %v8217_v52 = vpop.permute.xlu1 %3223  ;;  %3499 = vperm.xlu1 %5788, %v7988_v62  }
 0x70b   : > { %v8220_v50 = vpop.permute.xlu0 %3244 }
 0x70c   : > { %3472 = vperm.xlu0 %5789, %v8088_v27  }
 0x70e   : > { %v8223_v22 = vpop.permute.xlu1 %3187  ;;  %3295 = vperm.xlu1 %5788, %v9430_v24  }
 0x70f   : > { %v8226_v37 = vpop.permute.xlu0 %3274 }
 0x710   : > { %3514 = vperm.xlu0 %5789, %v8094_v43  }
 0x712   : > { %v8229_v34 = vpop.permute.xlu1 %3229  ;;  %3337 = vperm.xlu1 %5788, %v9431_v42  }
 0x713   : > { %v8232_v35 = vpop.permute.xlu0 %3316 }
 0x714   : > { %9432 = vst [vmem:[#allocation31_spill] sm:$0xff] %v8232_v35  ;;  %3388 = vperm.xlu0 %5789, %v8100_v3  }
 0x716   : > { %v8235_v62 = vpop.permute.xlu1 %3253  ;;  %3373 = vperm.xlu1 %5788, %v7992_v20  }
 0x717   : > { %v8238_v27 = vpop.permute.xlu0 %3346 }
 0x718   : > { %9433 = vst [vmem:[#allocation32_spill] sm:$0xff] %v8238_v27  ;;  %3430 = vperm.xlu0 %5789, %v8104_v40   ;;  %v9436_v27 = vld [vmem:[#allocation23_spill] sm:$0xff] }
 0x71a   : > { %v8241_v24 = vpop.permute.xlu1 %3259  ;;  %3415 = vperm.xlu1 %5788, %v7996_v1  }
 0x71b   : > { %v8244_v43 = vpop.permute.xlu0 %3352 }
 0x71c   : > { %9434 = vst [vmem:[#allocation41_spill] sm:$0xff] %v8244_v43  ;;  %3478 = vperm.xlu0 %5789, %v8110_v29  }
 0x71e   : > { %v3194_v42 = vpop.permute.xlu1 %3193  ;;  %3463 = vperm.xlu1 %5788, %v8000_v28  }
 0x71f   : > { %v8248_v3 = vpop.permute.xlu0 %3280 }
 0x720   : > { %3520 = vperm.xlu0 %5789, %v8116_v56  }
 0x722   : > { %v8251_v20 = vpop.permute.xlu1 %3235  ;;  %3505 = vperm.xlu1 %5788, %v8006_v51  }
 0x723   : > { %v8254_v40 = vpop.permute.xlu0 %3322 }
 0x724   : > { %9435 = vst [vmem:[#allocation39_spill] sm:$0xff] %v8254_v40  ;;  %3436 = vperm.xlu0 %5789, %v8122_v49  }
 0x726   : > { %v8257_v1 = vpop.permute.xlu1 %3265  ;;  %3343 = vperm.xlu1 %5788, %v9436_v27  }
 0x727   : > { %v8260_v29 = vpop.permute.xlu0 %3358 }
 0x728   : > { %9437 = vst [vmem:[#allocation67_spill] sm:$0xff] %v8260_v29  ;;  %3484 = vperm.xlu0 %5789, %v8128_v44  }
 0x72a   : > { %v8263_v28 = vpop.permute.xlu1 %3301  ;;  %3379 = vperm.xlu1 %5788, %v8012_v55  }
 0x72b   : > { %9438 = vst [vmem:[#allocation73_spill] sm:$0xff] %v8263_v28  ;;  %v8266_v56 = vpop.permute.xlu0 %3394 }
 0x72c   : > { %3526 = vperm.xlu0 %5789, %v8133_v14   ;;  %v9441_v14 = vld [vmem:[#allocation15_spill] sm:$0xff] }
 0x72d   : > { %v3557_v43 = vrot.slane %v8157_v4, %v9441_v14  ;;  %v3575_v28 = vrot.slane %v8199_v8, %v9441_v14 }
 0x72e   : > { %v8269_v51 = vpop.permute.xlu1 %3307  ;;  %3421 = vperm.xlu1 %5788, %v8018_v39   ;;  %v3566_v39 = vrot.slane %v8169_v6, %v9441_v14  ;;  %v3547_v6 = vrot.slane %v8112_v60, %v9441_v14 }
 0x72f   : > { %9439 = vst [vmem:[#allocation48_spill] sm:$0xff] %v8269_v51  ;;  %v8272_v49 = vpop.permute.xlu0 %3400 }
 0x730   : > { %3532 = vperm.xlu0 %5789, %v8139_v15  }
 0x732   : > { %v3200_v27 = vpop.permute.xlu1 %3199  ;;  %3469 = vperm.xlu1 %5788, %v8024_v0   ;;  %v9442_v0 = vld [vmem:[#allocation14_spill] sm:$0xff] }
 0x733   : > { %v8276_v44 = vpop.permute.xlu0 %3442  ;;  %v3542_v35 = vrot.slane %v8145_v5, %v9442_v0  ;;  %v3562_v4 = vrot.slane %v8163_v47, %v9442_v0  ;;  %v3580_v47 = vrot.slane %v8130_v18, %v9442_v0  ;;  %v3598_v18 = vrot.slane %v8166_v57, %v9442_v0 }
 0x734   : > { %9440 = vst [vmem:[#allocation43_spill] sm:$0xff] %v8276_v44  ;;  %v3571_v44 = vrot.slane %v8118_v26, %v9442_v0  ;;  %v3589_v26 = vrot.slane %v8142_v38, %v9442_v0 }
 0x735   : > { %v3567_v8 = vsel %vm3548_vm11, %v3566_v39, %v3562_v4  ;;  %v3607_v4 = vrot.slane %v8196_v45, %v9442_v0 }
 0x736   : > { %v8278_v29 = vpop.permute.xlu1 %3241  ;;  %3511 = vperm.xlu1 %5788, %v8030_v17   ;;  %v3553_v17 = vrot.slane %v8151_v53, %v9442_v0  ;;  %v3593_v53 = vrot.slane %v8223_v22, %v9441_v14  ;;  %v3576_v22 = vsel %vm3548_vm11, %v3575_v28, %v3571_v44 }
 0x737   : > { %v8281_v55 = vpop.permute.xlu0 %3448 }
 0x738   : > { %v3558_v5 = vsel %vm3548_vm11, %v3557_v43, %v3553_v17  ;;  %v3549_v43 = vsel %vm3548_vm11, %v3547_v6, %v3542_v35  ;;  %v3611_v17 = vrot.slane %v3200_v27, %v9441_v14  ;;  %v3594_v38 = vsel %vm3548_vm11, %v3593_v53, %v3589_v26  ;;  %v8354_v53 = vld [vmem:[%s8344_s29] sm:$0xff] }
 0x73a   : > { %v8285_v40 = vpop.permute.xlu1 %3271  ;;  %3385 = vperm.xlu1 %5788, %v8036_v63   ;;  %v3584_v63 = vrot.slane %v8211_v32, %v9441_v14  ;;  %v3602_v32 = vrot.slane %v3194_v42, %v9441_v14 }
 0x73b   : > { %v8290_v15 = vpop.permute.xlu0 %3286 }
 0x73c   : > { %v3585_v39 = vsel %vm3548_vm11, %v3584_v63, %v3580_v47  ;;  %v3603_v27 = vsel %vm3548_vm11, %v3602_v32, %v3598_v18  ;;  %v3612_v63 = vsel %vm3548_vm11, %v3611_v17, %v3607_v4 }
 0x73e   : > { %v8309_v51 = vpop.permute.xlu1 %3313  ;;  %3427 = vperm.xlu1 %5788, %v8042_v30   ;;  %v4117_v30 = vsel %vm1768_vm2, %v3558_v5, %v3549_v43 }
 0x73f   : > { %v8316_v60 = vpop.permute.xlu0 %3328  ;;  %v4118_v42 = vsel %vm1771_vm3, %v3567_v8, %v4117_v30 }
 0x740   : > { %v4119_v28 = vsel %vm1774_vm4, %v3576_v22, %v4118_v42 }
 0x741   : > { %v4120_v57 = vsel %vm1777_vm5, %v3585_v39, %v4119_v28 }
 0x742   : > { %v8331_v35 = vpop.permute.xlu1 %3247  ;;  %3475 = vperm.xlu1 %5788, %v8048_v59   ;;  %v4121_v45 = vsel %vm1780_vm6, %v3594_v38, %v4120_v57 }
 0x743   : > { %v8336_v44 = vpop.permute.xlu0 %3364  ;;  %v4122_v59 = vsel %vm1783_vm7, %v3603_v27, %v4121_v45  ;;  %v3638_v45 = vrot.slane %v8205_v21, %v9441_v14  ;;  %v3643_v21 = vrot.slane %v8136_v12, %v9442_v0 }
 0x744   : > { %v4123_v47 = vsel %vm1786_vm8, %v3612_v63, %v4122_v59  ;;  %v3629_v63 = vrot.slane %v8193_v2, %v9441_v14  ;;  %v3625_v59 = vrot.slane %v8187_v16, %v9442_v0  ;;  %v3616_v2 = vrot.slane %v8175_v33, %v9442_v0 }
 0x745   : > { %v8361_v32 = vadd.f32 %v4123_v47, %v8354_v53  ;;  %v3647_v47 = vrot.slane %v8217_v52, %v9441_v14  ;;  %v3652_v16 = vrot.slane %v8148_v31, %v9442_v0  ;;  %v3665_v52 = vrot.slane %v8251_v20, %v9441_v14 }
 0x746   : > { %v8347_v6 = vpop.permute.xlu1 %3277  ;;  %3517 = vperm.xlu1 %5788, %v8054_v48   ;;  %v3683_v31 = vrot.slane %v8331_v35, %v9441_v14 }
 0x747   : > { %v8351_v5 = vpop.permute.xlu0 %3406  ;;  %9444 = vst [vmem:[#allocation42_spill] sm:$0xff] %v8361_v32  ;;  %v4190_v48 = vsel %vm4189_vm12, %v8361_v32, -inf  ;;  %v3648_v12 = vsel %vm3548_vm11, %v3647_v47, %v3643_v21 }
 0x74a   : > { %v8357_v8 = vpop.permute.xlu1 %3319  ;;  %3391 = vperm.xlu1 %5788, %v8060_v11  }
 0x74b   : > { %v8363_v26 = vpop.permute.xlu0 %3454 }
 0x74e   : > { %v8365_v43 = vpop.permute.xlu1 %3349  ;;  %3433 = vperm.xlu1 %5788, %v8066_v7  }
 0x74f   : > { %9445 = vst [vmem:[#allocation53_spill] sm:$0xff] %v8365_v43  ;;  %4191 = vmax.xlane.f32.xlu0 %v4190_v48  ;;  %v8370_v22 = vpop.permute.xlu0 %3490  ;;  %v9449_v48 = vld [vmem:[#allocation26_spill] sm:$0xff]  ;;  %v3630_v43 = vsel %vm3548_vm11, %v3629_v63, %v3625_v59  ;;  %v3859_v63 = vrot.slane %v8336_v44, %v9442_v0 }
 0x750   : > { %v3634_v32 = vrot.slane %v9449_v48, %v9442_v0  ;;  %v3661_v48 = vrot.slane %v8172_v61, %v9442_v0 }
 0x752   : > { %v8372_v17 = vpop.permute.xlu1 %3355  ;;  %3481 = vperm.xlu1 %5788, %v8072_v25   ;;  %v3666_v35 = vsel %vm3548_vm11, %v3665_v52, %v3661_v48  ;;  %v8475_v48 = vld [vmem:[%s8344_s29 + $0x8] sm:$0xff]  ;;  %s671_s29 = scalar_lea.vmem %s9467_s4, %s6163_s20  ;;  %s9196_s20 = smov 8  }
 0x753   : > { %9446 = vst [vmem:[#allocation77_spill] sm:$0xff] %v8372_v17  ;;  %v8375_v11 = vpop.permute.xlu0 %3496 }
 0x756   : > { %v8377_v30 = vpop.permute.xlu1 %3283  ;;  %3523 = vperm.xlu1 %5788, %v8078_v41  }
 0x757   : > { %v8380_v18 = vpop.permute.xlu0 %3292 }
 0x75a   : > { %v8382_v39 = vpop.permute.xlu1 %3325  ;;  %3439 = vperm.xlu1 %5788, %v8084_v46  }
 0x75b   : > { %v8385_v7 = vpop.permute.xlu0 %3334 }
 0x75e   : > { %v8387_v42 = vpop.permute.xlu1 %3361  ;;  %3487 = vperm.xlu1 %5788, %v8090_v19  }
 0x75f   : > { %9447 = vst [vmem:[#allocation49_spill] sm:$0xff] %v8387_v42  ;;  %v8390_v4 = vpop.permute.xlu0 %3370  ;;  %v3674_v42 = vrot.slane %v8278_v29, %v9441_v14 }
 0x760   : > { %9448 = vst [vmem:[#allocation57_spill] sm:$0xff] %v8390_v4 }
 0x762   : > { %v8392_v25 = vpop.permute.xlu1 %3397  ;;  %3529 = vperm.xlu1 %5788, %v8097_v10   ;;  %v3620_v10 = vrot.slane %v8181_v54, %v9441_v14  ;;  %v3656_v54 = vrot.slane %v8229_v34, %v9441_v14  ;;  %v3639_v34 = vsel %vm3548_vm11, %v3638_v45, %v3634_v32  ;;  %v3679_v45 = vrot.slane %v8220_v50, %v9442_v0 }
 0x763   : > { %v8395_v38 = vpop.permute.xlu0 %3412 }
 0x764   : > { %v3621_v33 = vsel %vm3548_vm11, %v3620_v10, %v3616_v2  ;;  %v3670_v10 = vrot.slane %v8202_v23, %v9442_v0  ;;  %v3657_v32 = vsel %vm3548_vm11, %v3656_v54, %v3652_v16  ;;  %v3684_v2 = vsel %vm3548_vm11, %v3683_v31, %v3679_v45 }
 0x765   : > { %v4124_v61 = vsel %vm1768_vm2, %v3630_v43, %v3621_v33  ;;  %v3922_v54 = vrot.slane %v8351_v5, %v9442_v0  ;;  %v3701_v31 = vrot.slane %v8241_v24, %v9441_v14  ;;  %v3719_v45 = vrot.slane %v8285_v40, %v9441_v14 }
 0x766   : > { %v8397_v41 = vpop.permute.xlu1 %3403  ;;  %3535 = vperm.xlu1 %5788, %v8106_v36   ;;  %v4125_v29 = vsel %vm1771_vm3, %v3639_v34, %v4124_v61  ;;  %v3675_v43 = vsel %vm3548_vm11, %v3674_v42, %v3670_v10  ;;  %v3994_v34 = vrot.slane %v8363_v26, %v9442_v0  ;;  %v3692_v61 = vrot.slane %v8235_v62, %v9441_v14 }
 0x767   : > { %v8402_v46 = vpop.permute.xlu0 %3460  ;;  %v4126_v44 = vsel %vm1774_vm4, %v3648_v12, %v4125_v29  ;;  %v3710_v10 = vrot.slane %v8257_v1, %v9441_v14  ;;  %v4048_v24 = vrot.slane %v8370_v22, %v9442_v0  ;;  %v3706_v62 = vrot.slane %v8178_v9, %v9442_v0 }
 0x768   : > { %v4127_v47 = vsel %vm1777_vm5, %v3657_v32, %v4126_v44  ;;  %v9450_v32 = vld [vmem:[#allocation28_spill] sm:$0xff]  ;;  %v9451_v44 = vld [vmem:[#allocation27_spill] sm:$0xff]  ;;  %v3715_v1 = vrot.slane %v8208_v13, %v9442_v0  ;;  %v3737_v40 = vrot.slane %v8377_v30, %v9441_v14  ;;  %v3733_v30 = vrot.slane %v8248_v3, %v9442_v0 }
 0x769   : > { %v4128_v21 = vsel %vm1780_vm6, %v3666_v35, %v4127_v47  ;;  %v3697_v29 = vrot.slane %v9450_v32, %v9442_v0  ;;  %v3711_v13 = vsel %vm3548_vm11, %v3710_v10, %v3706_v62 }
 0x76a   : > { %v8400_v28 = vpop.permute.xlu1 %3445  ;;  %v4129_v52 = vsel %vm1783_vm7, %v3675_v43, %v4128_v21  ;;  %v3688_v43 = vrot.slane %v9451_v44, %v9442_v0 }
 0x76b   : > { %v8406_v57 = vpop.permute.xlu0 %3502  ;;  %v4130_v33 = vsel %vm1786_vm8, %v3684_v2, %v4129_v52  ;;  %v3702_v47 = vsel %vm3548_vm11, %v3701_v31, %v3697_v29  ;;  %v3720_v52 = vsel %vm3548_vm11, %v3719_v45, %v3715_v1  ;;  %v3738_v31 = vsel %vm3548_vm11, %v3737_v40, %v3733_v30 }
 0x76c   : > { %v3693_v9 = vsel %vm3548_vm11, %v3692_v61, %v3688_v43 }
 0x76e   : > { %v8404_v27 = vpop.permute.xlu1 %3451 }
 0x76f   : > { %v8428_v4 = vpop.permute.xlu0 %3340 }
 0x772   : > { %v8408_v19 = vpop.permute.xlu1 %3289 }
 0x776   : > { %v8416_v36 = vpop.permute.xlu1 %3331 }
 0x77a   : > { %v3368_v17 = vpop.permute.xlu1 %3367 }
 0x77b   : > { %v3863_v20 = vrot.slane %v3368_v17, %v9441_v14  ;;  %v8462_v17 = vpop.permute.xlu0 %3376 }
 0x77d   : > { %v8458_v59 = vsel %vm3548_vm11, %v3863_v20, %v3859_v63  ;;  %v8489_v20 = vadd.f32 %v4130_v33, %v8475_v48  ;;  %v4131_v33 = vsel %vm1768_vm2, %v3702_v47, %v3693_v9 }
 0x77e   : > { %v3410_v23 = vpop.permute.xlu1 %3409 }
 0x77f   : > { %v3926_v50 = vrot.slane %v3410_v23, %v9441_v14  ;;  %v8481_v5 = vpop.permute.xlu0 %3418  ;;  %v3728_v23 = vrot.slane %v8347_v6, %v9441_v14  ;;  %v4193_v2 = vsel %vm4189_vm12, %v8489_v20, -inf  ;;  %v3746_v6 = vrot.slane %v8408_v19, %v9441_v14 }
 0x781   : > { %v8471_v16 = vsel %vm3548_vm11, %v3926_v50, %v3922_v54  ;;  %v3724_v54 = vrot.slane %v8226_v37, %v9442_v0 }
 0x782   : > { %v3458_v42 = vpop.permute.xlu1 %3457 }
 0x783   : > { %v3998_v12 = vrot.slane %v3458_v42, %v9441_v14  ;;  %v8522_v50 = vpop.permute.xlu0 %3466  ;;  %v4057_v42 = vrot.slane %v8375_v11, %v9442_v0  ;;  %v3729_v19 = vsel %vm3548_vm11, %v3728_v23, %v3724_v54  ;;  %v3904_v54 = vrot.slane %v8266_v56, %v9442_v0 }
 0x784   : > { %v3760_v56 = vrot.slane %v8184_v58, %v9442_v0 }
 0x785   : > { %v8486_v63 = vsel %vm3548_vm11, %v3998_v12, %v3994_v34  ;;  %v3742_v34 = vrot.slane %v8290_v15, %v9442_v0  ;;  %v4132_v12 = vsel %vm1771_vm3, %v3711_v13, %v4131_v33  ;;  %v3751_v15 = vrot.slane %v8380_v18, %v9442_v0 }
 0x786   : > { %v3494_v26 = vpop.permute.xlu1 %3493  ;;  %v4133_v61 = vsel %vm1774_vm4, %v3720_v52, %v4132_v12  ;;  %v3917_v18 = vrot.slane %v8397_v41, %v9441_v14  ;;  %v3989_v41 = vrot.slane %v8404_v27, %v9441_v14  ;;  %v3985_v13 = vrot.slane %v8281_v55, %v9442_v0  ;;  %v9452_v52 = vld [vmem:[#allocation29_spill] sm:$0xff]  ;;  %v9455_v12 = vld [vmem:[#allocation30_spill] sm:$0xff] }
 0x787   : > { %v4052_v35 = vrot.slane %v3494_v26, %v9441_v14  ;;  %v3747_v10 = vsel %vm3548_vm11, %v3746_v6, %v3742_v34  ;;  %v4134_v32 = vsel %vm1777_vm5, %v3729_v19, %v4133_v61  ;;  %v3769_v27 = vrot.slane %v9452_v52, %v9442_v0 }
 0x788   : > { %v4135_v45 = vsel %vm1780_vm6, %v3738_v31, %v4134_v32  ;;  %v3778_v31 = vrot.slane %v9455_v12, %v9442_v0 }
 0x789   : > { %v4053_v22 = vsel %vm3548_vm11, %v4052_v35, %v4048_v24  ;;  %v8547_v24 = vpop.permute.xlu0 %3508  ;;  %v4136_v44 = vsel %vm1783_vm7, %v3747_v10, %v4135_v45  ;;  %v3782_v10 = vrot.slane %v8309_v51, %v9441_v14 }
 0x78a   : > { %v3500_v21 = vpop.permute.xlu1 %3499  ;;  %4194 = vmax.xlane.f32.xlu1 %v4193_v2  ;;  %v3908_v2 = vrot.slane %v8392_v25, %v9441_v14  ;;  %v3980_v25 = vrot.slane %v8400_v28, %v9441_v14  ;;  %v3990_v28 = vsel %vm3548_vm11, %v3989_v41, %v3985_v13 }
 0x78b   : > { %v4061_v37 = vrot.slane %v3500_v21, %v9441_v14 }
 0x78c   : > { %v3909_v21 = vsel %vm3548_vm11, %v3908_v2, %v3904_v54 }
 0x78d   : > { %v4062_v3 = vsel %vm3548_vm11, %v4061_v37, %v4057_v42  ;;  %v8561_v47 = vpop.permute.xlu0 %3382  ;;  %v9453_v42 = vld [vmem:[#allocation48_spill] sm:$0xff] }
 0x78e   : > { %v8540_v11 = vsel %vm1768_vm2, %v4062_v3, %v4053_v22  ;;  %v3296_v26 = vpop.permute.xlu1 %3295  ;;  %v3913_v22 = vrot.slane %v8272_v49, %v9442_v0  ;;  %v3931_v49 = vrot.slane %v8395_v38, %v9442_v0  ;;  %v3773_v55 = vrot.slane %v9453_v42, %v9441_v14  ;;  %v9454_v38 = vld [vmem:[#allocation43_spill] sm:$0xff]  ;;  %v9456_v3 = vld [vmem:[#allocation73_spill] sm:$0xff] }
 0x78f   : > { %v3755_v29 = vrot.slane %v3296_v26, %v9441_v14  ;;  %v3976_v34 = vrot.slane %v9454_v38, %v9442_v0  ;;  %v3764_v61 = vrot.slane %v9456_v3, %v9441_v14 }
 0x790   : > { %v3918_v9 = vsel %vm3548_vm11, %v3917_v18, %v3913_v22  ;;  %v3800_v18 = vrot.slane %v8382_v39, %v9441_v14 }
 0x791   : > { %v3756_v35 = vsel %vm3548_vm11, %v3755_v29, %v3751_v15  ;;  %v4152_v37 = vsel %vm1768_vm2, %v3918_v9, %v3909_v21  ;;  %v8589_v33 = vpop.permute.xlu0 %3424  ;;  %v3791_v15 = vrot.slane %v8357_v8, %v9441_v14  ;;  %v3981_v29 = vsel %vm3548_vm11, %v3980_v25, %v3976_v34 }
 0x792   : > { %v8551_v43 = vpop.permute.xlu1 %3337  ;;  %v4137_v62 = vsel %vm1786_vm8, %v3756_v35, %v4136_v44  ;;  %v4153_v19 = vsel %vm1771_vm3, %v8471_v16, %v4152_v37  ;;  %v4003_v16 = vrot.slane %v8402_v46, %v9442_v0  ;;  %v9457_v35 = vld [vmem:[#allocation31_spill] sm:$0xff]  ;;  %v3774_v8 = vsel %vm3548_vm11, %v3773_v55, %v3769_v27 }
 0x793   : > { %v8555_v1 = vadd.f32 %v4137_v62, %v8354_v53  ;;  %v3787_v44 = vrot.slane %v9457_v35, %v9442_v0  ;;  %v9458_v62 = vld [vmem:[#allocation39_spill] sm:$0xff]  ;;  %v3809_v46 = vrot.slane %v8416_v36, %v9441_v14  ;;  %v3765_v54 = vsel %vm3548_vm11, %v3764_v61, %v3760_v56 }
 0x794   : > { %v3796_v51 = vrot.slane %v9458_v62, %v9442_v0  ;;  %v3783_v9 = vsel %vm3548_vm11, %v3782_v10, %v3778_v31  ;;  %v3818_v39 = vrot.slane %v8551_v43, %v9441_v14  ;;  %v3805_v36 = vrot.slane %v8316_v60, %v9442_v0 }
 0x795   : > { %v4196_v23 = vsel %vm4189_vm12, %v8555_v1, -inf  ;;  %v8627_v41 = vpop.permute.xlu0 %3472  ;;  %v4066_v21 = vrot.slane %v8406_v57, %v9442_v0  ;;  %v4138_v25 = vsel %vm1768_vm2, %v3774_v8, %v3765_v54  ;;  %v3814_v43 = vrot.slane %v8385_v7, %v9442_v0  ;;  %v9461_v8 = vld [vmem:[#allocation41_spill] sm:$0xff]  ;;  %v9463_v54 = vld [vmem:[#allocation67_spill] sm:$0xff] }
 0x796   : > { %v8563_v40 = vpop.permute.xlu1 %3373  ;;  %4197 = vmax.xlane.f32.xlu0 %v4196_v23  ;;  %v4159_v23 = vsel %vm1768_vm2, %v3990_v28, %v3981_v29  ;;  %v4139_v56 = vsel %vm1771_vm3, %v3783_v9, %v4138_v25  ;;  %v3810_v52 = vsel %vm3548_vm11, %v3809_v46, %v3805_v36  ;;  %v3823_v7 = vrot.slane %v8428_v4, %v9442_v0  ;;  %v9465_v25 = vld [vmem:[#allocation57_spill] sm:$0xff] }
 0x797   : > { %v4160_v22 = vsel %vm1771_vm3, %v8486_v63, %v4159_v23  ;;  %v3792_v63 = vsel %vm3548_vm11, %v3791_v15, %v3787_v44  ;;  %v3819_v42 = vsel %vm3548_vm11, %v3818_v39, %v3814_v43  ;;  %v9459_v44 = vld [vmem:[#allocation77_spill] sm:$0xff]  ;;  %v3841_v46 = vrot.slane %v9461_v8, %v9442_v0 }
 0x798   : > { %v4140_v27 = vsel %vm1774_vm4, %v3792_v63, %v4139_v56  ;;  %v3845_v62 = vrot.slane %v9459_v44, %v9441_v14  ;;  %v3850_v9 = vrot.slane %v9463_v54, %v9442_v0  ;;  %v3872_v39 = vrot.slane %v8563_v40, %v9441_v14 }
 0x799   : > { %v8658_v28 = vpop.permute.xlu0 %3514  ;;  %v3877_v40 = vrot.slane %v8462_v17, %v9442_v0 }
 0x79a   : > { %v3416_v6 = vpop.permute.xlu1 %3415  ;;  %v3846_v63 = vsel %vm3548_vm11, %v3845_v62, %v3841_v46 }
 0x79b   : > { %v3935_v30 = vrot.slane %v3416_v6, %v9441_v14 }
 0x79d   : > { %v3936_v58 = vsel %vm3548_vm11, %v3935_v30, %v3931_v49  ;;  %v3801_v30 = vsel %vm3548_vm11, %v3800_v18, %v3796_v51  ;;  %v3389_v4 = vpop.permute.xlu0 %3388  ;;  %v9460_v51 = vld [vmem:[#allocation49_spill] sm:$0xff] }
 0x79e   : > { %v8604_v26 = vsel %vm1774_vm4, %v3936_v58, %v4153_v19  ;;  %v3464_v32 = vpop.permute.xlu1 %3463  ;;  %v4141_v37 = vsel %vm1777_vm5, %v3801_v30, %v4140_v27  ;;  %v3854_v18 = vrot.slane %v9460_v51, %v9441_v14  ;;  %v3868_v30 = vrot.slane %v9465_v25, %v9442_v0 }
 0x79f   : > { %v4007_v45 = vrot.slane %v3464_v32, %v9441_v14  ;;  %v4142_v34 = vsel %vm1780_vm6, %v3810_v52, %v4141_v37 }
 0x7a0   : > { %v4143_v58 = vsel %vm1783_vm7, %v3819_v42, %v4142_v34  ;;  %v3886_v42 = vrot.slane %v8561_v47, %v9442_v0 }
 0x7a1   : > { %v4008_v2 = vsel %vm3548_vm11, %v4007_v45, %v4003_v16  ;;  %v8670_v32 = vpop.permute.xlu0 %3430 }
 0x7a2   : > { %v8632_v13 = vsel %vm1774_vm4, %v4008_v2, %v4160_v22  ;;  %v3506_v6 = vpop.permute.xlu1 %3505  ;;  %v9462_v22 = vld [vmem:[#allocation53_spill] sm:$0xff] }
 0x7a3   : > { %v4070_v49 = vrot.slane %v3506_v6, %v9441_v14  ;;  %v3836_v2 = vrot.slane %v9462_v22, %v9441_v14  ;;  %v9464_v6 = vld [vmem:[#allocation32_spill] sm:$0xff]  ;;  %v3940_v22 = vrot.slane %v8481_v5, %v9442_v0  ;;  %v4012_v5 = vrot.slane %v8522_v50, %v9442_v0 }
 0x7a4   : > { %v3832_v36 = vrot.slane %v9464_v6, %v9442_v0  ;;  %v3958_v6 = vrot.slane %v8670_v32, %v9442_v0 }
 0x7a5   : > { %v4071_v60 = vsel %vm3548_vm11, %v4070_v49, %v4066_v21  ;;  %v8674_v16 = vpop.permute.xlu0 %3478  ;;  %v3855_v49 = vsel %vm3548_vm11, %v3854_v18, %v3850_v9  ;;  %v3949_v9 = vrot.slane %v8589_v33, %v9442_v0  ;;  %v4021_v33 = vrot.slane %v8627_v41, %v9442_v0 }
 0x7a6   : > { %v8651_v57 = vsel %vm1771_vm3, %v4071_v60, %v8540_v11  ;;  %v3344_v55 = vpop.permute.xlu1 %3343  ;;  %v3837_v60 = vsel %vm3548_vm11, %v3836_v2, %v3832_v36 }
 0x7a7   : > { %v3827_v38 = vrot.slane %v3344_v55, %v9441_v14  ;;  %v4145_v27 = vsel %vm1768_vm2, %v3846_v63, %v3837_v60  ;;  %v3873_v55 = vsel %vm3548_vm11, %v3872_v39, %v3868_v30 }
 0x7a8   : > { %v4146_v37 = vsel %vm1771_vm3, %v3855_v49, %v4145_v27  ;;  %v9466_v27 = vld [vmem:[#allocation42_spill] sm:$0xff] }
 0x7a9   : > { %v3828_v19 = vsel %vm3548_vm11, %v3827_v38, %v3823_v7  ;;  %v8676_v35 = vpop.permute.xlu0 %3520  ;;  %v4147_v38 = vsel %vm1774_vm4, %v8458_v59, %v4146_v37 }
 0x7aa   : > { %v3380_v12 = vpop.permute.xlu1 %3379  ;;  %v4144_v11 = vsel %vm1786_vm8, %v3828_v19, %v4143_v58  ;;  %v3895_v58 = vrot.slane %v3389_v4, %v9442_v0  ;;  %v4148_v17 = vsel %vm1777_vm5, %v3873_v55, %v4147_v38 }
 0x7ab   : > { %v8664_v31 = vadd.f32 %v4144_v11, %v8475_v48  ;;  %v3881_v21 = vrot.slane %v3380_v12, %v9441_v14 }
 0x7ad   : > { %v4199_v3 = vsel %vm4189_vm12, %v8664_v31, -inf  ;;  %v3437_v43 = vpop.permute.xlu0 %3436  ;;  %v3882_v7 = vsel %vm3548_vm11, %v3881_v21, %v3877_v40 }
 0x7ae   : > { %v3422_v61 = vpop.permute.xlu1 %3421  ;;  %4200 = vmax.xlane.f32.xlu0 %v4199_v3  ;;  %v4149_v47 = vsel %vm1780_vm6, %v3882_v7, %v4148_v17  ;;  %v3967_v25 = vrot.slane %v3437_v43, %v9442_v0 }
 0x7af   : > { %v3944_v8 = vrot.slane %v3422_v61, %v9441_v14 }
 0x7b1   : > { %v3485_v11 = vpop.permute.xlu0 %3484  ;;  %v3945_v36 = vsel %vm3548_vm11, %v3944_v8, %v3940_v22 }
 0x7b2   : > { %v8668_v10 = vpop.permute.xlu1 %3469  ;;  %v4039_v55 = vrot.slane %v3485_v11, %v9442_v0 }
 0x7b3   : > { %v4016_v39 = vrot.slane %v8668_v10, %v9441_v14  ;;  %v4030_v10 = vrot.slane %v8674_v16, %v9442_v0 }
 0x7b5   : > { %v8724_v51 = vpop.permute.xlu0 %3526  ;;  %v4017_v50 = vsel %vm3548_vm11, %v4016_v39, %v4012_v5 }
 0x7b6   : > { %v8672_v15 = vpop.permute.xlu1 %3511  ;;  %v4102_v8 = vrot.slane %v8724_v51, %v9442_v0 }
 0x7b7   : > { %v4079_v37 = vrot.slane %v8672_v15, %v9441_v14 }
 0x7b9   : > { %v3533_v61 = vpop.permute.xlu0 %3532 }
 0x7ba   : > { %v3386_v29 = vpop.permute.xlu1 %3385 }
 0x7bb   : > { %v3890_v56 = vrot.slane %v3386_v29, %v9441_v14 }
 0x7bd   : > { %v3891_v34 = vsel %vm3548_vm11, %v3890_v56, %v3886_v42 }
 0x7be   : > { %v3428_v45 = vpop.permute.xlu1 %3427  ;;  %v4150_v29 = vsel %vm1783_vm7, %v3891_v34, %v4149_v47 }
 0x7bf   : > { %v3953_v46 = vrot.slane %v3428_v45, %v9441_v14 }
 0x7c1   : > { %v3954_v63 = vsel %vm3548_vm11, %v3953_v46, %v3949_v9  ;;  %v4111_v9 = vrot.slane %v3533_v61, %v9442_v0 }
 0x7c2   : > { %v3476_v23 = vpop.permute.xlu1 %3475 }
 0x7c3   : > { %v4025_v45 = vrot.slane %v3476_v23, %v9441_v14  ;;  %v4155_v23 = vsel %vm1777_vm5, %v3945_v36, %v8604_v26  ;;  %v4162_v26 = vsel %vm1777_vm5, %v4017_v50, %v8632_v13 }
 0x7c4   : > { %v4156_v56 = vsel %vm1780_vm6, %v3954_v63, %v4155_v23 }
 0x7c5   : > { %v4026_v60 = vsel %vm3548_vm11, %v4025_v45, %v4021_v33 }
 0x7c6   : > { %v8698_v52 = vpop.permute.xlu1 %3517  ;;  %v4163_v34 = vsel %vm1780_vm6, %v4026_v60, %v4162_v26 }
 0x7c7   : > { %v4088_v13 = vrot.slane %v8698_v52, %v9441_v14  ;;  %v4093_v52 = vrot.slane %v8676_v35, %v9442_v0 }
 0x7ca   : > { %v3392_v19 = vpop.permute.xlu1 %3391 }
 0x7cb   : > { %v3899_v12 = vrot.slane %v3392_v19, %v9441_v14 }
 0x7cd   : > { %v3900_v3 = vsel %vm3548_vm11, %v3899_v12, %v3895_v58  ;;  %v4075_v12 = vrot.slane %v8547_v24, %v9442_v0 }
 0x7ce   : > { %v3434_v44 = vpop.permute.xlu1 %3433  ;;  %v4151_v62 = vsel %vm1786_vm8, %v3900_v3, %v4150_v29  ;;  %v4084_v29 = vrot.slane %v8658_v28, %v9442_v0 }
 0x7cf   : > { %v8720_v59 = vadd.f32 %v4151_v62, %v8354_v53  ;;  %v3962_v2 = vrot.slane %v3434_v44, %v9441_v14  ;;  %v4080_v62 = vsel %vm3548_vm11, %v4079_v37, %v4075_v12 }
 0x7d0   : > { %v4089_v46 = vsel %vm3548_vm11, %v4088_v13, %v4084_v29 }
 0x7d1   : > { %v4202_v4 = vsel %vm4189_vm12, %v8720_v59, -inf  ;;  %v3963_v32 = vsel %vm3548_vm11, %v3962_v2, %v3958_v6  ;;  %v4168_v2 = vsel %vm1774_vm4, %v4080_v62, %v8651_v57 }
 0x7d2   : > { %v3482_v18 = vpop.permute.xlu1 %3481  ;;  %4203 = vmax.xlane.f32.xlu1 %v4202_v4  ;;  %v4157_v43 = vsel %vm1783_vm7, %v3963_v32, %v4156_v56  ;;  %v5839_v56 = vld [vmem:[%s6255_s17 + $0x8] sm:$0xff] }
 0x7d3   : > { %v4034_v21 = vrot.slane %v3482_v18, %v9441_v14 }
 0x7d5   : > { %v4035_v40 = vsel %vm3548_vm11, %v4034_v21, %v4030_v10 }
 0x7d6   : > { %v3524_v54 = vpop.permute.xlu1 %3523  ;;  %v4164_v11 = vsel %vm1783_vm7, %v4035_v40, %v4163_v34 }
 0x7d7   : > { %v4097_v15 = vrot.slane %v3524_v54, %v9441_v14 }
 0x7d9   : > { %v4098_v28 = vsel %vm3548_vm11, %v4097_v15, %v4093_v52 }
 0x7da   : > { %v3440_v49 = vpop.permute.xlu1 %3439 }
 0x7db   : > { %v3971_v30 = vrot.slane %v3440_v49, %v9441_v14 }
 0x7dc   : > { %v4192_v41 = vpop.xlane.xlu0 %4191 }
 0x7dd   : > { %v3972_v16 = vsel %vm3548_vm11, %v3971_v30, %v3967_v25  ;;  %v4214_v42 = vsub.f32 %v9466_v27, %v4192_v41 }
 0x7de   : > { %v3488_v7 = vpop.permute.xlu1 %3487  ;;  %v4158_v38 = vsel %vm1786_vm8, %v3972_v16, %v4157_v43 }
 0x7df   : > { %v4222_v19 = vmul.f32 1.442695, %v4214_v42  ;;  %v4043_v58 = vrot.slane %v3488_v7, %v9441_v14  ;;  %v8768_v17 = vadd.f32 %v4158_v38, %v8475_v48 }
 0x7e1   : > { %5805 = vpow2.f32 %v4222_v19  ;;  %v4044_v47 = vsel %vm3548_vm11, %v4043_v58, %v4039_v55  ;;  %v4205_v3 = vsel %vm4189_vm12, %v8768_v17, -inf }
 0x7e2   : > { %v3530_v44 = vpop.permute.xlu1 %3529  ;;  %4206 = vmax.xlane.f32.xlu0 %v4205_v3  ;;  %v4165_v24 = vsel %vm1786_vm8, %v4044_v47, %v4164_v11  ;;  %v8837_v3 = vld [vmem:[%s671_s29] sm:$0xff] }
 0x7e3   : > { %v4106_v4 = vrot.slane %v3530_v44, %v9441_v14  ;;  %v4187_v18 = vadd.f32 %v4165_v24, %v8354_v53  ;;  %v4169_v53 = vsel %vm1777_vm5, %v4089_v46, %v4168_v2 }
 0x7e4   : > { %v4170_v51 = vsel %vm1780_vm6, %v4098_v28, %v4169_v53 }
 0x7e5   : > { %v4208_v22 = vsel %vm4189_vm12, %v4187_v18, -inf  ;;  %v4107_v35 = vsel %vm3548_vm11, %v4106_v4, %v4102_v8  ;;  %v8851_v8 = vld [vmem:[%s671_s29 + $0x8] sm:$0xff]  ;;  %s9470_s29 = smov 96  }
 0x7e6   : > { %v3536_v54 = vpop.permute.xlu1 %3535  ;;  %4209 = vmax.xlane.f32.xlu1 %v4208_v22  ;;  %v4171_v36 = vsel %vm1783_vm7, %v4107_v35, %v4170_v51 }
 0x7e7   : > { %v4115_v39 = vrot.slane %v3536_v54, %v9441_v14 }
 0x7e9   : > { %v4116_v6 = vsel %vm3548_vm11, %v4115_v39, %v4111_v9 }
 0x7ea   : > { %v4172_v45 = vsel %vm1786_vm8, %v4116_v6, %v4171_v36 }
 0x7eb   : > { %v5806_v5 = vpop.eup %5805  ;;  %v4188_v57 = vadd.f32 %v4172_v45, %v8475_v48 }
 0x7ec   : > { %v4238_v63 = vsel %vm4189_vm12, %v5806_v5, 0.0 }
 0x7ed   : > { %4239 = vadd.xlane.f32.xlu1 %v4238_v63  ;;  %v4211_v0 = vsel %vm4189_vm12, %v4188_v57, -inf }
 0x7ee   : > { %4212 = vmax.xlane.f32.xlu0 %v4211_v0 }
 0x817   : > { %v4195_v61 = vpop.xlane.xlu1 %4194 }
 0x818   : > { %v4215_v14 = vsub.f32 %v8489_v20, %v4195_v61 }
 0x81a   : > { %v4224_v21 = vmul.f32 1.442695, %v4215_v14 }
 0x81c   : > { %5807 = vpow2.f32 %v4224_v21 }
 0x823   : > { %v4198_v33 = vpop.xlane.xlu0 %4197 }
 0x824   : > { %v4216_v10 = vsub.f32 %v8555_v1, %v4198_v33  ;;  %v5838_v1 = vld [vmem:[%s6255_s17] sm:$0xff]  ;;  %s9469_s17 = smov 64  }
 0x825   : > { %v5680_v60 = vpack.c.bf16 %v5839_v56, %v5838_v1  ;;  %v5790_v62 = vpack.i.bf16 %v5839_v56, %v5838_v1 }
 0x826   : > { %v8807_v32 = vpop.eup %5807  ;;  %v4226_v49 = vmul.f32 1.442695, %v4216_v10 }
 0x827   : > { %v4241_v48 = vsel %vm4189_vm12, %v8807_v32, 0.0  ;;  %5681 = vmatprep.subr.bf16.mxu1 %v5680_v60 }
 0x828   : > { %5809 = vpow2.f32 %v4226_v49  ;;  %4242 = vadd.xlane.f32.xlu0 %v4241_v48  ;;  %5683 = vmatpush3.bf16.msra.mxu1 %v5680_v60 }
 0x832   : > { %v8811_v25 = vpop.eup %5809 }
 0x833   : > { %v4244_v20 = vsel %vm4189_vm12, %v8811_v25, 0.0 }
 0x834   : > { %4245 = vadd.xlane.f32.xlu1 %v4244_v20 }
 0x83b   : > { %v4201_v23 = vpop.xlane.xlu0 %4200 }
 0x83c   : > { %v4217_v50 = vsub.f32 %v8664_v31, %v4201_v23 }
 0x83e   : > { %v4228_v30 = vmul.f32 1.442695, %v4217_v50 }
 0x840   : > { %5811 = vpow2.f32 %v4228_v30 }
 0x84a   : > { %v5812_v41 = vpop.eup %5811 }
 0x84b   : > { %v4247_v40 = vsel %vm4189_vm12, %v5812_v41, 0.0 }
 0x84c   : > { %4248 = vadd.xlane.f32.xlu0 %v4247_v40 }
 0x85f   : > { %v4204_v16 = vpop.xlane.xlu1 %4203 }
 0x860   : > { %v4218_v27 = vsub.f32 %v8720_v59, %v4204_v16 }
 0x862   : > { %v4230_v42 = vmul.f32 1.442695, %v4218_v27 }
 0x864   : > { %5813 = vpow2.f32 %v4230_v42 }
 0x86e   : > { %v8820_v43 = vpop.eup %5813 }
 0x86f   : > { %v4207_v55 = vpop.xlane.xlu0 %4206  ;;  %v4250_v31 = vsel %vm4189_vm12, %v8820_v43, 0.0 }
 0x870   : > { %v4219_v26 = vsub.f32 %v8768_v17, %v4207_v55  ;;  %4251 = vadd.xlane.f32.xlu1 %v4250_v31 }
 0x872   : > { %v4232_v37 = vmul.f32 1.442695, %v4219_v26 }
 0x873   : > { %v4210_v7 = vpop.xlane.xlu1 %4209 }
 0x874   : > { %5815 = vpow2.f32 %v4232_v37  ;;  %v4220_v38 = vsub.f32 %v4187_v18, %v4210_v7 }
 0x876   : > { %v4234_v34 = vmul.f32 1.442695, %v4220_v38 }
 0x878   : > { %5817 = vpow2.f32 %v4234_v34 }
 0x87a   : > { %v4240_v19 = vpop.xlane.xlu1 %4239 }
 0x87b   : > { %5819 = vrcp.f32 %v4240_v19  ;;  %v4213_v59 = vpop.xlane.xlu0 %4212 }
 0x87c   : > { %v4221_v58 = vsub.f32 %v4188_v57, %v4213_v59 }
 0x87e   : > { %v8825_v12 = vpop.eup %5815  ;;  %v4236_v13 = vmul.f32 1.442695, %v4221_v58 }
 0x87f   : > { %v4253_v11 = vsel %vm4189_vm12, %v8825_v12, 0.0 }
 0x880   : > { %5821 = vpow2.f32 %v4236_v13  ;;  %4254 = vadd.xlane.f32.xlu0 %v4253_v11 }
 0x882   : > { %v8829_v17 = vpop.eup %5817 }
 0x883   : > { %v4256_v15 = vsel %vm4189_vm12, %v8829_v17, 0.0 }
 0x884   : > { %4257 = vadd.xlane.f32.xlu1 %v4256_v15 }
 0x885   : > { %v5820_v47 = vpop.eup %5819 }
 0x886   : > { %v4263_v29 = vmul.f32 %v5820_v47, %v5806_v5 }
 0x888   : > { %v8840_v44 = vmul.f32 %v4263_v29, %v8837_v3 }
 0x88a   : > { %v8842_v24 = vpop.eup %5821  ;;  %5621 = vmatprep.mubr.msk.f32.mxu1 %vm4189_vm12, %v8840_v44  ;;  %v4306_v7 = vrot.slane %v8840_v44, 2  ;;  %v4315_v38 = vrot.slane %v8840_v44, 3  ;;  %v4324_v34 = vrot.slane %v8840_v44, 4  ;;  %v4334_v59 = vrot.slane %v8840_v44, 5 }
 0x88b   : > { %v4259_v52 = vsel %vm4189_vm12, %v8842_v24, 0.0  ;;  %v4344_v58 = vrot.slane %v8840_v44, 6  ;;  %v4354_v13 = vrot.slane %v8840_v44, 7 }
 0x88c   : > { %4260 = vadd.xlane.f32.xlu0 %v4259_v52 }
 0x895   : > { %5791 = vrot.lane.b32.xlu1 %v5790_v62, %s5981_s18  ;;  %s5989_s18 = smov 16  }
 0x899   : > { %5801 = vrot.lane.b32.xlu1 %v5790_v62, %s5983_s26  ;;  %s5990_s26 = smov 24  }
 0x8a2   : > { %5796 = vrot.lane.b32.xlu0 %v5790_v62, %s9194_s25  ;;  %s9468_s25 = smov 32  }
 0x8b5   : > { %v4243_v4 = vpop.xlane.xlu0 %4242 }
 0x8b6   : > { %5823 = vrcp.f32 %v4243_v4 }
 0x8c0   : > { %v5824_v18 = vpop.eup %5823 }
 0x8c1   : > { %v4265_v46 = vmul.f32 %v5824_v18, %v8807_v32  ;;  %v4246_v28 = vpop.xlane.xlu1 %4245 }
 0x8c2   : > { %5825 = vrcp.f32 %v4246_v28 }
 0x8c3   : > { %v4279_v22 = vmul.f32 %v4265_v46, %v8851_v8 }
 0x8c5   : > { %5622 = vmatmul.mubr.msk.f32.vlgmr.msra.gmra.mrb[34].mxu1 %vm4189_vm12, %v4279_v22  ;;  %v4375_v6 = vrot.slane %v4279_v22, 1  ;;  %v4384_v36 = vrot.slane %v4279_v22, 2  ;;  %v4393_v45 = vrot.slane %v4279_v22, 3  ;;  %v4402_v5 = vrot.slane %v4279_v22, 4 }
 0x8c6   : > { %v4412_v57 = vrot.slane %v4279_v22, 5  ;;  %v4422_v63 = vrot.slane %v4279_v22, 6  ;;  %v4432_v0 = vrot.slane %v4279_v22, 7 }
 0x8cc   : > { %v5826_v2 = vpop.eup %5825 }
 0x8cd   : > { %v4267_v35 = vmul.f32 %v5826_v2, %v8811_v25 }
 0x8cf   : > { %v8858_v54 = vmul.f32 %v4267_v35, %v8837_v3 }
 0x8d1   : > { %5628 = vmatprep.mubr.msk.f32.mxu1 %vm4189_vm12, %v8858_v54  ;;  %v4307_v40 = vrot.slane %v8858_v54, 1  ;;  %v4316_v16 = vrot.slane %v8858_v54, 2  ;;  %v4325_v42 = vrot.slane %v8858_v54, 3  ;;  %v4335_v55 = vrot.slane %v8858_v54, 4 }
 0x8d2   : > { %v4345_v31 = vrot.slane %v8858_v54, 5  ;;  %v4355_v26 = vrot.slane %v8858_v54, 6  ;;  %v4290_v47 = vrot.slane %v8858_v54, 7 }
 0x8d3   : > { %v4308_v15 = vsel %vm1768_vm2, %v4307_v40, %v4306_v7  ;;  %v4326_v29 = vsel %vm1768_vm2, %v4325_v42, %v4324_v34  ;;  %v4336_v52 = vsel %vm1768_vm2, %v4335_v55, %v4334_v59 }
 0x8d4   : > { %v4346_v62 = vsel %vm1768_vm2, %v4345_v31, %v4344_v58  ;;  %v4356_v4 = vsel %vm1768_vm2, %v4355_v26, %v4354_v13 }
 0x8d9   : > { %v4249_v9 = vpop.xlane.xlu0 %4248 }
 0x8da   : > { %5827 = vrcp.f32 %v4249_v9 }
 0x8e4   : > { %v5828_v53 = vpop.eup %5827 }
 0x8e5   : > { %v4269_v39 = vmul.f32 %v5828_v53, %v5812_v41  ;;  %v4297_v41 = vrot.slane %v8840_v44, 1 }
 0x8e7   : > { %v8863_v51 = vmul.f32 %v4269_v39, %v8851_v8  ;;  %v4298_v19 = vsel %vm1768_vm2, %v8858_v54, %v4297_v41 }
 0x8e9   : > { %v8867_v61 = vsel %vm1768_vm2, %v8863_v51, %v4375_v6  ;;  %v4385_v14 = vrot.slane %v8863_v51, 1  ;;  %v4394_v21 = vrot.slane %v8863_v51, 2  ;;  %v4403_v33 = vrot.slane %v8863_v51, 3 }
 0x8ea   : > { %v4413_v10 = vrot.slane %v8863_v51, 4  ;;  %v4423_v32 = vrot.slane %v8863_v51, 5  ;;  %v4433_v49 = vrot.slane %v8863_v51, 6  ;;  %v4368_v48 = vrot.slane %v8863_v51, 7 }
 0x8eb   : > { %v8877_v25 = vsel %vm1768_vm2, %v4385_v14, %v4384_v36  ;;  %v8880_v20 = vsel %vm1768_vm2, %v4394_v21, %v4393_v45  ;;  %v8883_v23 = vsel %vm1768_vm2, %v4403_v33, %v4402_v5 }
 0x8ec   : > { %v8886_v50 = vsel %vm1768_vm2, %v4413_v10, %v4412_v57  ;;  %v8889_v30 = vsel %vm1768_vm2, %v4423_v32, %v4422_v63  ;;  %v8892_v1 = vsel %vm1768_vm2, %v4433_v49, %v4432_v0  ;;  %v8895_v56 = vsel %vm1768_vm2, %v4368_v48, %v4279_v22 }
 0x8ed   : > { %v4291_v63 = vsel %vm1768_vm2, %v4290_v47, %v8840_v44 }
 0x8fd   : > { %v4252_v60 = vpop.xlane.xlu1 %4251 }
 0x8fe   : > { %5829 = vrcp.f32 %v4252_v60 }
 0x908   : > { %v5830_v27 = vpop.eup %5829 }
 0x909   : > { %v4271_v37 = vmul.f32 %v5830_v27, %v8820_v43  ;;  %v4317_v43 = vsel %vm1768_vm2, %v4316_v16, %v4315_v38 }
 0x90b   : > { %v4282_v11 = vmul.f32 %v4271_v37, %v8837_v3 }
 0x90d   : > { %5635 = vmatprep.mubr.msk.f32.mxu0 %vm4189_vm12, %v4282_v11  ;;  %v4255_v18 = vpop.xlane.xlu0 %4254  ;;  %v4299_v46 = vrot.slane %v4282_v11, 7  ;;  %v8923_v28 = vsel %vm1771_vm3, %v4282_v11, %v4308_v15  ;;  %v4318_v22 = vrot.slane %v4282_v11, 1  ;;  %v4327_v2 = vrot.slane %v4282_v11, 2 }
 0x90e   : > { %5831 = vrcp.f32 %v4255_v18  ;;  %v4337_v35 = vrot.slane %v4282_v11, 3  ;;  %v4347_v54 = vrot.slane %v4282_v11, 4  ;;  %v4357_v9 = vrot.slane %v4282_v11, 5 }
 0x90f   : > { %v4300_v53 = vsel %vm1771_vm3, %v4299_v46, %v4298_v19  ;;  %v4319_v39 = vsel %vm1771_vm3, %v4318_v22, %v4317_v43  ;;  %v4328_v6 = vsel %vm1771_vm3, %v4327_v2, %v4326_v29  ;;  %v4292_v36 = vrot.slane %v4282_v11, 6 }
 0x910   : > { %v4338_v45 = vsel %vm1771_vm3, %v4337_v35, %v4336_v52  ;;  %v4348_v5 = vsel %vm1771_vm3, %v4347_v54, %v4346_v62  ;;  %v8931_v57 = vsel %vm1771_vm3, %v4357_v9, %v4356_v4 }
 0x911   : > { %v4258_v0 = vpop.xlane.xlu1 %4257  ;;  %v8936_v14 = vsel %vm1771_vm3, %v4292_v36, %v4291_v63 }
 0x912   : > { %5833 = vrcp.f32 %v4258_v0 }
 0x915   : > { %v5792_v21 = vpop.permute.xlu1 %5791 }
 0x916   : > { %v5794_v33 = vunpack.i.h.bf16 %v5792_v21  ;;  %v5793_v10 = vunpack.i.l.bf16 %v5792_v21 }
 0x918   : > { %v5832_v32 = vpop.eup %5831  ;;  %v5684_v49 = vpack.c.bf16 %v5794_v33, %v5793_v10 }
 0x919   : > { %v4273_v48 = vmul.f32 %v5832_v32, %v8825_v12  ;;  %v4261_v60 = vpop.xlane.xlu0 %4260  ;;  %v5802_v41 = vpop.permute.xlu1 %5801 }
 0x91a   : > { %5835 = vrcp.f32 %v4261_v60  ;;  %5685 = vmatprep.subr.bf16.mxu1 %v5684_v49  ;;  %v5804_v40 = vunpack.i.h.bf16 %v5802_v41  ;;  %v5803_v16 = vunpack.i.l.bf16 %v5802_v41  ;;  %v4832_v60 = vld [vmem:[%s9173_s11 + $0x8] sm:$0xff] }
 0x91b   : > { %v4283_v44 = vmul.f32 %v4273_v48, %v8851_v8  ;;  %5687 = vmatpush3.bf16.msra.mxu1 %v5684_v49  ;;  %v4831_v48 = vld [vmem:[%s9173_s11] sm:$0xff] }
 0x91c   : > { %v5834_v27 = vpop.eup %5833  ;;  %v5692_v42 = vpack.c.bf16 %v5804_v40, %v5803_v16  ;;  %v5696_v41 = vpack.c.bf16 %v4832_v60, %v4831_v48  ;;  %v4833_v40 = vld [vmem:[%s9173_s11 + $0x10] sm:$0xff]  ;;  %v4834_v16 = vld [vmem:[%s9173_s11 + $0x18] sm:$0xff] }
 0x91d   : > { %v4275_v55 = vmul.f32 %v5834_v27, %v8829_v17  ;;  %v5797_v31 = vpop.permute.xlu0 %5796  ;;  %v4377_v26 = vrot.slane %v4283_v44, 7  ;;  %v4387_v37 = vsel %vm1771_vm3, %v4283_v44, %v8877_v25  ;;  %v4396_v7 = vrot.slane %v4283_v44, 1 }
 0x91e   : > { %v5799_v12 = vunpack.i.h.bf16 %v5797_v31  ;;  %v5798_v38 = vunpack.i.l.bf16 %v5797_v31  ;;  %5629 = vmatmul.mubr.msk.f32.vlgmr.msra.gmra.mrb[36].mxu1 %vm4189_vm12, %v8863_v51  ;;  %5693 = vmatprep.subr.bf16.mxu1 %v5692_v42  ;;  %v4405_v34 = vrot.slane %v4283_v44, 2  ;;  %v4415_v19 = vrot.slane %v4283_v44, 3 }
 0x91f   : > { %v4284_v59 = vmul.f32 %v4275_v55, %v8837_v3  ;;  %5695 = vmatpush3.bf16.msra.mxu1 %v5692_v42  ;;  %v4378_v17 = vsel %vm1771_vm3, %v4377_v26, %v8867_v61  ;;  %v4397_v58 = vsel %vm1771_vm3, %v4396_v7, %v8880_v20  ;;  %v4425_v13 = vrot.slane %v4283_v44, 4 }
 0x920   : > { %v5688_v25 = vpack.c.bf16 %v5799_v12, %v5798_v38  ;;  %v4406_v11 = vsel %vm1771_vm3, %v4405_v34, %v8883_v23  ;;  %v4416_v51 = vsel %vm1771_vm3, %v4415_v19, %v8886_v50  ;;  %v4435_v15 = vrot.slane %v4283_v44, 5 }
 0x921   : > { %5642 = vmatprep.mubr.msk.f32.mxu1 %vm4189_vm12, %v4284_v59  ;;  %v4301_v43 = vrot.slane %v4284_v59, 6  ;;  %v4310_v3 = vrot.slane %v4284_v59, 7  ;;  %v8956_v47 = vsel %vm1774_vm4, %v4284_v59, %v4319_v39  ;;  %v4329_v61 = vrot.slane %v4284_v59, 1 }
 0x922   : > { %5689 = vmatprep.subr.bf16.mxu0 %v5688_v25  ;;  %v4339_v29 = vrot.slane %v4284_v59, 2  ;;  %v4426_v20 = vsel %vm1771_vm3, %v4425_v13, %v8889_v30  ;;  %v4349_v52 = vrot.slane %v4284_v59, 3  ;;  %v4436_v23 = vsel %vm1771_vm3, %v4435_v15, %v8892_v1 }
 0x923   : > { %5691 = vmatpush3.bf16.msra.mxu0 %v5688_v25  ;;  %v4302_v50 = vsel %vm1774_vm4, %v4301_v43, %v4300_v53  ;;  %v4311_v62 = vsel %vm1774_vm4, %v4310_v3, %v8923_v28  ;;  %v8966_v4 = vsel %vm1774_vm4, %v4329_v61, %v4328_v6  ;;  %v4359_v18 = vrot.slane %v4284_v59, 4 }
 0x924   : > { %v5836_v46 = vpop.eup %5835  ;;  %v8969_v22 = vsel %vm1774_vm4, %v4339_v29, %v4338_v45  ;;  %v8972_v30 = vsel %vm1774_vm4, %v4349_v52, %v4348_v5  ;;  %v4370_v2 = vrot.slane %v4283_v44, 6  ;;  %v4294_v35 = vrot.slane %v4284_v59, 5  ;;  %5697 = vmatprep.subr.bf16.mxu0 %v5696_v41 }
 0x925   : > { %v4277_v1 = vmul.f32 %v5836_v46, %v8842_v24  ;;  %v4360_v54 = vsel %vm1774_vm4, %v4359_v18, %v8931_v57 }
 0x926   : > { %5636 = vmatmul.mubr.msk.f32.vlgmr.msra.gmra.mrb[32].mxu0 %vm4189_vm12, %v4283_v44  ;;  %v4371_v28 = vsel %vm1771_vm3, %v4370_v2, %v8895_v56  ;;  %v8982_v9 = vsel %vm1774_vm4, %v4294_v35, %v8936_v14  ;;  %v5700_v44 = vpack.c.bf16 %v4834_v16, %v4833_v40 }
 0x927   : > { %v4285_v53 = vmul.f32 %v4277_v1, %v8851_v8  ;;  %5699 = vmatpush3.bf16.msra.mxu0 %v5696_v41 }
 0x928   : > { %5701 = vmatprep.subr.bf16.mxu0 %v5700_v44 }
 0x929   : > { %5643 = vmatmul.mubr.msk.f32.vlgmr.msra.gmra.mrb[38].mxu1 %vm4189_vm12, %v4285_v53  ;;  %v4379_v39 = vrot.slane %v4285_v53, 6  ;;  %v4388_v6 = vrot.slane %v4285_v53, 7  ;;  %v4398_v24 = vsel %vm1774_vm4, %v4285_v53, %v4397_v58  ;;  %v4407_v36 = vrot.slane %v4285_v53, 1 }
 0x92a   : > { %v4417_v45 = vrot.slane %v4285_v53, 2  ;;  %v4427_v5 = vrot.slane %v4285_v53, 3  ;;  %v4437_v57 = vrot.slane %v4285_v53, 4  ;;  %v4372_v63 = vrot.slane %v4285_v53, 5 }
 0x92b   : > { %v4380_v0 = vsel %vm1774_vm4, %v4379_v39, %v4378_v17  ;;  %v4389_v56 = vsel %vm1774_vm4, %v4388_v6, %v4387_v37  ;;  %v4408_v14 = vsel %vm1774_vm4, %v4407_v36, %v4406_v11  ;;  %5703 = vmatpush3.bf16.msra.mxu0 %v5700_v44 }
 0x92c   : > { %v4418_v21 = vsel %vm1774_vm4, %v4417_v45, %v4416_v51  ;;  %v4428_v8 = vsel %vm1774_vm4, %v4427_v5, %v4426_v20  ;;  %v4438_v33 = vsel %vm1774_vm4, %v4437_v57, %v4436_v23  ;;  %v8994_v10 = vsel %vm1774_vm4, %v4372_v63, %v4371_v28 }
 0x998   : > { %v5623_v32 = vpop.f32.mrb[34].mxu1 }
 0x999   : > { %v4554_v49 = vpop.f32.mrb[35].mxu1 }
 0x9f1   : > { %v5630_v27 = vpop.f32.mrb[36].mxu1 }
 0x9f2   : > { %4804 = vrot.lane.b32.xlu0 %v5630_v27, %s9196_s20  ;;  %v4633_v42 = vpop.f32.mrb[37].mxu1 }
 0x9f3   : > { %4802 = vrot.lane.b32.xlu1 %v4633_v42, %s9196_s20 }
 0x9f9   : > { %v5637_v55 = vpop.f32.mrb[32].mxu0 }
 0x9fa   : > { %4812 = vrot.lane.b32.xlu0 %v5637_v55, %s5989_s18  ;;  %v4712_v31 = vpop.f32.mrb[33].mxu0 }
 0x9fb   : > { %4810 = vrot.lane.b32.xlu1 %v4712_v31, %s5989_s18 }
 0x9fc   : > { %v5644_v26 = vpop.f32.mrb[38].mxu1 }
 0x9fd   : > { %v4791_v37 = vpop.f32.mrb[39].mxu1 }
 0x9fe   : > { %4820 = vrot.lane.b32.xlu0 %v5644_v26, %s5990_s26 }
 0x9ff   : > { %4818 = vrot.lane.b32.xlu1 %v4791_v37, %s5990_s26  ;;  %s5205_s26 = sshll.u32 %s7733_s16, 3 }
 0xa02   : > { %4381 = vrot.lane.b32.xlu0 %v4380_v0, %s5989_s18 }
 0xa03   : > { %4303 = vrot.lane.b32.xlu1 %v4302_v50, %s5989_s18  ;;  %s9471_s18 = smov 112  }
 0xa06   : > { %4390 = vrot.lane.b32.xlu0 %v4389_v56, %s9468_s25 }
 0xa07   : > { %4312 = vrot.lane.b32.xlu1 %v4311_v62, %s9468_s25 }
 0xa0a   : > { %4399 = vrot.lane.b32.xlu0 %v4398_v24, %s5991_s27 }
 0xa0b   : > { %4321 = vrot.lane.b32.xlu1 %v8956_v47, %s5991_s27  ;;  %s9039_s27 = scalar_lea.vmem [#allocation6], %s5205_s26 }
 0xa0e   : > { %4409 = vrot.lane.b32.xlu0 %v4408_v14, %s9469_s17 }
 0xa0f   : > { %4331 = vrot.lane.b32.xlu1 %v8966_v4, %s9469_s17  ;;  %s9472_s17 = sadd.s32 4294967295, %s5978_s23  }
 0xa12   : > { %4419 = vrot.lane.b32.xlu0 %v4418_v21, %s5992_s24 }
 0xa13   : > { %4341 = vrot.lane.b32.xlu1 %v8969_v22, %s5992_s24  ;;  %s9044_s24 = sand.u32 1, %s9472_s17   ;;  %s5993_s17 = smov [#allocation4]  }
 0xa14   : > { %s4931_s26 = scalar_lea.sflag [#allocation5], %s9044_s24  ;;  %s5844_s3 = sshll.u32 %s5993_s17, 4  ;;  %s5845_s3 = int_to_ptr.vmem [resolvable:$false] %s5844_s3 }
 0xa15   : > { %s5846_s4 = scalar_lea.vmem %s5845_s3, 2048  ;;  %p5847_p1 = scmp.lt.s32.totalorder %s9053_s1, %s5845_s3 }
 0xa16   : > { %4429 = vrot.lane.b32.xlu0 %v4428_v8, %s9470_s29  ;;  %p5848_p2 = scmp.lt.s32.totalorder %s5846_s4, %s5840_s2 }
 0xa17   : > { %4351 = vrot.lane.b32.xlu1 %v8972_v30, %s9470_s29  ;;  %s5313_s29 = sshll.u32 %s5970_s21, 10 }
 0xa18   : > { %s9050_s0 = scalar_lea.hbm %s9176_s14, %s5313_s29  ;;  %p5849_p3 = por %p5848_p2, %p5847_p1 }
 0xa1a   : > { %4439 = vrot.lane.b32.xlu0 %v4438_v33, %s9471_s18  ;;  %p5850_p5 = pnand %p5849_p3, %p5843_p0 }
 0xa1b   : > { %4361 = vrot.lane.b32.xlu1 %v4360_v54, %s9471_s18 }
 0xa64   : > { %v4805_v7 = vpop.permute.xlu0 %4804 }
 0xa65   : > { %v4803_v12 = vpop.permute.xlu1 %4802  ;;  %v4825_v17 = vsel %vm2352_vm1, %v5623_v32, %v4805_v7 }
 0xa66   : > { %v4824_v19 = vsel %vm2352_vm1, %v4554_v49, %v4803_v12  ;;  %vm4450_vm1 = vcmask 916480  }
 0xa6c   : > { %v4813_v38 = vpop.permute.xlu0 %4812 }
 0xa6d   : > { %v4811_v34 = vpop.permute.xlu1 %4810  ;;  %v4827_v25 = vsel %vm4189_vm12, %v4825_v17, %v4813_v38 }
 0xa6e   : > { %v4826_v58 = vsel %vm4189_vm12, %v4824_v19, %v4811_v34 }
 0xa70   : > { %v4821_v59 = vpop.permute.xlu0 %4820 }
 0xa71   : > { %v4819_v13 = vpop.permute.xlu1 %4818  ;;  %v4830_v51 = vsel %vm4828_vm13, %v4827_v25, %v4821_v59 }
 0xa72   : > { %v4829_v11 = vsel %vm4828_vm13, %v4826_v58, %v4819_v13 }
 0xa73   : > { %5653 = vmatprep.mubr.msk.f32.mxu0 %vm759_vm0, %v4829_v11 }
 0xa74   : > { %v4382_v15 = vpop.permute.xlu0 %4381  ;;  %5654 = vmatmul.mubr.msk.f32.vlgmr.msra.gmra.mrb[34].mxu0 %vm759_vm0, %v4830_v51 }
 0xa75   : > { %v4304_v43 = vpop.permute.xlu1 %4303  ;;  %v4452_v62 = vsel %vm4189_vm12, %v8994_v10, %v4382_v15 }
 0xa76   : > { %v4442_v4 = vsel %vm4189_vm12, %v8982_v9, %v4304_v43 }
 0xa78   : > { %v4391_v3 = vpop.permute.xlu0 %4390 }
 0xa79   : > { %v4313_v47 = vpop.permute.xlu1 %4312  ;;  %v4453_v18 = vsel %vm759_vm0, %v4452_v62, %v4391_v3 }
 0xa7a   : > { %v4443_v22 = vsel %vm759_vm0, %v4442_v4, %v4313_v47 }
 0xa7c   : > { %v4400_v61 = vpop.permute.xlu0 %4399 }
 0xa7d   : > { %v4322_v29 = vpop.permute.xlu1 %4321  ;;  %v4454_v30 = vsel %vm4444_vm14, %v4453_v18, %v4400_v61 }
 0xa7e   : > { %v4445_v35 = vsel %vm4444_vm14, %v4443_v22, %v4322_v29 }
 0xa80   : > { %v4410_v20 = vpop.permute.xlu0 %4409 }
 0xa81   : > { %v4332_v52 = vpop.permute.xlu1 %4331  ;;  %v4455_v1 = vsel %vm2320_vm9, %v4454_v30, %v4410_v20 }
 0xa82   : > { %v4446_v54 = vsel %vm2320_vm9, %v4445_v35, %v4332_v52 }
 0xa84   : > { %v4420_v23 = vpop.permute.xlu0 %4419 }
 0xa85   : > { %v4342_v50 = vpop.permute.xlu1 %4341  ;;  %v4456_v28 = vsel %vm4447_vm15, %v4455_v1, %v4420_v23 }
 0xa86   : > { %v4448_v9 = vsel %vm4447_vm15, %v4446_v54, %v4342_v50 }
 0xa88   : > { %v4430_v46 = vpop.permute.xlu0 %4429 }
 0xa89   : > { %v4352_v2 = vpop.permute.xlu1 %4351  ;;  %v4457_v53 = vsel %vm2323_vm10, %v4456_v28, %v4430_v46 }
 0xa8a   : > { %v4449_v6 = vsel %vm2323_vm10, %v4448_v9, %v4352_v2 }
 0xa8c   : > { %v4440_v39 = vpop.permute.xlu0 %4439 }
 0xa8d   : > { %v4458_v24 = vsel %vm4450_vm1, %v4457_v53, %v4440_v39  ;;  %v4362_v36 = vpop.permute.xlu1 %4361 }
 0xa8e   : > { %v4451_v45 = vsel %vm4450_vm1, %v4449_v6, %v4362_v36 }
 0xa8f   : > { %v4461_v5 = vcombine.low %v4451_v45, %v4458_v24 }
 0xa91   : > { %4463 = vst [vmem:[%s9039_s27] sm:$0xff] %v4461_v5 }
 0xa92   : > { %5853 = shalt.err (!%p5850_p5)
}
 0xa93   : > { %s5854_s22 = scalar_lea.hbm %s9050_s0, 1024  ;;  %s5858_s18 = scalar_lea.hbm %s9176_s14, 2048 }
 0xa94   : > { %p5855_p6 = scmp.ne.s32.totalorder %s9050_s0, %s5854_s22  ;;  %p5859_p10 = scmp.lt.u32.totalorder %s9050_s0, %s9176_s14 }
 0xa95   : > { %p5860_p11 = scmp.lt.u32.totalorder %s5858_s18, %s5854_s22  ;;  %p5862_p13 = scmp.lt.u32.totalorder %s5854_s22, %s9050_s0 }
 0xa96   : > { %p5856_p7 = pnand %p5855_p6, %p6120_p4 }
 0xa97   : > { %p5861_p12 = por %p5860_p11, %p5859_p10 }
 0xa98   : > { %p5857_p9 = pneg %p5856_p7 }
 0xa99   : > { %p5863_p0 = por %p5862_p13, %p5861_p12 }
 0xa9b   : > { %p5864_p1 = pnand %p5863_p0, %p5857_p9 }
 0xa9d   : > { %5867 = shalt.err (!%p5864_p1)
}
 0xa9e   : > { %s5994_s2 = smov 512   ;;  %s5314_s4 = sshll.u32 %s5970_s21, 7 }
 0xa9f   : > { %5709 = dma.vmem_to_hbm [thread:$0]  (%p6120_p4), %s9053_s1, 1024, %s9050_s0, %s4931_s26, %s5994_s2, %s5994_s2, %s9468_s25  }
 0xaa0   : > { %s4989_s20 = sshll.u32 %s9039_s27, 4  ;;  %s4987_s22 = scalar_lea.hbm %s9177_s15, %s5314_s4  ;;  %s4990_s20 = int_to_ptr.vmem [resolvable:$true] %s4989_s20 }
 0xaa1   : > { %s5868_s17 = scalar_lea.vmem %s4990_s20, 128  ;;  %s5995_s3 = smov [#allocation6]  }
 0xaa2   : > { %p5869_p2 = scmp.ne.s32.totalorder %s4990_s20, %s5868_s17  ;;  %s5872_s5 = sshll.u32 %s5995_s3, 4  ;;  %s5873_s5 = int_to_ptr.vmem [resolvable:$false] %s5872_s5 }
 0xaa3   : > { %s5874_s6 = scalar_lea.vmem %s5873_s5, 256  ;;  %p5875_p6 = scmp.lt.s32.totalorder %s4990_s20, %s5873_s5 }
 0xaa4   : > { %p5870_p3 = pnand %p5869_p2, %p6120_p4  ;;  %p5876_p7 = scmp.lt.s32.totalorder %s5874_s6, %s5868_s17 }
 0xaa6   : > { %p5871_p5 = pneg %p5870_p3  ;;  %p5877_p9 = por %p5876_p7, %p5875_p6 }
 0xaa8   : > { %p5878_p10 = pnand %p5877_p9, %p5871_p5 }
 0xaaa   : > { %5881 = shalt.err (!%p5878_p10)
}
 0xaab   : > { %s5882_s0 = scalar_lea.hbm %s4987_s22, 128  ;;  %s5886_s27 = scalar_lea.hbm %s9177_s15, 256 }
 0xaac   : > { %p5883_p11 = scmp.ne.s32.totalorder %s4987_s22, %s5882_s0  ;;  %p5887_p0 = scmp.lt.u32.totalorder %s4987_s22, %s9177_s15 }
 0xaad   : > { %p5888_p1 = scmp.lt.u32.totalorder %s5886_s27, %s5882_s0  ;;  %p5890_p3 = scmp.lt.u32.totalorder %s5882_s0, %s4987_s22 }
 0xaae   : > { %p5884_p12 = pnand %p5883_p11, %p6120_p4 }
 0xaaf   : > { %p5889_p2 = por %p5888_p1, %p5887_p0 }
 0xab0   : > { %p5885_p13 = pneg %p5884_p12 }
 0xab1   : > { %p5891_p6 = por %p5890_p3, %p5889_p2 }
 0xab3   : > { %p5892_p5 = pnand %p5891_p6, %p5885_p13 }
 0xab5   : > { %5895 = shalt.err (!%p5892_p5)
}
 0xab6   : > { %5710 = dma.vmem_to_hbm [thread:$0]  (%p6120_p4), %s4990_s20, 128, %s4987_s22, %s4931_s26   ;;  %v5293_v57 = vld [vmem:[%s9174_s12] ss:$0 sm:$0xff] }
 0xab7   : > { %s5203_s5 = sshll.u32 %s7733_s16, 4  ;;  %s5312_s3 = sshll.u32 %s5970_s21, 8 }
 0xab8   : > { %s613_s18 = scalar_lea.vmem [#allocation2], %s5203_s5  ;;  %s9109_s20 = scalar_lea.hbm %s9175_s13, %s5312_s3 }
 0xab9   : > { %s4951_s17 = sshll.u32 %s613_s18, 4  ;;  %s4926_s22 = scalar_lea.sflag [#allocation3], %s7733_s16  ;;  %s9104_s17 = int_to_ptr.vmem [resolvable:$true] %s4951_s17 }
 0xaba   : > { %s5896_s21 = scalar_lea.vmem %s9104_s17, 256  ;;  %s5996_s0 = smov [#allocation2]  }
 0xabb   : > { %p5897_p7 = scmp.ne.s32.totalorder %s9104_s17, %s5896_s21  ;;  %s5900_s1 = sshll.u32 %s5996_s0, 4  ;;  %s5901_s1 = int_to_ptr.vmem [resolvable:$false] %s5900_s1 }
 0xabc   : > { %s5902_s25 = scalar_lea.vmem %s5901_s1, 512  ;;  %p5903_p11 = scmp.lt.s32.totalorder %s9104_s17, %s5901_s1 }
 0xabd   : > { %p5898_p9 = pnand %p5897_p7, %p6120_p4  ;;  %p5904_p12 = scmp.lt.s32.totalorder %s5902_s25, %s5896_s21 }
 0xabf   : > { %p5899_p10 = pneg %p5898_p9  ;;  %p5905_p13 = por %p5904_p12, %p5903_p11 }
 0xac1   : > { %p5906_p0 = pnand %p5905_p13, %p5899_p10 }
 0xb47   : > { %v5655_v63 = vpop.f32.mrb[34].mxu0 }
 0xb48   : > { %v4920_v0 = vadd.f32 %v5655_v63, %v5293_v57  ;;  %v4914_v56 = vpop.f32.mrb[35].mxu0 }
 0xb49   : > { %v4915_v14 = vadd.f32 %v5293_v57, %v4914_v56 }
 0xb4a   : > { %4924 = vst.msk [vmem:[%s613_s18 + $0x8] sm:$0xff] %vm759_vm0, %v4920_v0 }
 0xb4b   : > { %4923 = vst.msk [vmem:[%s613_s18] sm:$0xff] %vm759_vm0, %v4915_v14 }
 0xb4c   : > { %5909 = shalt.err (!%p5906_p0)
}
 0xb4d   : > { %s5910_s27 = scalar_lea.hbm %s9109_s20, 256  ;;  %s5914_s5 = scalar_lea.hbm %s9175_s13, 512 }
 0xb4e   : > { %p5911_p1 = scmp.ne.s32.totalorder %s9109_s20, %s5910_s27  ;;  %p5915_p6 = scmp.lt.u32.totalorder %s9109_s20, %s9175_s13 }
 0xb4f   : > { %p5916_p5 = scmp.lt.u32.totalorder %s5914_s5, %s5910_s27  ;;  %p5918_p9 = scmp.lt.u32.totalorder %s5910_s27, %s9109_s20 }
 0xb50   : > { %p5912_p2 = pnand %p5911_p1, %p6120_p4 }
 0xb51   : > { %p5917_p7 = por %p5916_p5, %p5915_p6 }
 0xb52   : > { %p5913_p3 = pneg %p5912_p2 }
 0xb53   : > { %p5919_p10 = por %p5918_p9, %p5917_p7 }
 0xb55   : > { %p5920_p11 = pnand %p5919_p10, %p5913_p3 }
 0xb57   : > { %5923 = shalt.err (!%p5920_p11)
}
 0xb58   : > { %s5997_s18 = smov 128   ;;  %s9473_s3 = smov 8  }
 0xb59   : > { %5708 = dma.vmem_to_hbm [thread:$0]  (%p6120_p4), %s9104_s17, 256, %s9109_s20, %s4926_s22, %s5997_s18, %s5997_s18, %s9473_s3  }
 0xb5a PF: > { %s9474_s24 = sld [smem:[#allocation9_spill]]  ;;  %p5724_p12 = scmp.ge.s32.totalorder %s5978_s23, 2 }
 0xb5c   : > { %p5715_p13 = pnand %p5724_p12, %p6129_p8 }
 0xb60   : > { %s5001_s26 = sand.u32 1, %s9474_s24  }
 0xb61   : > { %s5002_s21 = scalar_lea.sflag [#allocation3], %s5001_s26 }
 0xb62   : > { %5949 = dma.done.wait (!%p5715_p13), %s5002_s21, 256  }
 0xb63   : > { %5951 = vsyncadd (!%p5715_p13), %s5002_s21, 4294967040  ;;  %s9475_s0 = sadd.s32 4294967294, %s5978_s23  }
 0xb64   : > { %s5010_s28 = sand.u32 1, %s9475_s0  }
 0xb65   : > { %s5011_s1 = scalar_lea.sflag [#allocation5], %s5010_s28 }
 0xb66   : > { %5953 = dma.done.wait (!%p5715_p13), %s5011_s1, 1152  }
 0xb67   : > { %5955 = vsyncadd (!%p5715_p13), %s5011_s1, 4294966144  ;;  %s32_s23 = sadd.s32 1, %s5978_s23   ;;  %s9476_s16 = sld [smem:[#allocation10_spill]] }
 0xb68   : > { %p29_p4 = scmp.ge.s32.totalorder %s32_s23, 4   ;;  %s9477_s20 = sld [smem:[#allocation13_spill]] }
 0xb69   : > { %s9478_s21 = sld [smem:[#allocation11_spill]]  ;;  %s9479_s22 = sld [smem:[#allocation12_spill]] }
 0xb6a   : > { %s9480_s18 = smov %s5962_s19  ;;  %31 = sbr.rel (!%p29_p4) target bundleno = 14 (0xe), region = 151 }
 0xb6d   : > { %s9481_s19 = smov %s9476_s16 }
 0xb71   :  { %5025 = vsyncpa [#allocation3], 1 }
 0xb72   :  { %5027 = vsyncpa [#allocation3 + $0x1], 1 }
 0xb73   :  { %5028 = vsyncpa [#allocation5], 1 }
 0xb74   :  { %5030 = vsyncpa [#allocation5 + $0x1], 1 }

</bundles_post_ra>
